<compile_context>
chip_gen: v7x
topology: tpu7x:2x2x1
jax: 0.10.0
libtpu: 0.0.40
codegen_flags: <defaults>
</compile_context>

<pallas_src>
import math
import itertools

import jax
import jax.numpy as jnp
from jax import lax
from jax.experimental import pallas as pl
from jax.experimental.pallas import tpu as pltpu
import numpy as np


def _make_pose_kernel(criterion, use_disp, use_cls, clamp_val, nll_a, nll_c, B, TB):
    """Per-grid-step kernel (static configuration baked in).

    Ref order:
      mu_ref, gt_ref            : (TB, C) prediction / ground truth (any float dtype)
      [disp_ref, offdiag_ref]   : (TB, C) dispersion, (1, C) off-diagonal 0/1 mask
      [w_ref]                   : (TB, C) per-element class weight
      rhs_ref                   : (C, 2K) reduction matrix [chan-select | chan-select*intra]
      out_ref                   : (1, 1, 2K) per-step partial sums (total | intra)
    """
    ragged = (B % TB) != 0

    def kernel(*refs):
        it = iter(refs)
        mu_ref = next(it)
        gt_ref = next(it)
        disp_ref = next(it) if use_disp else None
        offdiag_ref = next(it) if use_disp else None
        w_ref = next(it) if use_cls else None
        rhs_ref = next(it)
        out_ref = next(it)

        # elementwise error in f32 (upcast right after load: supports bf16 inputs)
        err = mu_ref[...].astype(jnp.float32) - gt_ref[...].astype(jnp.float32)
        nll = err * err if criterion == 'mse' else jnp.abs(err)

        if use_disp:
            disp = disp_ref[...].astype(jnp.float32)
            nll = nll_a * (nll / disp + jnp.log(disp) + nll_c)
            # zero the (i == j) token-pair diagonal: precomputed constant row, no iota
            nll = nll * offdiag_ref[...]

        if use_cls:
            nll = nll * w_ref[...].astype(jnp.float32)

        if clamp_val is not None:
            nll = jnp.minimum(nll, clamp_val)

        # total-per-channel and intra-view-per-channel in one MXU matmul.
        part = jnp.dot(nll, rhs_ref[...],
                       precision=lax.Precision.HIGHEST,
                       preferred_element_type=jnp.float32)        # (TB, 2K)

        if ragged:
            # last block may overrun the batch: zero contributions of out-of-range rows
            rows_left = B - pl.program_id(0) * TB
            valid = lax.broadcasted_iota(jnp.int32, part.shape, 0) < rows_left
            part = jnp.where(valid, part, 0.0)

        out_ref[0] = jnp.sum(part, axis=0, keepdims=True)          # (1, 2K)

    return kernel


def _pick_tb(batch, row_bytes):
    """Batch rows per grid step.

    Target ~2 MiB per input stream per step (big enough to amortize per-step overhead,
    small enough that up to 4 double-buffered streams stay well inside the 32 MiB VMEM
    budget on every TPU generation), while keeping >= 2 grid steps for larger batches so
    the 'parallel' batch axis can be split across the two TensorCores of a v7x chip.
    """
    target = 2 << 20
    if batch < 16:
        return batch                                  # single block (block dim == full dim)
    tb_bw = max(8, (target // row_bytes) // 8 * 8)    # bandwidth / VMEM driven
    tb_split = max(8, (batch // 2) // 8 * 8)          # keep at least two grid steps
    return int(min(tb_bw, tb_split, batch))


def _finalize(total, intra, Ms, B, M, alpha_t, alpha_s, alpha_ts):
    t_all = total[0:2].sum()
    s_all = total[2:4].sum()
    t_intra = intra[0:2].sum()
    s_intra = intra[2:4].sum()
    sum_Ms_sq = sum(m * m for m in Ms)
    diag_count = sum_Ms_sq * B
    offdiag_count = (M * M - sum_Ms_sq) * B
    t_inter = t_all - t_intra
    s_inter = s_all - s_intra
    loss_intra_t = t_intra / diag_count
    loss_inter_t = t_inter / offdiag_count
    loss_intra_s = s_intra / diag_count
    loss_inter_s = s_inter / offdiag_count
    loss_t = alpha_t * loss_inter_t + (1 - alpha_t) * loss_intra_t
    loss_s = alpha_s * loss_inter_s + (1 - alpha_s) * loss_intra_s
    loss = alpha_ts * loss_t + (1 - alpha_ts) * loss_s
    return {'loss_pose_intra_t': loss_intra_t, 'loss_pose_inter_t': loss_inter_t,
            'loss_pose_intra_s': loss_intra_s, 'loss_pose_inter_s': loss_inter_s,
            'loss_pose_t': loss_t, 'loss_pose_s': loss_s, 'loss_pose': loss}


def pose_loss(pred, gt_dT, Ms, cls_w=None, *,
              criterion='l1', alpha_t=0.5, alpha_s=1.0, alpha_ts=0.5,
              uncertainty_mode='none', clamp_nll=None):
    """Pallas implementation of PoseLoss.forward (native [B, M, M, K] layout)."""
    assert criterion in ('mse', 'l1')
    B, M, M2, K = gt_dT.shape
    assert M == M2 and sum(Ms) == M
    C = M * M * K

    nll_a = 0.5 if criterion == 'mse' else 1.0
    nll_c = math.log(2 * math.pi) if criterion == 'mse' else math.log(2.0)
    use_disp = uncertainty_mode != 'none'
    use_cls = cls_w is not None
    clamp_val = float(clamp_nll) if clamp_nll else None   # mirrors torch `if self.clamp_nll:`

    # --- free reshapes only: contiguous collapse of [B, M, M, K] -> [B, C] ------------
    mu = pred['pred_dT'].reshape(B, C)
    gt = gt_dT.reshape(B, C)

    row_bytes = C * max(mu.dtype.itemsize, gt.dtype.itemsize)
    TB = _pick_tb(B, row_bytes)
    nb = pl.cdiv(B, TB)

    # --- constants built once on host; constant index maps => DMA'd once --------------
    col = np.arange(C)
    k_of_c = col % K                 # column c encodes (i, j, k) with k fastest
    pair = col // K
    i_of_c = pair // M
    j_of_c = pair % M
    view = np.repeat(np.arange(len(Ms)), np.asarray(Ms))            # view id per token
    rhs_np = np.zeros((C, 2 * K), np.float32)
    rhs_np[col, k_of_c] = 1.0                                       # -> total per channel
    rhs_np[col, K + k_of_c] = (view[i_of_c] == view[j_of_c])        # -> intra-view per channel
    rhs = jnp.asarray(rhs_np)

    data_spec = pl.BlockSpec((TB, C), lambda s: (s, 0))
    inputs = [mu, gt]
    in_specs = [data_spec, data_spec]

    if use_disp:
        inputs.append(pred['disp_dT'].reshape(B, C))
        in_specs.append(data_spec)
        offdiag = jnp.asarray((i_of_c != j_of_c).astype(np.float32).reshape(1, C))
        inputs.append(offdiag)
        in_specs.append(pl.BlockSpec((1, C), lambda s: (0, 0)))

    if use_cls:
        w = jnp.sqrt(cls_w.astype(jnp.float32) * cls_w.shape[1])    # sqrt(M * w)
        w_pair = w[:, :, None] * w[:, None, :]                      # (B, M, M)
        wflat = jnp.broadcast_to(w_pair[..., None], (B, M, M, K)).reshape(B, C)
        inputs.append(wflat)
        in_specs.append(data_spec)

    inputs.append(rhs)
    in_specs.append(pl.BlockSpec((C, 2 * K), lambda s: (0, 0)))

    kernel = _make_pose_kernel(criterion, use_disp, use_cls, clamp_val,
                               nll_a, nll_c, B, TB)

    partials = pl.pallas_call(
        kernel,
        grid=(nb,),
        in_specs=in_specs,
        out_specs=pl.BlockSpec((1, 1, 2 * K), lambda s: (s, 0, 0)),
        out_shape=jax.ShapeDtypeStruct((nb, 1, 2 * K), jnp.float32),
        compiler_params=pltpu.CompilerParams(
            dimension_semantics=("parallel",),          # independent partials -> megacore OK
            vmem_limit_bytes=32 * 1024 * 1024),
    )(*inputs)

    sums = partials.reshape(nb, 2 * K).sum(axis=0)       # tiny epilogue in plain JAX
    return _finalize(sums[:K], sums[K:], Ms, B, M, alpha_t, alpha_s, alpha_ts)


def pose_loss_ref(pred, gt_dT, Ms, cls_w=None, *,
                  criterion='l1', alpha_t=0.5, alpha_s=1.0, alpha_ts=0.5,
                  uncertainty_mode='none', clamp_nll=None):
    """Pure-JAX reference mirroring the PyTorch code ([B, M, M, K] layout)."""
    B, M, _, K = gt_dT.shape
    mu = pred['pred_dT'].astype(jnp.float32)
    gt = gt_dT.astype(jnp.float32)
    err_fn = (lambda x: x * x) if criterion == 'mse' else jnp.abs
    nll_a = 0.5 if criterion == 'mse' else 1.0
    nll_c = math.log(2 * math.pi) if criterion == 'mse' else math.log(2.0)

    nll = err_fn(mu - gt)
    if uncertainty_mode != 'none':
        disp = pred['disp_dT'].astype(jnp.float32)
        nll = nll_a * (nll / disp + jnp.log(disp) + nll_c)
        nll = nll * (1.0 - jnp.eye(M, dtype=nll.dtype))[None, :, :, None]
    if cls_w is not None:
        w = jnp.sqrt(cls_w.astype(jnp.float32) * cls_w.shape[1])
        nll = nll * w[:, :, None, None] * w[:, None, :, None]
    if clamp_nll:
        nll = jnp.minimum(nll, clamp_nll)

    total = nll.sum(axis=(0, 1, 2))
    view_ends = list(itertools.accumulate(Ms))
    view_begins = [0] + view_ends[:-1]
    intra = sum(nll[:, s:e, s:e, :].sum(axis=(0, 1, 2))
                for s, e in zip(view_begins, view_ends))
    return _finalize(total, intra, Ms, B, M, alpha_t, alpha_s, alpha_ts)


if __name__ == "__main__":
    B, M, K = 2, 16, 4
    Ms = [6, 10]

    key = jax.random.PRNGKey(0)
    k1, k2, k3, k4 = jax.random.split(key, 4)
    gt = jax.random.normal(k1, (B, M, M, K), jnp.float32)
    mu = jax.random.normal(k2, (B, M, M, K), jnp.float32)
    disp = jnp.exp(0.3 * jax.random.normal(k3, (B, M, M, K), jnp.float32))  # positive dispersion
    cls_w = jax.nn.softmax(jax.random.normal(k4, (B, M), jnp.float32), axis=-1)

    # Config 1: module defaults (criterion='l1', uncertainty_mode='none', no cls_w, no clamp)
    out1 = pose_loss({'pred_dT': mu}, gt, Ms)
    ref1 = pose_loss_ref({'pred_dT': mu}, gt, Ms)

    # Config 2: mse criterion + heteroscedastic NLL + class weighting + clamp
    cfg2 = dict(criterion='mse', uncertainty_mode='additive', clamp_nll=5.0)
    out2 = pose_loss({'pred_dT': mu, 'disp_dT': disp}, gt, Ms, cls_w=cls_w, **cfg2)
    ref2 = pose_loss_ref({'pred_dT': mu, 'disp_dT': disp}, gt, Ms, cls_w=cls_w, **cfg2)

    jax.block_until_ready(out1)
    jax.block_until_ready(out2)

    for name, (o, r) in {'default': (out1, ref1), 'nll': (out2, ref2)}.items():
        for kname in r:
            np.testing.assert_allclose(np.asarray(o[kname]), np.asarray(r[kname]),
                                       rtol=1e-5, atol=1e-5, err_msg=f"{name}:{kname}")

    print("KERNEL_OK")
</pallas_src>

<mosaic_0001>
module attributes {stable_mosaic.version = 11 : i64} {
  func.func @kernel(%arg0: i32, %arg1: memref<2x1024xf32, #tpu.memory_space<vmem>>, %arg2: memref<2x1024xf32, #tpu.memory_space<vmem>>, %arg3: memref<1024x8xf32, #tpu.memory_space<vmem>>, %arg4: memref<1x1x8xf32, #tpu.memory_space<vmem>>) attributes {dimension_semantics = [#tpu.dimension_semantics<parallel>], iteration_bounds = array<i64: 1>, scalar_prefetch = 0 : i64, scratch_operands = 0 : i64, tpu.core_type = #tpu.core_type<tc>, window_params = [{transform_indices = @transform_0, window_bounds = array<i64: 2, 1024>}, {transform_indices = @transform_1, window_bounds = array<i64: 2, 1024>}, {pipeline_mode = #tpu.pipeline_mode<synchronous>, transform_indices = @transform_2, window_bounds = array<i64: 1024, 8>}, {transform_indices = @transform_3, window_bounds = array<i64: 1, 1, 8>}]} {
    %c0 = arith.constant 0 : index
    %c0_0 = arith.constant 0 : index
    %0 = vector.load %arg1[%c0, %c0_0] : memref<2x1024xf32, #tpu.memory_space<vmem>>, vector<2x1024xf32>
    %c0_1 = arith.constant 0 : index
    %c0_2 = arith.constant 0 : index
    %1 = vector.load %arg2[%c0_1, %c0_2] : memref<2x1024xf32, #tpu.memory_space<vmem>>, vector<2x1024xf32>
    %2 = arith.subf %0, %1 : vector<2x1024xf32>
    %3 = math.absf %2 : vector<2x1024xf32>
    %c0_3 = arith.constant 0 : index
    %c0_4 = arith.constant 0 : index
    %4 = vector.load %arg3[%c0_3, %c0_4] : memref<1024x8xf32, #tpu.memory_space<vmem>>, vector<1024x8xf32>
    %cst = arith.constant dense<0.000000e+00> : vector<2x8xf32>
    %5 = tpu.matmul %3, %4, %cst {dimension_numbers = #tpu.dot_dimension_numbers<[1], [0], [0], [1], [0, 0, 1, 1], [], []>, precision = #tpu.contract_precision<fp32>} : vector<2x1024xf32>, vector<1024x8xf32>, vector<2x8xf32> -> vector<2x8xf32>
    %cst_5 = arith.constant dense<0.000000e+00> : vector<8xf32>
    %6 = vector.multi_reduction <add>, %5, %cst_5 [0] : vector<2x8xf32> to vector<8xf32>
    %7 = vector.shape_cast %6 : vector<8xf32> to vector<1x8xf32>
    %c0_6 = arith.constant 0 : index
    %c0_7 = arith.constant 0 : index
    %c0_8 = arith.constant 0 : index
    %8 = vector.load %arg4[%c0_6, %c0_7, %c0_8] : memref<1x1x8xf32, #tpu.memory_space<vmem>>, vector<1x1x8xf32>
    %9 = vector.shape_cast %8 : vector<1x1x8xf32> to vector<1x8xf32>
    %10 = vector.shape_cast %7 : vector<1x8xf32> to vector<1x1x8xf32>
    tpu.vector_store %arg4[%c0_6, %c0_7, %c0_8], %10 {strides = array<i32>} : memref<1x1x8xf32, #tpu.memory_space<vmem>>, vector<1x1x8xf32>,
    return
  }
  func.func @transform_0(%arg0: i32) -> (i32, i32) {
    %c0_i32 = arith.constant 0 : i32
    %c0_i32_0 = arith.constant 0 : i32
    return %arg0, %c0_i32 : i32, i32
  }
  func.func @transform_1(%arg0: i32) -> (i32, i32) {
    %c0_i32 = arith.constant 0 : i32
    %c0_i32_0 = arith.constant 0 : i32
    return %arg0, %c0_i32 : i32, i32
  }
  func.func @transform_2(%arg0: i32) -> (i32, i32) {
    %c0_i32 = arith.constant 0 : i32
    %c0_i32_0 = arith.constant 0 : i32
    %c0_i32_1 = arith.constant 0 : i32
    return %c0_i32, %c0_i32_0 : i32, i32
  }
  func.func @transform_3(%arg0: i32) -> (i32, i32, i32) {
    %c0_i32 = arith.constant 0 : i32
    %c0_i32_0 = arith.constant 0 : i32
    %c0_i32_1 = arith.constant 0 : i32
    return %arg0, %c0_i32, %c0_i32_0 : i32, i32, i32
  }
}

</mosaic_0001>

<bundles_post_ra>
// kernel: tpu_custom_call.1
= control target key start
LH: loop header
LB: loop body
LE: loop exit
PB: predicated region body
PF: predicated region fallthrough
CT: control target
= control target key end

     0   :  { %v5301_v29 = vmov 1983009808   ;;  %s8349_s0 = inlined_call_operand.vmem [shape: f32[2,1024], index: 0, kind: input, shape index: {}]   ;;  %s8350_s1 = inlined_call_operand.vmem [shape: f32[2,1024], index: 1, kind: input, shape index: {}]   ;;  %s8351_s2 = inlined_call_operand.vmem [shape: f32[1024,8], index: 2, kind: input, shape index: {}]   ;;  %s8352_s3 = inlined_call_operand.hbm [shape: f32[1,1,8], index: 3, kind: output, shape index: {}]  }
   0x1   :  { %v39_v0 = vld [vmem:[%s8351_s2 + $0x80] sm:$0xff]  ;;  %v40_v1 = vld [vmem:[%s8351_s2 + $0x88] sm:$0xff]  ;;  %v41_v7 = vld [vmem:[%s8351_s2 + $0x90] sm:$0xff]  ;;  %v5376_v30 = vunpack.c.l.s4 %v5301_v29 }
   0x2   :  { %v23_v2 = vld [vmem:[%s8351_s2] sm:$0xff]  ;;  %v244_v3 = vand.u32 4294901760, %v39_v0  ;;  %v247_v4 = vand.u32 4294901760, %v40_v1  ;;  %v24_v5 = vld [vmem:[%s8351_s2 + $0x8] sm:$0xff]  ;;  %v42_v8 = vld [vmem:[%s8351_s2 + $0x98] sm:$0xff]  ;;  %v250_v10 = vand.u32 4294901760, %v41_v7 }
   0x3   :  { %v196_v6 = vand.u32 4294901760, %v23_v2  ;;  %v199_v9 = vand.u32 4294901760, %v24_v5  ;;  %v253_v11 = vand.u32 4294901760, %v42_v8  ;;  %v25_v12 = vld [vmem:[%s8351_s2 + $0x10] sm:$0xff]  ;;  %v26_v13 = vld [vmem:[%s8351_s2 + $0x18] sm:$0xff]  ;;  %v43_v18 = vld [vmem:[%s8351_s2 + $0xa0] sm:$0xff] }
   0x4   :  { %v5347_v14 = vpack.c.bf16 %v247_v4, %v244_v3  ;;  %v202_v16 = vand.u32 4294901760, %v25_v12  ;;  %v205_v17 = vand.u32 4294901760, %v26_v13  ;;  %v44_v19 = vld [vmem:[%s8351_s2 + $0xa8] sm:$0xff]  ;;  %v27_v23 = vld [vmem:[%s8351_s2 + $0x20] sm:$0xff]  ;;  %v5370_v26 = vsub.f32 %v41_v7, %v250_v10  ;;  %v45_v39 = vld [vmem:[%s8351_s2 + $0xb0] sm:$0xff] }
   0x5   :  { %v5349_v15 = vsub.f32 %v23_v2, %v196_v6  ;;  %v5357_v20 = vpack.c.bf16 %v199_v9, %v196_v6  ;;  %v5359_v21 = vsub.f32 %v24_v5, %v199_v9  ;;  %v5361_v22 = vpack.c.bf16 %v253_v11, %v250_v10  ;;  %v28_v24 = vld [vmem:[%s8351_s2 + $0x28] sm:$0xff]  ;;  %v46_v44 = vld [vmem:[%s8351_s2 + $0xb8] sm:$0xff]  ;;  %v29_v57 = vld [vmem:[%s8351_s2 + $0x30] sm:$0xff] }
   0x6   :  { %4508 = vmatprep.subr.bf16.mxu0 %v5347_v14  ;;  %v5372_v27 = vsub.f32 %v42_v8, %v253_v11  ;;  %v5374_v28 = vpack.c.bf16 %v205_v17, %v202_v16  ;;  %v256_v31 = vand.u32 4294901760, %v43_v18  ;;  %v259_v32 = vand.u32 4294901760, %v44_v19  ;;  %v30_v58 = vld [vmem:[%s8351_s2 + $0x38] sm:$0xff]  ;;  %v47_v7 = vld [vmem:[%s8351_s2 + $0xc0] sm:$0xff]  ;;  %v48_v8 = vld [vmem:[%s8351_s2 + $0xc8] sm:$0xff] }
   0x7   :  { %4510 = vmatpush3.bf16.msra.mxu0 %v5357_v20  ;;  %v5379_v33 = vsub.f32 %v39_v0, %v244_v3  ;;  %v5381_v34 = vsub.f32 %v40_v1, %v247_v4  ;;  %v208_v35 = vand.u32 4294901760, %v27_v23  ;;  %v211_v36 = vand.u32 4294901760, %v28_v24 }
   0x8   :  { %4512 = vmatprep.subr.bf16.mxu0 %v5361_v22  ;;  %v8368_v37 = vand.u32 4294901760, %v5349_v15  ;;  %v8367_v38 = vand.u32 4294901760, %v5359_v21  ;;  %v5389_v40 = vsub.f32 %v25_v12, %v202_v16  ;;  %v5391_v41 = vsub.f32 %v26_v13, %v205_v17  ;;  %v31_v13 = vld [vmem:[%s8351_s2 + $0x40] sm:$0xff] }
   0x9   :  { %v5393_v42 = vpack.c.bf16 %v259_v32, %v256_v31  ;;  %v8371_v43 = vand.u32 4294901760, %v5379_v33  ;;  %v5399_v45 = vsub.f32 %v43_v18, %v256_v31  ;;  %v5401_v46 = vsub.f32 %v44_v19, %v259_v32  ;;  %v32_v32 = vld [vmem:[%s8351_s2 + $0x48] sm:$0xff] }
   0xa   :  { %v8369_v47 = vand.u32 4294901760, %v5381_v34  ;;  %v5404_v48 = vpack.c.bf16 %v211_v36, %v208_v35  ;;  %v311_v50 = vsub.f32 %v5349_v15, %v8368_v37  ;;  %v318_v51 = vsub.f32 %v5359_v21, %v8367_v38 }
   0xb   :  { %4514 = vmatpush3.bf16.msra.mxu0 %v5374_v28  ;;  %v423_v49 = vsub.f32 %v5379_v33, %v8371_v43  ;;  %v262_v52 = vand.u32 4294901760, %v45_v39  ;;  %v265_v54 = vand.u32 4294901760, %v46_v44  ;;  %v8364_v55 = vand.u32 4294901760, %v5370_v26 }
   0xc   :  { %4516 = vmatprep.subr.bf16.mxu0 %v5393_v42  ;;  %v430_v53 = vsub.f32 %v5381_v34, %v8369_v47  ;;  %v8362_v56 = vand.u32 4294901760, %v5372_v27  ;;  %v5428_v60 = vsub.f32 %v27_v23, %v208_v35  ;;  %v312_v61 = vand.u32 4294901760, %v311_v50 }
   0xd   :  { %v424_v59 = vand.u32 4294901760, %v423_v49  ;;  %v319_v62 = vand.u32 4294901760, %v318_v51  ;;  %v5430_v0 = vsub.f32 %v28_v24, %v211_v36  ;;  %v5432_v1 = vpack.c.bf16 %v265_v54, %v262_v52 }
   0xe   :  { %v431_v63 = vand.u32 4294901760, %v430_v53  ;;  %v437_v2 = vsub.f32 %v5370_v26, %v8364_v55  ;;  %v444_v4 = vsub.f32 %v5372_v27, %v8362_v56  ;;  %v214_v5 = vand.u32 4294901760, %v29_v57 }
   0xf   :  { %4518 = vmatpush3.bf16.msra.mxu0 %v5404_v48  ;;  %v4541_v3 = vpack.c.bf16 %v319_v62, %v312_v61  ;;  %v217_v6 = vand.u32 4294901760, %v30_v58  ;;  %v8361_v11 = vand.u32 4294901760, %v5389_v40  ;;  %v8359_v12 = vand.u32 4294901760, %v5391_v41  ;;  %v50_v62 = vld [vmem:[%s8351_s2 + $0xd8] sm:$0xff] }
  0x10   :  { %v4539_v9 = vpack.c.bf16 %v431_v63, %v424_v59  ;;  %4520 = vmatprep.subr.bf16.mxu0 %v5432_v1  ;;  %v438_v10 = vand.u32 4294901760, %v437_v2  ;;  %v5453_v16 = vsub.f32 %v45_v39, %v262_v52  ;;  %v5455_v17 = vsub.f32 %v46_v44, %v265_v54 }
  0x11   :  { %v445_v18 = vand.u32 4294901760, %v444_v4  ;;  %v5457_v19 = vpack.c.bf16 %v217_v6, %v214_v5  ;;  %v325_v23 = vsub.f32 %v5389_v40, %v8361_v11  ;;  %v332_v24 = vsub.f32 %v5391_v41, %v8359_v12  ;;  %v33_v4 = vld [vmem:[%s8351_s2 + $0x50] sm:$0xff] }
  0x12   :  { %4540 = vmatprep.subr.bf16.mxu1 %v4539_v9  ;;  %v268_v29 = vand.u32 4294901760, %v47_v7  ;;  %v271_v31 = vand.u32 4294901760, %v48_v8  ;;  %v8358_v36 = vand.u32 4294901760, %v5399_v45  ;;  %v8357_v39 = vand.u32 4294901760, %v5401_v46 }
  0x13   :  { %4542 = vmatpush3.bf16.msra.mxu1 %v4541_v3  ;;  %v4543_v35 = vpack.c.bf16 %v445_v18, %v438_v10  ;;  %4522 = vmatpush3.bf16.msra.mxu0 %v5457_v19  ;;  %v220_v44 = vand.u32 4294901760, %v31_v13  ;;  %v5471_v49 = vsub.f32 %v29_v57, %v214_v5  ;;  %v326_v50 = vand.u32 4294901760, %v325_v23  ;;  %v49_v57 = vld [vmem:[%s8351_s2 + $0xd0] sm:$0xff] }
  0x14   :  { %v333_v51 = vand.u32 4294901760, %v332_v24  ;;  %v5473_v52 = vpack.c.bf16 %v271_v31, %v268_v29  ;;  %v5475_v53 = vsub.f32 %v30_v58, %v217_v6  ;;  %v451_v54 = vsub.f32 %v5399_v45, %v8358_v36 }
  0x15   :  { %4544 = vmatprep.subr.bf16.mxu1 %v4543_v35  ;;  %v458_v59 = vsub.f32 %v5401_v46, %v8357_v39  ;;  %v223_v61 = vand.u32 4294901760, %v32_v32  ;;  %v5490_v58 = vsub.f32 %v47_v7, %v268_v29  ;;  %v8354_v2 = vand.u32 4294901760, %v5428_v60 }
  0x16   :  { %v4545_v63 = vpack.c.bf16 %v333_v51, %v326_v50  ;;  %4524 = vmatprep.subr.bf16.mxu0 %v5473_v52  ;;  %v8353_v3 = vand.u32 4294901760, %v5430_v0  ;;  %v5497_v5 = vsub.f32 %v48_v8, %v271_v31  ;;  %v452_v6 = vand.u32 4294901760, %v451_v54 }
  0x17   :  { %v459_v9 = vand.u32 4294901760, %v458_v59  ;;  %v5499_v10 = vpack.c.bf16 %v223_v61, %v220_v44 }
  0x18   :  { %8 = vsyncpa [#allocation3], 0  ;;  %4546 = vmatpush3.bf16.msra.mxu1 %v4545_v63  ;;  %v339_v7 = vsub.f32 %v5428_v60, %v8354_v2  ;;  %v346_v18 = vsub.f32 %v5430_v0, %v8353_v3  ;;  %v274_v23 = vand.u32 4294901760, %v49_v57  ;;  %v277_v24 = vand.u32 4294901760, %v50_v62  ;;  %v34_v8 = vld [vmem:[%s8351_s2 + $0x58] sm:$0xff] }
  0x19   :  { %v4547_v29 = vpack.c.bf16 %v459_v9, %v452_v6  ;;  %4526 = vmatpush3.bf16.msra.mxu0 %v5499_v10  ;;  %v8356_v31 = vand.u32 4294901760, %v5453_v16  ;;  %v8355_v35 = vand.u32 4294901760, %v5455_v17  ;;  %v226_v50 = vand.u32 4294901760, %v33_v4 }
  0x1a   :  { %v5513_v51 = vsub.f32 %v31_v13, %v220_v44  ;;  %v340_v54 = vand.u32 4294901760, %v339_v7  ;;  %v347_v59 = vand.u32 4294901760, %v346_v18  ;;  %v5515_v63 = vpack.c.bf16 %v277_v24, %v274_v23  ;;  %v51_v13 = vld [vmem:[%s8351_s2 + $0xe0] sm:$0xff]  ;;  %v52_v44 = vld [vmem:[%s8351_s2 + $0xe8] sm:$0xff] }
  0x1b   :  { %4548 = vmatprep.subr.bf16.mxu1 %v4547_v29  ;;  %v5517_v3 = vsub.f32 %v32_v32, %v223_v61  ;;  %v465_v6 = vsub.f32 %v5453_v16, %v8356_v31  ;;  %v472_v9 = vsub.f32 %v5455_v17, %v8355_v35  ;;  %v229_v2 = vand.u32 4294901760, %v34_v8  ;;  %v35_v29 = vld [vmem:[%s8351_s2 + $0x60] sm:$0xff] }
  0x1c   :  { %8589 = vst [vmem:[#allocation5_spill] sm:$0xff] %v5515_v63  ;;  %v4549_v7 = vpack.c.bf16 %v347_v59, %v340_v54  ;;  %4528 = vmatprep.subr.bf16.mxu0 %v5515_v63  ;;  %v5532_v32 = vsub.f32 %v49_v57, %v274_v23  ;;  %v8360_v61 = vand.u32 4294901760, %v5471_v49  ;;  %v8363_v18 = vand.u32 4294901760, %v5475_v53 }
  0x1d   :  { %v5539_v35 = vsub.f32 %v50_v62, %v277_v24  ;;  %v466_v31 = vand.u32 4294901760, %v465_v6  ;;  %v473_v39 = vand.u32 4294901760, %v472_v9  ;;  %v5541_v36 = vpack.c.bf16 %v229_v2, %v226_v50  ;;  %v36_v62 = vld [vmem:[%s8351_s2 + $0x68] sm:$0xff] }
  0x1e   :  { %4550 = vmatpush3.bf16.msra.mxu1 %v4549_v7  ;;  %v353_v57 = vsub.f32 %v5471_v49, %v8360_v61  ;;  %v360_v23 = vsub.f32 %v5475_v53, %v8363_v18  ;;  %v280_v54 = vand.u32 4294901760, %v51_v13  ;;  %v283_v59 = vand.u32 4294901760, %v52_v44 }
  0x1f   :  { %8590 = vst [vmem:[#allocation6_spill] sm:$0xff] %v5541_v36  ;;  %v4551_v24 = vpack.c.bf16 %v473_v39, %v466_v31  ;;  %4530 = vmatpush3.bf16.msra.mxu0 %v5541_v36  ;;  %v8366_v6 = vand.u32 4294901760, %v5490_v58  ;;  %v8365_v9 = vand.u32 4294901760, %v5497_v5  ;;  %v232_v7 = vand.u32 4294901760, %v35_v29 }
  0x20   :  { %v5555_v12 = vsub.f32 %v33_v4, %v226_v50  ;;  %v354_v61 = vand.u32 4294901760, %v353_v57  ;;  %v361_v11 = vand.u32 4294901760, %v360_v23  ;;  %v5557_v56 = vpack.c.bf16 %v283_v59, %v280_v54  ;;  %v53_v4 = vld [vmem:[%s8351_s2 + $0xf0] sm:$0xff]  ;;  %v54_v50 = vld [vmem:[%s8351_s2 + $0xf8] sm:$0xff] }
  0x21   :  { %4552 = vmatprep.subr.bf16.mxu1 %v4551_v24  ;;  %v5559_v18 = vsub.f32 %v34_v8, %v229_v2  ;;  %v479_v39 = vsub.f32 %v5490_v58, %v8366_v6  ;;  %v486_v31 = vsub.f32 %v5497_v5, %v8365_v9  ;;  %v235_v55 = vand.u32 4294901760, %v36_v62  ;;  %v37_v24 = vld [vmem:[%s8351_s2 + $0x70] sm:$0xff] }
  0x22   :  { %8591 = vst [vmem:[#allocation7_spill] sm:$0xff] %v5557_v56  ;;  %v4553_v57 = vpack.c.bf16 %v361_v11, %v354_v61  ;;  %4532 = vmatprep.subr.bf16.mxu0 %v5557_v56  ;;  %v5574_v2 = vsub.f32 %v51_v13, %v280_v54  ;;  %v8370_v8 = vand.u32 4294901760, %v5513_v51  ;;  %v8372_v23 = vand.u32 4294901760, %v5517_v3 }
  0x23   :  { %v5581_v9 = vsub.f32 %v52_v44, %v283_v59  ;;  %v480_v6 = vand.u32 4294901760, %v479_v39  ;;  %v487_v38 = vand.u32 4294901760, %v486_v31  ;;  %v5583_v37 = vpack.c.bf16 %v235_v55, %v232_v7  ;;  %v38_v44 = vld [vmem:[%s8351_s2 + $0x78] sm:$0xff] }
  0x24   :  { %4554 = vmatpush3.bf16.msra.mxu1 %v4553_v57  ;;  %v367_v11 = vsub.f32 %v5513_v51, %v8370_v8  ;;  %v374_v13 = vsub.f32 %v5517_v3, %v8372_v23  ;;  %v286_v61 = vand.u32 4294901760, %v53_v4  ;;  %v289_v54 = vand.u32 4294901760, %v54_v50 }
  0x25   :  { %8592 = vst [vmem:[#allocation8_spill] sm:$0xff] %v5583_v37  ;;  %v4555_v59 = vpack.c.bf16 %v487_v38, %v480_v6  ;;  %4534 = vmatpush3.bf16.msra.mxu0 %v5583_v37  ;;  %v8376_v39 = vand.u32 4294901760, %v5532_v32  ;;  %v8375_v31 = vand.u32 4294901760, %v5539_v35  ;;  %v238_v57 = vand.u32 4294901760, %v37_v24 }
  0x26   :  { %v5597_v47 = vsub.f32 %v35_v29, %v232_v7  ;;  %v368_v8 = vand.u32 4294901760, %v367_v11  ;;  %v375_v43 = vand.u32 4294901760, %v374_v13  ;;  %v5599_v25 = vpack.c.bf16 %v289_v54, %v286_v61  ;;  %v15_v29 = vld [vmem:[%s8349_s0] sm:$0xff] }
  0x27   :  { %4556 = vmatprep.subr.bf16.mxu1 %v4555_v59  ;;  %v5601_v23 = vsub.f32 %v36_v62, %v235_v55  ;;  %v493_v38 = vsub.f32 %v5532_v32, %v8376_v39  ;;  %v500_v6 = vsub.f32 %v5539_v35, %v8375_v31  ;;  %v241_v37 = vand.u32 4294901760, %v38_v44  ;;  %v17_v7 = vld [vmem:[%s8350_s1] sm:$0xff] }
  0x28   :  { %8593 = vst [vmem:[#allocation9_spill] sm:$0xff] %v5599_v25  ;;  %v4557_v11 = vpack.c.bf16 %v375_v43, %v368_v8  ;;  %4536 = vmatprep.subr.bf16.mxu0 %v5599_v25  ;;  %v5616_v55 = vsub.f32 %v53_v4, %v286_v61  ;;  %v8385_v62 = vand.u32 4294901760, %v5555_v12  ;;  %v8389_v13 = vand.u32 4294901760, %v5559_v18 }
  0x29   :  { %v5620_v59 = vsub.f32 %v54_v50, %v289_v54  ;;  %v494_v31 = vand.u32 4294901760, %v493_v38  ;;  %v501_v39 = vand.u32 4294901760, %v500_v6  ;;  %v5622_v56 = vpack.c.bf16 %v241_v37, %v238_v57 }
  0x2a   :  { %4558 = vmatpush3.bf16.msra.mxu1 %v4557_v11  ;;  %v381_v36 = vsub.f32 %v5555_v12, %v8385_v62  ;;  %v388_v43 = vsub.f32 %v5559_v18, %v8389_v13  ;;  %v19_v4 = vsub.f32 %v15_v29, %v17_v7  ;;  %v156_v8 = vunpack.c.0.s8 %v5376_v30 }
  0x2b   :  { %8594 = vst [vmem:[#allocation10_spill] sm:$0xff] %v5620_v59  ;;  %8595 = vst [vmem:[#allocation11_spill] sm:$0xff] %v5622_v56  ;;  %v4559_v61 = vpack.c.bf16 %v501_v39, %v494_v31  ;;  %4538 = vmatpush3.bf16.msra.mxu0 %v5622_v56  ;;  %v8596_v50 = vlaneseq  ;;  %v8387_v38 = vand.u32 4294901760, %v5574_v2  ;;  %v8386_v6 = vand.u32 4294901760, %v5581_v9 }
  0x2c   :  { %v382_v11 = vand.u32 4294901760, %v381_v36  ;;  %v389_v25 = vand.u32 4294901760, %v388_v43  ;;  %v5635_v63 = vand.u32 2147483647, %v19_v4  ;;  %v4571_v62 = vpack.c.bf16 %v5381_v34, %v5379_v33 }
  0x2d   :  { %v158_v54 = vshrl.u32 %v8596_v50, 7  ;;  %4560 = vmatprep.subr.bf16.mxu1 %v4559_v61  ;;  %v507_v30 = vsub.f32 %v5574_v2, %v8387_v38  ;;  %v514_v39 = vsub.f32 %v5581_v9, %v8386_v6  ;;  %v8388_v31 = vand.u32 4294901760, %v5597_v47 }
  0x2e   :  { %8597 = vst [vmem:[#allocation12_spill] sm:$0xff] %v5635_v63  ;;  %v5648_v36 = vsub.f32 %v37_v24, %v238_v57  ;;  %v5650_v7 = vsub.f32 %v38_v44, %v241_v37  ;;  %v4561_v43 = vpack.c.bf16 %v389_v25, %v382_v11  ;;  %4572 = vmatprep.subr.bf16.mxu0 %v4571_v62  ;;  %v401_v4 = vand.u32 4294901760, %v5601_v23 }
  0x2f   :  { %v5639_v29 = vsub.s32 %v156_v8, %v158_v54  ;;  %v508_v61 = vand.u32 4294901760, %v507_v30  ;;  %v515_v50 = vand.u32 4294901760, %v514_v39  ;;  %v395_v54 = vsub.f32 %v5597_v47, %v8388_v31 }
  0x30   :  { %8599 = vst [vmem:[#allocation14_spill] sm:$0xff] %v5648_v36  ;;  %8600 = vst [vmem:[#allocation15_spill] sm:$0xff] %v5650_v7  ;;  %4562 = vmatpush3.bf16.msra.mxu1 %v4561_v43  ;;  %v402_v6 = vsub.f32 %v5601_v23, %v401_v4  ;;  %v520_v24 = vand.u32 4294901760, %v5616_v55  ;;  %v527_v37 = vand.u32 4294901760, %v5620_v59  ;;  %v408_v38 = vand.u32 4294901760, %v5648_v36 }
  0x31   :  { %8598 = vst [vmem:[#allocation13_spill] sm:$0xff] %v5639_v29  ;;  %v160_v8 = vrot.slane %v5635_v63, %v5639_v29  ;;  %v4563_v57 = vpack.c.bf16 %v515_v50, %v508_v61  ;;  %v396_v62 = vand.u32 4294901760, %v395_v54  ;;  %v415_v13 = vand.u32 4294901760, %v5650_v7 }
  0x32   :  { %v403_v11 = vand.u32 4294901760, %v402_v6  ;;  %v521_v30 = vsub.f32 %v5616_v55, %v520_v24  ;;  %v528_v39 = vsub.f32 %v5620_v59, %v527_v37  ;;  %v409_v61 = vsub.f32 %v5648_v36, %v408_v38 }
  0x33   :  { %v168_v25 = vcombine.high %v160_v8, %v160_v8  ;;  %v5661_v44 = vand.u32 4294901760, %v160_v8  ;;  %4564 = vmatprep.subr.bf16.mxu1 %v4563_v57  ;;  %v416_v54 = vsub.f32 %v5650_v7, %v415_v13  ;;  %v4575_v7 = vpack.c.bf16 %v5372_v27, %v5370_v26 }
  0x34   :  { %v4565_v29 = vpack.c.bf16 %v403_v11, %v396_v62  ;;  %v522_v63 = vand.u32 4294901760, %v521_v30  ;;  %v529_v56 = vand.u32 4294901760, %v528_v39  ;;  %v410_v59 = vand.u32 4294901760, %v409_v61 }
  0x35   :  { %8601 = vst [vmem:[#allocation16_spill] sm:$0xff] %v5661_v44  ;;  %v5666_v31 = vand.u32 4294901760, %v168_v25  ;;  %v5669_v43 = vsub.f32 %v160_v8, %v5661_v44  ;;  %v417_v11 = vand.u32 4294901760, %v416_v54  ;;  %v8604_v54 = vand.u32 4294901760, %v5349_v15 }
  0x36   :  { %4566 = vmatpush3.bf16.msra.mxu1 %v4565_v29  ;;  %v4567_v57 = vpack.c.bf16 %v529_v56, %v522_v63  ;;  %v8602_v29 = vand.u32 4294901760, %v5379_v33  ;;  %v8603_v56 = vand.u32 4294901760, %v5381_v34  ;;  %v8608_v33 = vand.u32 4294901760, %v5389_v40 }
  0x37   :  { %v292_v6 = vsub.f32 %v168_v25, %v5666_v31  ;;  %v8398_v50 = vand.u32 4294901760, %v5669_v43  ;;  %532 = vmatprep.mubr.f32.mxu1 %v5666_v31  ;;  %v4569_v39 = vpack.c.bf16 %v417_v11, %v410_v59  ;;  %v4573_v25 = vpack.c.bf16 %v5359_v21, %v5349_v15 }
  0x38   :  { %4568 = vmatprep.subr.bf16.mxu1 %v4567_v57  ;;  %v5688_v63 = vpack.c.bf16 %v8603_v56, %v8602_v29  ;;  %v8605_v57 = vand.u32 4294901760, %v5359_v21  ;;  %v8607_v11 = vand.u32 4294901760, %v5372_v27  ;;  %v8609_v34 = vand.u32 4294901760, %v5391_v41 }
  0x39   :  { %v293_v8 = vand.u32 4294901760, %v292_v6  ;;  %v300_v62 = vsub.f32 %v5669_v43, %v8398_v50  ;;  %v8610_v15 = vand.u32 4294901760, %v5399_v45  ;;  %v8611_v21 = vand.u32 4294901760, %v5401_v46 }
  0x3a   :  { %4570 = vmatpush3.bf16.msra.mxu1 %v4569_v39  ;;  %v5694_v59 = vpack.c.bf16 %v8605_v57, %v8604_v54  ;;  %v5706_v29 = vpack.c.bf16 %v8609_v34, %v8608_v33  ;;  %v8613_v27 = vand.u32 4294901760, %v5430_v0  ;;  %v8615_v56 = vand.u32 4294901760, %v5453_v16 }
  0x3b   :  { %v294_v30 = vsub.f32 %v292_v6, %v293_v8  ;;  %v301_v36 = vand.u32 4294901760, %v300_v62  ;;  %v8606_v62 = vand.u32 4294901760, %v5370_v26  ;;  %4604 = vmatprep.subr.bf16.mxu1 %v5347_v14  ;;  %v8612_v26 = vand.u32 4294901760, %v5428_v60 }
  0x3c   :  { %v8616_v54 = vand.u32 4294901760, %v5455_v17  ;;  %v8620_v34 = vand.u32 4294901760, %v5490_v58  ;;  %vm3643_vm0 = vcmask 58368   ;;  %vm3651_vm1 = vcmask 57344  }
  0x3d   :  { %v295_v61 = vand.u32 4294901760, %v294_v30  ;;  %v5700_v50 = vpack.c.bf16 %v8607_v11, %v8606_v62  ;;  %v5713_v30 = vpack.c.bf16 %v8611_v21, %v8610_v15  ;;  %v5719_v39 = vpack.c.bf16 %v8613_v27, %v8612_v26  ;;  %534 = vmatmul.mubr.f32.vlgmr.msra.gmra.mrb[0].mxu1 %v5661_v44 }
  0x3e   :  { %v5725_v57 = vpack.c.bf16 %v8616_v54, %v8615_v56  ;;  %v8618_v62 = vand.u32 4294901760, %v5471_v49  ;;  %v8619_v11 = vand.u32 4294901760, %v5475_v53  ;;  %v8621_v15 = vand.u32 4294901760, %v5497_v5  ;;  %4606 = vmatpush3.bf16.msra.mxu1 %v5357_v20  ;;  %776 = vmatprep.mubr.f32.mxu1 %v293_v8 }
  0x3f   :  { %8614 = vst [vmem:[#allocation17_spill] sm:$0xff] %v5719_v39  ;;  %296 = vmatprep.mubr.f32.mxu0 %v295_v61  ;;  %v8622_v26 = vand.u32 4294901760, %v5513_v51  ;;  %v8623_v27 = vand.u32 4294901760, %v5517_v3  ;;  %v8625_v56 = vand.u32 4294901760, %v5532_v32  ;;  %v8626_v54 = vand.u32 4294901760, %v5539_v35  ;;  %4608 = vmatprep.subr.bf16.mxu1 %v5361_v22 }
  0x40   :  { %8617 = vst [vmem:[#allocation18_spill] sm:$0xff] %v5725_v57  ;;  %v5731_v33 = vpack.c.bf16 %v8619_v11, %v8618_v62  ;;  %v5737_v21 = vpack.c.bf16 %v8621_v15, %v8620_v34  ;;  %v8627_v61 = vand.u32 4294901760, %v5555_v12  ;;  %v8628_v62 = vand.u32 4294901760, %v5559_v18  ;;  %302 = vmatmul.mubr.f32.vlgmr.msra.gmra.mrb[0].mxu0 %v301_v36 }
  0x41   :  { %v5743_v39 = vpack.c.bf16 %v8623_v27, %v8622_v26  ;;  %v5749_v57 = vpack.c.bf16 %v8626_v54, %v8625_v56  ;;  %v8629_v34 = vand.u32 4294901760, %v5574_v2  ;;  %v8630_v15 = vand.u32 4294901760, %v5581_v9  ;;  %4574 = vmatpush3.bf16.msra.mxu0 %v4573_v25  ;;  %669 = vmatprep.mubr.f32.mxu0 %v292_v6  ;;  %v8639_v25 = vld [vmem:[#allocation14_spill] sm:$0xff] }
  0x42   :  { %v5755_v11 = vpack.c.bf16 %v8628_v62, %v8627_v61  ;;  %v8631_v27 = vand.u32 4294901760, %v5597_v47  ;;  %v5768_v56 = vpack.c.bf16 %v527_v37, %v520_v24  ;;  %v4577_v54 = vpack.c.bf16 %v5391_v41, %v5389_v40  ;;  %4576 = vmatprep.subr.bf16.mxu0 %v4575_v7  ;;  %4610 = vmatpush3.bf16.msra.mxu1 %v5374_v28  ;;  %v8636_v7 = vld [vmem:[#allocation7_spill] sm:$0xff] }
  0x43   :  { %8624 = vst [vmem:[#allocation19_spill] sm:$0xff] %v5743_v39  ;;  %v5762_v26 = vpack.c.bf16 %v8630_v15, %v8629_v34  ;;  %v5773_v36 = vpack.c.bf16 %v415_v13, %v408_v38  ;;  %v4579_v61 = vpack.c.bf16 %v5401_v46, %v5399_v45  ;;  %v4583_v40 = vpack.c.bf16 %v5455_v17, %v5453_v16  ;;  %v8635_v13 = vld [vmem:[#allocation10_spill] sm:$0xff]  ;;  %v5840_v24 = vld [vmem:[%s8351_s2 + $0x198] sm:$0xff] }
  0x44   :  { %v5766_v39 = vpack.c.bf16 %v401_v4, %v8631_v27  ;;  %v4581_v4 = vpack.c.bf16 %v5430_v0, %v5428_v60  ;;  %4612 = vmatprep.subr.bf16.mxu1 %v5393_v42  ;;  %v4585_v41 = vpack.c.bf16 %v5475_v53, %v5471_v49  ;;  %v4587_v45 = vpack.c.bf16 %v5497_v5, %v5490_v58  ;;  %v5796_v60 = vld [vmem:[%s8351_s2 + $0x180] sm:$0xff]  ;;  %v5801_v0 = vld [vmem:[%s8351_s2 + $0x188] sm:$0xff]  ;;  %v5850_v37 = vld [vmem:[%s8351_s2 + $0x118] sm:$0xff] }
  0x45   :  { %4578 = vmatpush3.bf16.msra.mxu0 %v4577_v54  ;;  %v4589_v46 = vpack.c.bf16 %v5517_v3, %v5513_v51  ;;  %v4591_v16 = vpack.c.bf16 %v5539_v35, %v5532_v32  ;;  %v1106_v17 = vand.u32 4294901760, %v5796_v60  ;;  %v1109_v49 = vand.u32 4294901760, %v5801_v0  ;;  %v8632_v3 = vld [vmem:[#allocation5_spill] sm:$0xff]  ;;  %8638 = vst [vmem:[#allocation10_spill] sm:$0xff] %v5850_v37  ;;  %v8640_v62 = vld [vmem:[#allocation15_spill] sm:$0xff]  ;;  %v8641_v15 = vld [vmem:[#allocation8_spill] sm:$0xff] }
  0x46   :  { %4580 = vmatprep.subr.bf16.mxu0 %v4579_v61  ;;  %4614 = vmatpush3.bf16.msra.mxu1 %v5404_v48  ;;  %v4593_v53 = vpack.c.bf16 %v5559_v18, %v5555_v12  ;;  %v4595_v58 = vpack.c.bf16 %v5581_v9, %v5574_v2  ;;  %v55_v5 = vld [vmem:[%s8351_s2 + $0x100] sm:$0xff]  ;;  %v56_v12 = vld [vmem:[%s8351_s2 + $0x108] sm:$0xff]  ;;  %v4597_v32 = vpack.c.bf16 %v5601_v23, %v5597_v47  ;;  %v5832_v2 = vld [vmem:[%s8351_s2 + $0x190] sm:$0xff]  ;;  %v8400_v54 = vand.u32 4294901760, %v5840_v24 }
  0x47   :  { %4616 = vmatprep.subr.bf16.mxu1 %v5432_v1  ;;  %v5818_v35 = vsub.f32 %v5796_v60, %v1106_v17  ;;  %v5821_v51 = vsub.f32 %v5801_v0, %v1109_v49  ;;  %v8634_v18 = vld [vmem:[#allocation6_spill] sm:$0xff]  ;;  %v1058_v9 = vand.u32 4294901760, %v55_v5  ;;  %v4599_v38 = vpack.c.bf16 %v8635_v13, %v5616_v55  ;;  %v8642_v61 = vld [vmem:[#allocation9_spill] sm:$0xff] }
  0x48   :  { %v1061_v47 = vand.u32 4294901760, %v56_v12  ;;  %v5845_v23 = vld [vmem:[%s8351_s2 + $0x110] sm:$0xff]  ;;  %v8401_v55 = vand.u32 4294901760, %v5832_v2  ;;  %v4601_v34 = vpack.c.bf16 %v8640_v62, %v8639_v25 }
  0x49   :  { %4582 = vmatpush3.bf16.msra.mxu0 %v4581_v4  ;;  %8633 = vst [vmem:[#allocation5_spill] sm:$0xff] %v5821_v51  ;;  %8637 = vst [vmem:[#allocation6_spill] sm:$0xff] %v5845_v23  ;;  %v8404_v6 = vand.u32 4294901760, %v5818_v35  ;;  %v8403_v8 = vand.u32 4294901760, %v5821_v51  ;;  %v5858_v27 = vsub.f32 %v55_v5, %v1058_v9  ;;  %v8399_v4 = vand.u32 4294901760, %v5845_v23  ;;  %v8647_v5 = vld [vmem:[#allocation11_spill] sm:$0xff] }
  0x4a   :  { %4584 = vmatprep.subr.bf16.mxu0 %v4583_v40  ;;  %4618 = vmatpush3.bf16.msra.mxu1 %v5457_v19  ;;  %v8402_v40 = vand.u32 4294901760, %v5850_v37  ;;  %v5879_v60 = vsub.f32 %v5832_v2, %v8401_v55 }
  0x4b   :  { %4620 = vmatprep.subr.bf16.mxu1 %v5473_v52  ;;  %v1285_v0 = vsub.f32 %v5818_v35, %v8404_v6  ;;  %v5909_v13 = vsub.f32 %v5845_v23, %v8399_v4 }
  0x4c   :  { %v8408_v25 = vand.u32 4294901760, %v5879_v60 }
  0x4d   :  { %4586 = vmatpush3.bf16.msra.mxu0 %v4585_v41  ;;  %v5864_v41 = vsub.f32 %v56_v12, %v1061_v47  ;;  %v5901_v12 = vsub.f32 %v5840_v24, %v8400_v54  ;;  %v1286_v6 = vand.u32 4294901760, %v1285_v0  ;;  %v5970_v0 = vld [vmem:[%s8351_s2 + $0x138] sm:$0xff] }
  0x4e   :  { %4588 = vmatprep.subr.bf16.mxu0 %v4587_v45  ;;  %4622 = vmatpush3.bf16.msra.mxu1 %v5499_v10  ;;  %v5869_v45 = vld [vmem:[%s8351_s2 + $0x1a0] sm:$0xff]  ;;  %8657 = vst [vmem:[#allocation22_spill] sm:$0xff] %v5970_v0 }
  0x4f   :  { %4624 = vmatprep.subr.bf16.mxu1 %v8632_v3  ;;  %8643 = vst [vmem:[#allocation7_spill] sm:$0xff] %v5869_v45 }
  0x51   :  { %4590 = vmatpush3.bf16.msra.mxu0 %v4589_v46  ;;  %v5874_v46 = vld [vmem:[%s8351_s2 + $0x1a8] sm:$0xff] }
  0x52   :  { %4592 = vmatprep.subr.bf16.mxu0 %v4591_v16  ;;  %4626 = vmatpush3.bf16.msra.mxu1 %v8634_v18  ;;  %8644 = vst [vmem:[#allocation14_spill] sm:$0xff] %v5874_v46  ;;  %v1292_v16 = vsub.f32 %v5821_v51, %v8403_v8  ;;  %v5931_v8 = vpack.c.bf16 %v1109_v49, %v1106_v17  ;;  %v6013_v49 = vld [vmem:[%s8351_s2 + $0x140] sm:$0xff] }
  0x53   :  { %4628 = vmatprep.subr.bf16.mxu1 %v8636_v7  ;;  %8662 = vst [vmem:[#allocation26_spill] sm:$0xff] %v6013_v49 }
  0x54   :  { %8651 = vst [vmem:[#allocation11_spill] sm:$0xff] %v5931_v8  ;;  %v1293_v62 = vand.u32 4294901760, %v1292_v16  ;;  %v6007_v16 = vsub.f32 %v5879_v60, %v8408_v25  ;;  %v8663_v25 = vand.u32 4294901760, %v5901_v12 }
  0x55   :  { %4594 = vmatpush3.bf16.msra.mxu0 %v4593_v53  ;;  %v5890_v53 = vld [vmem:[%s8351_s2 + $0x120] sm:$0xff] }
  0x56   :  { %4596 = vmatprep.subr.bf16.mxu0 %v4595_v58  ;;  %4630 = vmatpush3.bf16.msra.mxu1 %v8641_v15  ;;  %8645 = vst [vmem:[#allocation15_spill] sm:$0xff] %v5890_v53  ;;  %v5895_v58 = vld [vmem:[%s8351_s2 + $0x128] sm:$0xff]  ;;  %v8406_v4 = vand.u32 4294901760, %v5890_v53  ;;  %8661 = vst [vmem:[#allocation25_spill] sm:$0xff] %v6007_v16 }
  0x57   :  { %4632 = vmatprep.subr.bf16.mxu1 %v8642_v61  ;;  %8646 = vst [vmem:[#allocation8_spill] sm:$0xff] %v5895_v58  ;;  %v8407_v54 = vand.u32 4294901760, %v5895_v58 }
  0x59   :  { %4598 = vmatpush3.bf16.msra.mxu0 %v4597_v32  ;;  %v8405_v32 = vand.u32 4294901760, %v5858_v27 }
  0x5a   :  { %4600 = vmatprep.subr.bf16.mxu0 %v4599_v38  ;;  %4634 = vmatpush3.bf16.msra.mxu1 %v8647_v5  ;;  %v5914_v38 = vsub.f32 %v5850_v37, %v8402_v40  ;;  %v8650_v40 = vand.u32 4294901760, %v5669_v43 }
  0x5b   :  { %4668 = vmatprep.subr.bf16.mxu1 %v5347_v14  ;;  %v8649_v14 = vld [vmem:[#allocation12_spill] sm:$0xff]  ;;  %v5941_v55 = vsub.f32 %v5858_v27, %v8405_v32 }
  0x5d   :  { %4602 = vmatpush3.bf16.msra.mxu0 %v4601_v34  ;;  %v153_v34 = vcombine.high %v8649_v14, %v8649_v14  ;;  %780 = vmatmul.mubr.f32.vlgmr.msra.gmra.mrb[2].mxu1 %v8650_v40  ;;  %v5936_v14 = vpack.c.bf16 %v1061_v47, %v1058_v9  ;;  %v8656_v47 = vand.u32 4294901760, %v5874_v46 }
  0x5e   :  { %4636 = vmatprep.subr.bf16.mxu0 %v5688_v63  ;;  %v5921_v63 = vld [vmem:[%s8351_s2 + $0x1b0] sm:$0xff]  ;;  %4670 = vmatpush3.bf16.msra.mxu1 %v5357_v20 }
  0x5f   :  { %8648 = vst [vmem:[#allocation9_spill] sm:$0xff] %v5921_v63  ;;  %8652 = vst [vmem:[#allocation12_spill] sm:$0xff] %v5936_v14  ;;  %v8409_v17 = vand.u32 4294901760, %v5921_v63  ;;  %v5953_v20 = vld [vmem:[%s8351_s2 + $0x130] sm:$0xff]  ;;  %4672 = vmatprep.subr.bf16.mxu1 %v5361_v22  ;;  %v5965_v40 = vsub.f32 %v5874_v46, %v8656_v47  ;;  %1050 = vmatprep.mubr.f32.mxu1 %v5666_v31  ;;  %v5979_v22 = vsub.f32 %v5890_v53, %v8406_v4  ;;  %v8675_v46 = vld [vmem:[#allocation17_spill] sm:$0xff] }
  0x60   :  { %672 = vmatmul.mubr.f32.vlgmr.msra.gmra.mrb[2].mxu0 %v5669_v43  ;;  %v5946_v43 = vld [vmem:[%s8351_s2 + $0x1b8] sm:$0xff]  ;;  %8654 = vst [vmem:[#allocation21_spill] sm:$0xff] %v5953_v20  ;;  %v8658_v47 = vand.u32 4294901760, %v5864_v41  ;;  %v6001_v4 = vpack.c.bf16 %v1293_v62, %v1286_v6  ;;  %v8667_v6 = vand.u32 4294901760, %v5914_v38 }
  0x61   :  { %4638 = vmatpush3.bf16.msra.mxu0 %v5694_v59  ;;  %8653 = vst [vmem:[#allocation20_spill] sm:$0xff] %v5946_v43  ;;  %v8655_v59 = vand.u32 4294901760, %v5869_v45  ;;  %946 = vmatprep.mubr.f32.mxu0 %v5666_v31  ;;  %v5999_v31 = vld [vmem:[%s8351_s2 + $0x1c8] sm:$0xff]  ;;  %v6021_v62 = vsub.f32 %v5921_v63, %v8409_v17  ;;  %v8673_v53 = vand.u32 4294901760, %v5946_v43 }
  0x62   :  { %4640 = vmatprep.subr.bf16.mxu0 %v5700_v50  ;;  %v5989_v32 = vsub.f32 %v5864_v41, %v8658_v47  ;;  %v5994_v50 = vld [vmem:[%s8351_s2 + $0x1c0] sm:$0xff]  ;;  %8660 = vst [vmem:[#allocation24_spill] sm:$0xff] %v5999_v31  ;;  %4674 = vmatpush3.bf16.msra.mxu1 %v5374_v28  ;;  %v6026_v47 = vsub.f32 %v5901_v12, %v8663_v25  ;;  %v8665_v28 = vand.u32 4294901760, %v5909_v13  ;;  %v8676_v25 = vand.u32 4294901760, %v5970_v0 }
  0x63   :  { %v5960_v9 = vsub.f32 %v5869_v45, %v8655_v59  ;;  %v5984_v59 = vsub.f32 %v5895_v58, %v8407_v54  ;;  %8659 = vst [vmem:[#allocation23_spill] sm:$0xff] %v5994_v50  ;;  %4676 = vmatprep.subr.bf16.mxu1 %v5393_v42  ;;  %v6039_v17 = vsub.f32 %v5914_v38, %v8667_v6  ;;  %v6054_v6 = vld [vmem:[%s8351_s2 + $0x1d0] sm:$0xff]  ;;  %v8671_v58 = vld [vmem:[#allocation13_spill] sm:$0xff]  ;;  %v8674_v54 = vand.u32 4294901760, %v5953_v20  ;;  %v6083_v42 = vld [vmem:[%s8351_s2 + $0x1d8] sm:$0xff] }
  0x64   :  { %8664 = vst [vmem:[#allocation27_spill] sm:$0xff] %v6026_v47  ;;  %8670 = vst [vmem:[#allocation31_spill] sm:$0xff] %v6054_v6  ;;  %v6057_v63 = vrot.slane %v153_v34, %v8671_v58  ;;  %v6063_v14 = vsub.f32 %v5946_v43, %v8673_v53  ;;  %v6077_v58 = vsub.f32 %v5970_v0, %v8676_v25  ;;  %v8679_v53 = vand.u32 4294901760, %v5994_v50  ;;  %v6105_v43 = vld [vmem:[%s8351_s2 + $0x158] sm:$0xff] }
  0x65   :  { %4642 = vmatpush3.bf16.msra.mxu0 %v5706_v29  ;;  %v6034_v29 = vsub.f32 %v5909_v13, %v8665_v28  ;;  %8668 = vst [vmem:[#allocation29_spill] sm:$0xff] %v6039_v17  ;;  %v6069_v28 = vsub.f32 %v5953_v20, %v8674_v54  ;;  %8677 = vst [vmem:[#allocation17_spill] sm:$0xff] %v6083_v42  ;;  %v6088_v54 = vld [vmem:[%s8351_s2 + $0x150] sm:$0xff]  ;;  %v8683_v20 = vand.u32 4294901760, %v5965_v40  ;;  %v6158_v45 = vld [vmem:[%s8351_s2 + $0x1f8] sm:$0xff]  ;;  %v8690_v47 = vand.u32 4294901760, %v6054_v6 }
  0x66   :  { %4644 = vmatprep.subr.bf16.mxu0 %v5713_v30  ;;  %v6046_v30 = vld [vmem:[%s8351_s2 + $0x148] sm:$0xff]  ;;  %8672 = vst [vmem:[#allocation32_spill] sm:$0xff] %v6057_v63  ;;  %4678 = vmatpush3.bf16.msra.mxu1 %v5404_v48  ;;  %v169_v48 = vcombine.high %v6057_v63, %v6057_v63  ;;  %v6099_v0 = vsub.f32 %v5994_v50, %v8679_v53  ;;  %v8682_v53 = vand.u32 4294901760, %v5960_v9  ;;  %v8684_v63 = vand.u32 4294901760, %v6013_v49 }
  0x67   :  { %8666 = vst [vmem:[#allocation28_spill] sm:$0xff] %v6034_v29  ;;  %8669 = vst [vmem:[#allocation30_spill] sm:$0xff] %v6046_v30  ;;  %4680 = vmatprep.subr.bf16.mxu1 %v5432_v1  ;;  %v6110_v1 = vld [vmem:[%s8351_s2 + $0x1e0] sm:$0xff]  ;;  %v6125_v50 = vsub.f32 %v5965_v40, %v8683_v20  ;;  %v6145_v20 = vld [vmem:[%s8351_s2 + $0x168] sm:$0xff]  ;;  %v8694_v37 = vand.u32 4294901760, %v6088_v54 }
  0x68   :  { %v6120_v25 = vsub.f32 %v5960_v9, %v8682_v53  ;;  %v6130_v17 = vsub.f32 %v6013_v49, %v8684_v63  ;;  %v6140_v53 = vld [vmem:[%s8351_s2 + $0x160] sm:$0xff]  ;;  %v6153_v29 = vld [vmem:[%s8351_s2 + $0x1f0] sm:$0xff]  ;;  %v6160_v44 = vand.u32 4294901760, %v169_v48 }
  0x69   :  { %4646 = vmatpush3.bf16.msra.mxu0 %v8675_v46  ;;  %v8678_v46 = vld [vmem:[#allocation18_spill] sm:$0xff]  ;;  %8686 = vst [vmem:[#allocation34_spill] sm:$0xff] %v6140_v53  ;;  %8687 = vst [vmem:[#allocation35_spill] sm:$0xff] %v6153_v29 }
  0x6a   :  { %4648 = vmatprep.subr.bf16.mxu0 %v8678_v46  ;;  %8680 = vst [vmem:[#allocation18_spill] sm:$0xff] %v6110_v1  ;;  %v8681_v46 = vand.u32 4294901760, %v5999_v31  ;;  %8688 = vst [vmem:[#allocation36_spill] sm:$0xff] %v6160_v44  ;;  %4682 = vmatpush3.bf16.msra.mxu1 %v5457_v19  ;;  %v6185_v63 = vld [vmem:[%s8351_s2 + $0x170] sm:$0xff]  ;;  %v6194_v19 = vld [vmem:[%s8351_s2 + $0x178] sm:$0xff]  ;;  %v6208_v23 = vsub.f32 %v169_v48, %v6160_v44 }
  0x6b   :  { %4684 = vmatprep.subr.bf16.mxu1 %v5473_v52  ;;  %8692 = vst [vmem:[#allocation38_spill] sm:$0xff] %v6194_v19  ;;  %v8706_v52 = vand.u32 4294901760, %v6194_v19 }
  0x6c   :  { %v6115_v34 = vsub.f32 %v5999_v31, %v8681_v46  ;;  %v6135_v46 = vld [vmem:[%s8351_s2 + $0x1e8] sm:$0xff]  ;;  %v8689_v31 = vand.u32 4294901760, %v6046_v30  ;;  %8695 = vst [vmem:[#allocation39_spill] sm:$0xff] %v6208_v23 }
  0x6d   :  { %8685 = vst [vmem:[#allocation33_spill] sm:$0xff] %v6135_v46  ;;  %4650 = vmatpush3.bf16.msra.mxu0 %v5731_v33  ;;  %v6177_v33 = vsub.f32 %v6054_v6, %v8690_v47  ;;  %v8696_v47 = vld [vmem:[#allocation19_spill] sm:$0xff]  ;;  %v8697_v6 = vand.u32 4294901760, %v6105_v43 }
  0x6e   :  { %v6167_v49 = vsub.f32 %v6046_v30, %v8689_v31  ;;  %4652 = vmatprep.subr.bf16.mxu0 %v5737_v21  ;;  %v8693_v30 = vand.u32 4294901760, %v6083_v42  ;;  %v6204_v21 = vsub.f32 %v6088_v54, %v8694_v37  ;;  %4686 = vmatpush3.bf16.msra.mxu1 %v5499_v10  ;;  %v8699_v10 = vand.u32 4294901760, %v6135_v46 }
  0x6f   :  { %8691 = vst [vmem:[#allocation37_spill] sm:$0xff] %v6177_v33  ;;  %v6215_v16 = vsub.f32 %v6105_v43, %v8697_v6  ;;  %4688 = vmatprep.subr.bf16.mxu1 %v8632_v3  ;;  %v8704_v6 = vand.u32 4294901760, %v6158_v45 }
  0x70   :  { %v6199_v31 = vsub.f32 %v6083_v42, %v8693_v30  ;;  %v8698_v42 = vand.u32 4294901760, %v6110_v1  ;;  %v6229_v48 = vsub.f32 %v6135_v46, %v8699_v10 }
  0x71   :  { %4654 = vmatpush3.bf16.msra.mxu0 %v8696_v47  ;;  %v8700_v47 = vand.u32 4294901760, %v6140_v53  ;;  %v6252_v46 = vsub.f32 %v6158_v45, %v8704_v6  ;;  %v8714_v6 = vand.u32 4294901760, %v5879_v60 }
  0x72   :  { %v6221_v37 = vsub.f32 %v6110_v1, %v8698_v42  ;;  %4656 = vmatprep.subr.bf16.mxu0 %v5749_v57  ;;  %v8701_v57 = vand.u32 4294901760, %v6145_v20  ;;  %v8702_v1 = vand.u32 4294901760, %v6153_v29  ;;  %4690 = vmatpush3.bf16.msra.mxu1 %v8634_v18 }
  0x73   :  { %v6235_v30 = vsub.f32 %v6140_v53, %v8700_v47  ;;  %4692 = vmatprep.subr.bf16.mxu1 %v8636_v7  ;;  %v8708_v7 = vand.u32 4294901760, %v5821_v51  ;;  %v8715_v47 = vand.u32 4294901760, %v5901_v12  ;;  %v8717_v51 = vand.u32 4294901760, %v5909_v13 }
  0x74   :  { %v6242_v3 = vsub.f32 %v6145_v20, %v8701_v57  ;;  %v6247_v10 = vsub.f32 %v6153_v29, %v8702_v1  ;;  %v8705_v57 = vand.u32 4294901760, %v6185_v63  ;;  %v8711_v1 = vand.u32 4294901760, %v5858_v27 }
  0x75   :  { %4658 = vmatpush3.bf16.msra.mxu0 %v5755_v11  ;;  %v6273_v11 = vsub.f32 %v6194_v19, %v8706_v52  ;;  %v8710_v52 = vand.u32 4294901760, %v6208_v23  ;;  %v6300_v42 = vpack.c.bf16 %v8715_v47, %v8714_v6  ;;  %v8723_v47 = vand.u32 4294901760, %v5979_v22 }
  0x76   :  { %8703 = vst [vmem:[#allocation19_spill] sm:$0xff] %v6247_v10  ;;  %v6264_v29 = vsub.f32 %v6185_v63, %v8705_v57  ;;  %4660 = vmatprep.subr.bf16.mxu0 %v5762_v26  ;;  %v8707_v26 = vand.u32 4294901760, %v5818_v35  ;;  %v8712_v57 = vand.u32 4294901760, %v5864_v41  ;;  %4694 = vmatpush3.bf16.msra.mxu1 %v8641_v15  ;;  %v8724_v6 = vand.u32 4294901760, %v5984_v59 }
  0x77   :  { %v1156_v18 = vsub.f32 %v6208_v23, %v8710_v52  ;;  %8716 = vst [vmem:[#allocation42_spill] sm:$0xff] %v6300_v42  ;;  %4696 = vmatprep.subr.bf16.mxu1 %v8642_v61  ;;  %v8738_v61 = vand.u32 4294901760, %v6177_v33  ;;  %v8739_v15 = vand.u32 4294901760, %v6199_v31 }
  0x78   :  { %v6285_v53 = vpack.c.bf16 %v8708_v7, %v8707_v26  ;;  %v6294_v19 = vpack.c.bf16 %v8712_v57, %v8711_v1  ;;  %v8718_v26 = vand.u32 4294901760, %v5914_v38  ;;  %v8720_v1 = vand.u32 4294901760, %v5960_v9 }
  0x79   :  { %4662 = vmatpush3.bf16.msra.mxu0 %v5766_v39  ;;  %v8721_v57 = vand.u32 4294901760, %v5965_v40  ;;  %v6321_v42 = vpack.c.bf16 %v8724_v6, %v8723_v47  ;;  %v8727_v39 = vand.u32 4294901760, %v6063_v14  ;;  %v8732_v47 = vand.u32 4294901760, %v6099_v0 }
  0x7a   :  { %8709 = vst [vmem:[#allocation40_spill] sm:$0xff] %v6285_v53  ;;  %8713 = vst [vmem:[#allocation41_spill] sm:$0xff] %v6294_v19  ;;  %v6306_v7 = vpack.c.bf16 %v8718_v26, %v8717_v51  ;;  %v8726_v51 = vand.u32 4294901760, %v6021_v62  ;;  %4664 = vmatprep.subr.bf16.mxu0 %v5768_v56  ;;  %v8733_v6 = vand.u32 4294901760, %v6115_v34  ;;  %v8736_v56 = vand.u32 4294901760, %v6167_v49  ;;  %4698 = vmatpush3.bf16.msra.mxu1 %v8647_v5 }
  0x7b   :  { %v6315_v19 = vpack.c.bf16 %v8721_v57, %v8720_v1  ;;  %8725 = vst [vmem:[#allocation45_spill] sm:$0xff] %v6321_v42  ;;  %v8729_v1 = vand.u32 4294901760, %v6069_v28  ;;  %v8730_v57 = vand.u32 4294901760, %v6077_v58  ;;  %4732 = vmatprep.subr.bf16.mxu1 %v6001_v4  ;;  %v8767_v5 = vand.u32 4294901760, %v6021_v62 }
  0x7c   :  { %8719 = vst [vmem:[#allocation43_spill] sm:$0xff] %v6306_v7  ;;  %v6327_v26 = vpack.c.bf16 %v8727_v39, %v8726_v51  ;;  %v6342_v42 = vpack.c.bf16 %v8733_v6, %v8732_v47  ;;  %v8735_v51 = vand.u32 4294901760, %v6130_v17  ;;  %v8744_v47 = vand.u32 4294901760, %v6221_v37  ;;  %v8780_v7 = vld [vmem:[#allocation28_spill] sm:$0xff] }
  0x7d   :  { %8722 = vst [vmem:[#allocation44_spill] sm:$0xff] %v6315_v19  ;;  %v6336_v52 = vpack.c.bf16 %v8730_v57, %v8729_v1  ;;  %v8741_v1 = vand.u32 4294901760, %v6204_v21  ;;  %v8742_v57 = vand.u32 4294901760, %v6215_v16  ;;  %v8745_v6 = vand.u32 4294901760, %v6229_v48  ;;  %4666 = vmatpush3.bf16.msra.mxu0 %v5773_v36  ;;  %v8763_v36 = vld [vmem:[#allocation25_spill] sm:$0xff]  ;;  %v8774_v19 = vld [vmem:[#allocation16_spill] sm:$0xff] }
  0x7e   :  { %8728 = vst [vmem:[#allocation46_spill] sm:$0xff] %v6327_v26  ;;  %8734 = vst [vmem:[#allocation48_spill] sm:$0xff] %v6342_v42  ;;  %v6348_v39 = vpack.c.bf16 %v8736_v56, %v8735_v51  ;;  %v6354_v26 = vpack.c.bf16 %v8739_v15, %v8738_v61  ;;  %v8747_v51 = vand.u32 4294901760, %v6235_v30  ;;  %v8748_v56 = vand.u32 4294901760, %v6242_v3  ;;  %4700 = vmatprep.subr.bf16.mxu0 %v5931_v8 }
  0x7f   :  { %8731 = vst [vmem:[#allocation47_spill] sm:$0xff] %v6336_v52  ;;  %v6360_v52 = vpack.c.bf16 %v8742_v57, %v8741_v1  ;;  %v6366_v42 = vpack.c.bf16 %v8745_v6, %v8744_v47  ;;  %v8750_v15 = vand.u32 4294901760, %v5979_v22  ;;  %v8752_v57 = vand.u32 4294901760, %v6247_v10  ;;  %1052 = vmatmul.mubr.f32.vlgmr.msra.gmra.mrb[4].mxu1 %v8774_v19 }
  0x80   :  { %8737 = vst [vmem:[#allocation49_spill] sm:$0xff] %v6348_v39  ;;  %8740 = vst [vmem:[#allocation50_spill] sm:$0xff] %v6354_v26  ;;  %v6372_v39 = vpack.c.bf16 %v8748_v56, %v8747_v51  ;;  %v8751_v26 = vand.u32 4294901760, %v5984_v59  ;;  %v8755_v6 = vand.u32 4294901760, %v6264_v29  ;;  %v8758_v56 = vand.u32 4294901760, %v5832_v2  ;;  %948 = vmatmul.mubr.f32.vlgmr.msra.gmra.mrb[4].mxu0 %v8774_v19  ;;  %1394 = vmatprep.mubr.f32.mxu1 %v6160_v44  ;;  %v8803_v44 = vld [vmem:[#allocation21_spill] sm:$0xff] }
  0x81   :  { %8743 = vst [vmem:[#allocation51_spill] sm:$0xff] %v6360_v52  ;;  %8746 = vst [vmem:[#allocation52_spill] sm:$0xff] %v6366_v42  ;;  %v1201_v61 = vsub.f32 %v5979_v22, %v8750_v15  ;;  %v8753_v52 = vand.u32 4294901760, %v6252_v46  ;;  %v8756_v42 = vand.u32 4294901760, %v6273_v11  ;;  %v8759_v15 = vand.u32 4294901760, %v5840_v24  ;;  %v8765_v24 = vld [vmem:[#allocation27_spill] sm:$0xff] }
  0x82   :  { %8749 = vst [vmem:[#allocation53_spill] sm:$0xff] %v6372_v39  ;;  %v1208_v1 = vsub.f32 %v5984_v59, %v8751_v26  ;;  %v8761_v26 = vand.u32 4294901760, %v5941_v55  ;;  %v8764_v2 = vand.u32 4294901760, %v8763_v36  ;;  %v1327_v55 = vsub.f32 %v6021_v62, %v8767_v5  ;;  %v8775_v36 = vld [vmem:[#allocation7_spill] sm:$0xff] }
  0x83   :  { %v6384_v47 = vpack.c.bf16 %v8753_v52, %v8752_v57  ;;  %v6390_v51 = vpack.c.bf16 %v8756_v42, %v8755_v6  ;;  %v6397_v39 = vpack.c.bf16 %v8759_v15, %v8758_v56  ;;  %v8762_v52 = vand.u32 4294901760, %v5989_v32 }
  0x84   :  { %v1321_v42 = vand.u32 4294901760, %v6125_v50  ;;  %v8766_v6 = vand.u32 4294901760, %v8765_v24  ;;  %v8768_v32 = vand.u32 4294901760, %v6063_v14  ;;  %v8771_v50 = vld [vmem:[#allocation10_spill] sm:$0xff]  ;;  %v1157_v4 = vand.u32 4294901760, %v1156_v18 }
  0x85   :  { %8754 = vst [vmem:[#allocation54_spill] sm:$0xff] %v6384_v47  ;;  %8757 = vst [vmem:[#allocation55_spill] sm:$0xff] %v6390_v51  ;;  %v4733_v57 = vpack.c.bf16 %v8762_v52, %v8761_v26  ;;  %v1314_v47 = vand.u32 4294901760, %v6120_v25  ;;  %v8769_v25 = vld [vmem:[#allocation6_spill] sm:$0xff]  ;;  %v8772_v52 = vand.u32 4294901760, %v8771_v50  ;;  %v8781_v53 = vand.u32 4294901760, %v8780_v7 }
  0x86   :  { %8760 = vst [vmem:[#allocation56_spill] sm:$0xff] %v6397_v39  ;;  %v4735_v56 = vpack.c.bf16 %v8766_v6, %v8764_v2  ;;  %v1334_v15 = vsub.f32 %v6063_v14, %v8768_v32  ;;  %v8770_v26 = vand.u32 4294901760, %v8769_v25  ;;  %v8776_v2 = vand.u32 4294901760, %v8775_v36  ;;  %v8777_v24 = vld [vmem:[#allocation14_spill] sm:$0xff]  ;;  %v8782_v32 = vld [vmem:[#allocation29_spill] sm:$0xff]  ;;  %1158 = vmatprep.mubr.f32.mxu0 %v1157_v4 }
  0x87   :  { %v8778_v6 = vand.u32 4294901760, %v8777_v24  ;;  %v8783_v23 = vand.u32 4294901760, %v8782_v32  ;;  %v1202_v8 = vand.u32 4294901760, %v1201_v61  ;;  %v1209_v50 = vand.u32 4294901760, %v1208_v1  ;;  %4734 = vmatpush3.bf16.msra.mxu1 %v4733_v57 }
  0x88   :  { %v6422_v51 = vpack.c.bf16 %v8772_v52, %v8770_v26  ;;  %v8784_v26 = vld [vmem:[#allocation12_spill] sm:$0xff]  ;;  %v4739_v18 = vpack.c.bf16 %v1321_v42, %v1314_v47  ;;  %v8785_v52 = vand.u32 4294901760, %v6069_v28  ;;  %v8786_v36 = vand.u32 4294901760, %v6077_v58  ;;  %4736 = vmatprep.subr.bf16.mxu1 %v4735_v56  ;;  %v8790_v42 = vld [vmem:[#allocation15_spill] sm:$0xff] }
  0x89   :  { %v6430_v5 = vpack.c.bf16 %v8778_v6, %v8776_v2  ;;  %v4737_v25 = vpack.c.bf16 %v8783_v23, %v8781_v53  ;;  %4702 = vmatpush3.bf16.msra.mxu0 %v8784_v26  ;;  %v1328_v7 = vand.u32 4294901760, %v1327_v55  ;;  %v1335_v24 = vand.u32 4294901760, %v1334_v15  ;;  %v8792_v56 = vld [vmem:[#allocation8_spill] sm:$0xff] }
  0x8a   :  { %8773 = vst [vmem:[#allocation25_spill] sm:$0xff] %v6422_v51  ;;  %v1215_v19 = vsub.f32 %v6069_v28, %v8785_v52  ;;  %v1222_v2 = vsub.f32 %v6077_v58, %v8786_v36  ;;  %4704 = vmatprep.subr.bf16.mxu0 %v6397_v39  ;;  %v8787_v23 = vand.u32 4294901760, %v6099_v0  ;;  %v8788_v61 = vand.u32 4294901760, %v6115_v34  ;;  %v8805_v39 = vld [vmem:[#allocation22_spill] sm:$0xff] }
  0x8b   :  { %8779 = vst [vmem:[#allocation27_spill] sm:$0xff] %v6430_v5  ;;  %v8789_v47 = vand.u32 4294901760, %v6130_v17  ;;  %v8791_v6 = vand.u32 4294901760, %v8790_v42  ;;  %v8793_v55 = vand.u32 4294901760, %v8792_v56  ;;  %v4741_v32 = vpack.c.bf16 %v1209_v50, %v1202_v8  ;;  %4738 = vmatpush3.bf16.msra.mxu1 %v4737_v25  ;;  %v8798_v8 = vld [vmem:[#allocation9_spill] sm:$0xff] }
  0x8c   :  { %v1341_v53 = vsub.f32 %v6099_v0, %v8787_v23  ;;  %v1348_v1 = vsub.f32 %v6115_v34, %v8788_v61  ;;  %v8795_v52 = vand.u32 4294901760, %v6167_v49  ;;  %v1216_v23 = vand.u32 4294901760, %v1215_v19  ;;  %4740 = vmatprep.subr.bf16.mxu1 %v4739_v18  ;;  %v8809_v18 = vld [vmem:[#allocation32_spill] sm:$0xff] }
  0x8d   :  { %v1229_v57 = vsub.f32 %v6130_v17, %v8789_v47  ;;  %v6458_v15 = vpack.c.bf16 %v8793_v55, %v8791_v6  ;;  %4706 = vmatpush3.bf16.msra.mxu0 %v6422_v51  ;;  %v1223_v61 = vand.u32 4294901760, %v1222_v2  ;;  %v8796_v4 = vand.u32 4294901760, %v6177_v33  ;;  %v8800_v6 = vld [vmem:[#allocation20_spill] sm:$0xff] }
  0x8e   :  { %v1236_v36 = vsub.f32 %v6167_v49, %v8795_v52  ;;  %v8797_v42 = vand.u32 4294901760, %v6199_v31  ;;  %4708 = vmatprep.subr.bf16.mxu0 %v6430_v5  ;;  %v8799_v50 = vand.u32 4294901760, %v8798_v8  ;;  %v8801_v55 = vand.u32 4294901760, %v8800_v6 }
  0x8f   :  { %8794 = vst [vmem:[#allocation6_spill] sm:$0xff] %v6458_v15  ;;  %v1355_v47 = vsub.f32 %v6177_v33, %v8796_v4  ;;  %v4743_v25 = vpack.c.bf16 %v1335_v24, %v1328_v7  ;;  %v1342_v19 = vand.u32 4294901760, %v1341_v53  ;;  %v1349_v2 = vand.u32 4294901760, %v1348_v1  ;;  %4742 = vmatpush3.bf16.msra.mxu1 %v4741_v32 }
  0x90   :  { %v1362_v56 = vsub.f32 %v6199_v31, %v8797_v42  ;;  %v6475_v52 = vpack.c.bf16 %v8801_v55, %v8799_v50  ;;  %v8804_v51 = vand.u32 4294901760, %v8803_v44  ;;  %v8806_v4 = vand.u32 4294901760, %v8805_v39  ;;  %v8811_v44 = vld [vmem:[#allocation23_spill] sm:$0xff]  ;;  %v8813_v39 = vld [vmem:[#allocation24_spill] sm:$0xff] }
  0x91   :  { %v1230_v33 = vand.u32 4294901760, %v1229_v57  ;;  %v1237_v42 = vand.u32 4294901760, %v1236_v36  ;;  %v8807_v5 = vand.u32 4294901760, %v6204_v21  ;;  %v8808_v6 = vand.u32 4294901760, %v6215_v16  ;;  %4710 = vmatpush3.bf16.msra.mxu0 %v6458_v15  ;;  %4744 = vmatprep.subr.bf16.mxu1 %v4743_v25  ;;  %v8817_v15 = vld [vmem:[#allocation26_spill] sm:$0xff] }
  0x92   :  { %8802 = vst [vmem:[#allocation10_spill] sm:$0xff] %v6475_v52  ;;  %v6481_v26 = vpack.c.bf16 %v8806_v4, %v8804_v51  ;;  %v6490_v7 = vand.u32 4294901760, %v8809_v18  ;;  %v8812_v24 = vand.u32 4294901760, %v8811_v44  ;;  %v8814_v51 = vand.u32 4294901760, %v8813_v39  ;;  %4712 = vmatprep.subr.bf16.mxu0 %v6475_v52 }
  0x93   :  { %v1243_v8 = vsub.f32 %v6204_v21, %v8807_v5  ;;  %v1250_v50 = vsub.f32 %v6215_v16, %v8808_v6  ;;  %v4745_v1 = vpack.c.bf16 %v1223_v61, %v1216_v23  ;;  %v1356_v57 = vand.u32 4294901760, %v1355_v47  ;;  %v8821_v23 = vld [vmem:[#allocation31_spill] sm:$0xff]  ;;  %v8823_v47 = vld [vmem:[#allocation17_spill] sm:$0xff] }
  0x94   :  { %8810 = vst [vmem:[#allocation16_spill] sm:$0xff] %v6490_v7  ;;  %v6497_v53 = vpack.c.bf16 %v8814_v51, %v8812_v24  ;;  %v1363_v36 = vand.u32 4294901760, %v1362_v56  ;;  %v4747_v5 = vpack.c.bf16 %v1349_v2, %v1342_v19  ;;  %v8815_v55 = vand.u32 4294901760, %v6221_v37  ;;  %v8819_v24 = vld [vmem:[#allocation30_spill] sm:$0xff] }
  0x95   :  { %v8816_v6 = vand.u32 4294901760, %v6229_v48  ;;  %v8818_v39 = vand.u32 4294901760, %v8817_v15  ;;  %v8820_v51 = vand.u32 4294901760, %v8819_v24  ;;  %v8822_v61 = vand.u32 4294901760, %v8821_v23  ;;  %4714 = vmatpush3.bf16.msra.mxu0 %v6481_v26  ;;  %4746 = vmatpush3.bf16.msra.mxu1 %v4745_v1 }
  0x96   :  { %v1369_v4 = vsub.f32 %v6221_v37, %v8815_v55  ;;  %v8824_v56 = vand.u32 4294901760, %v8823_v47  ;;  %v4749_v19 = vpack.c.bf16 %v1237_v42, %v1230_v33  ;;  %v1244_v2 = vand.u32 4294901760, %v1243_v8  ;;  %4716 = vmatprep.subr.bf16.mxu0 %v6497_v53  ;;  %4748 = vmatprep.subr.bf16.mxu1 %v4747_v5 }
  0x97   :  { %v1376_v44 = vsub.f32 %v6229_v48, %v8816_v6  ;;  %v6510_v32 = vpack.c.bf16 %v8820_v51, %v8818_v39  ;;  %v1251_v52 = vand.u32 4294901760, %v1250_v50  ;;  %v6520_v55 = vsub.f32 %v8809_v18, %v6490_v7 }
  0x98   :  { %v6516_v25 = vpack.c.bf16 %v8824_v56, %v8822_v61  ;;  %v4751_v15 = vpack.c.bf16 %v1363_v36, %v1356_v57  ;;  %v8826_v6 = vand.u32 4294901760, %v6235_v30  ;;  %v8827_v24 = vand.u32 4294901760, %v6242_v3 }
  0x99   :  { %8825 = vst [vmem:[#allocation7_spill] sm:$0xff] %v6520_v55  ;;  %v1370_v33 = vand.u32 4294901760, %v1369_v4  ;;  %v1377_v42 = vand.u32 4294901760, %v1376_v44  ;;  %v8828_v8 = vand.u32 4294901760, %v6247_v10  ;;  %v8829_v18 = vand.u32 4294901760, %v6252_v46  ;;  %4718 = vmatpush3.bf16.msra.mxu0 %v6510_v32  ;;  %4750 = vmatpush3.bf16.msra.mxu1 %v4749_v19 }
  0x9a   :  { %v1257_v39 = vsub.f32 %v6235_v30, %v8826_v6  ;;  %v1264_v51 = vsub.f32 %v6242_v3, %v8827_v24  ;;  %v8830_v57 = vand.u32 4294901760, %v6088_v54  ;;  %v8831_v36 = vand.u32 4294901760, %v6105_v43  ;;  %4720 = vmatprep.subr.bf16.mxu0 %v6516_v25  ;;  %v8834_v43 = vld [vmem:[#allocation18_spill] sm:$0xff]  ;;  %4752 = vmatprep.subr.bf16.mxu1 %v4751_v15  ;;  %v8841_v15 = vld [vmem:[#allocation35_spill] sm:$0xff] }
  0x9b   :  { %v1383_v50 = vsub.f32 %v6247_v10, %v8828_v8  ;;  %v1390_v1 = vsub.f32 %v6252_v46, %v8829_v18  ;;  %v4753_v61 = vpack.c.bf16 %v1251_v52, %v1244_v2  ;;  %v8459_v47 = vand.u32 4294901760, %v6520_v55  ;;  %v8836_v52 = vld [vmem:[#allocation33_spill] sm:$0xff]  ;;  %v8838_v18 = vld [vmem:[#allocation34_spill] sm:$0xff] }
  0x9c   :  { %v6540_v23 = vpack.c.bf16 %v8831_v36, %v8830_v57  ;;  %v1258_v5 = vand.u32 4294901760, %v1257_v39  ;;  %v1265_v4 = vand.u32 4294901760, %v1264_v51  ;;  %v8832_v44 = vand.u32 4294901760, %v6264_v29  ;;  %v6915_v10 = vld [vmem:[%s8351_s2 + $0x2f0] sm:$0xff] }
  0x9d   :  { %v8833_v6 = vand.u32 4294901760, %v6273_v11  ;;  %v8835_v24 = vand.u32 4294901760, %v8834_v43  ;;  %v8837_v2 = vand.u32 4294901760, %v8836_v52  ;;  %v4755_v19 = vpack.c.bf16 %v1377_v42, %v1370_v33  ;;  %4754 = vmatpush3.bf16.msra.mxu1 %v4753_v61  ;;  %8911 = vst [vmem:[#allocation67_spill] sm:$0xff] %v6915_v10 }
  0x9e   :  { %v1271_v56 = vsub.f32 %v6264_v29, %v8832_v44  ;;  %v1384_v39 = vand.u32 4294901760, %v1383_v50  ;;  %v1391_v51 = vand.u32 4294901760, %v1390_v1  ;;  %v8839_v57 = vand.u32 4294901760, %v8838_v18  ;;  %4722 = vmatpush3.bf16.msra.mxu0 %v6540_v23  ;;  %v6577_v1 = vld [vmem:[%s8351_s2 + $0x280] sm:$0xff]  ;;  %v6605_v18 = vld [vmem:[%s8351_s2 + $0x208] sm:$0xff] }
  0x9f   :  { %v1278_v54 = vsub.f32 %v6273_v11, %v8833_v6  ;;  %v6555_v8 = vpack.c.bf16 %v8837_v2, %v8835_v24  ;;  %v8840_v36 = vand.u32 4294901760, %v6145_v20  ;;  %v1162_v6 = vsub.f32 %v6520_v55, %v8459_v47  ;;  %4756 = vmatprep.subr.bf16.mxu1 %v4755_v19  ;;  %8845 = vst [vmem:[#allocation28_spill] sm:$0xff] %v6577_v1  ;;  %v8860_v47 = vld [vmem:[#allocation37_spill] sm:$0xff] }
  0xa0   :  { %v4757_v43 = vpack.c.bf16 %v1265_v4, %v1258_v5  ;;  %v1272_v24 = vand.u32 4294901760, %v1271_v56  ;;  %v8842_v33 = vand.u32 4294901760, %v8841_v15  ;;  %v8843_v42 = vand.u32 4294901760, %v6158_v45  ;;  %v8847_v5 = vld [vmem:[#allocation38_spill] sm:$0xff]  ;;  %8853 = vst [vmem:[#allocation9_spill] sm:$0xff] %v6605_v18 }
  0xa1   :  { %v6561_v44 = vpack.c.bf16 %v8840_v36, %v8839_v57  ;;  %v1279_v52 = vand.u32 4294901760, %v1278_v54  ;;  %4724 = vmatprep.subr.bf16.mxu0 %v6555_v8  ;;  %v4759_v20 = vpack.c.bf16 %v1391_v51, %v1384_v39  ;;  %v8846_v61 = vand.u32 4294901760, %v6185_v63  ;;  %v8850_v54 = vld [vmem:[#allocation5_spill] sm:$0xff]  ;;  %v6610_v57 = vld [vmem:[%s8351_s2 + $0x290] sm:$0xff]  ;;  %v6623_v36 = vld [vmem:[%s8351_s2 + $0x298] sm:$0xff] }
  0xa2   :  { %v6572_v50 = vpack.c.bf16 %v8843_v42, %v8842_v33  ;;  %v8848_v4 = vand.u32 4294901760, %v8847_v5  ;;  %v4763_v2 = vpack.c.bf16 %v8850_v54, %v5818_v35  ;;  %v6590_v45 = vld [vmem:[%s8351_s2 + $0x288] sm:$0xff]  ;;  %v1163_v19 = vand.u32 4294901760, %v1162_v6  ;;  %4758 = vmatpush3.bf16.msra.mxu1 %v4757_v43  ;;  %v6600_v35 = vld [vmem:[%s8351_s2 + $0x200] sm:$0xff]  ;;  %8854 = vst [vmem:[#allocation20_spill] sm:$0xff] %v6610_v57  ;;  %8855 = vst [vmem:[#allocation21_spill] sm:$0xff] %v6623_v36 }
  0xa3   :  { %8851 = vst [vmem:[#allocation15_spill] sm:$0xff] %v6590_v45  ;;  %4726 = vmatpush3.bf16.msra.mxu0 %v6561_v44  ;;  %v4765_v39 = vpack.c.bf16 %v5864_v41, %v5858_v27  ;;  %v4767_v63 = vpack.c.bf16 %v5901_v12, %v5879_v60  ;;  %v4761_v51 = vpack.c.bf16 %v1279_v52, %v1272_v24  ;;  %8852 = vst [vmem:[#allocation8_spill] sm:$0xff] %v6600_v35  ;;  %v6628_v6 = vld [vmem:[%s8351_s2 + $0x210] sm:$0xff]  ;;  %v6640_v33 = vld [vmem:[%s8351_s2 + $0x218] sm:$0xff] }
  0xa4   :  { %8844 = vst [vmem:[#allocation14_spill] sm:$0xff] %v6572_v50  ;;  %v6583_v56 = vpack.c.bf16 %v8848_v4, %v8846_v61  ;;  %4728 = vmatprep.subr.bf16.mxu0 %v6572_v50  ;;  %4760 = vmatprep.subr.bf16.mxu1 %v4759_v20  ;;  %v8460_v12 = vand.u32 4294901760, %v6577_v1  ;;  %8856 = vst [vmem:[#allocation22_spill] sm:$0xff] %v6628_v6  ;;  %v8461_v15 = vand.u32 4294901760, %v6590_v45  ;;  %v6645_v42 = vld [vmem:[%s8351_s2 + $0x2a0] sm:$0xff]  ;;  %v8462_v61 = vand.u32 4294901760, %v6600_v35 }
  0xa5   :  { %8857 = vst [vmem:[#allocation32_spill] sm:$0xff] %v6640_v33  ;;  %8858 = vst [vmem:[#allocation23_spill] sm:$0xff] %v6645_v42  ;;  %v8463_v5 = vand.u32 4294901760, %v6605_v18  ;;  %v8466_v4 = vand.u32 4294901760, %v6610_v57  ;;  %v6655_v54 = vld [vmem:[%s8351_s2 + $0x2a8] sm:$0xff]  ;;  %v6667_v60 = vld [vmem:[%s8351_s2 + $0x220] sm:$0xff] }
  0xa6   :  { %8849 = vst [vmem:[#allocation29_spill] sm:$0xff] %v6583_v56  ;;  %8859 = vst [vmem:[#allocation24_spill] sm:$0xff] %v6655_v54  ;;  %4762 = vmatpush3.bf16.msra.mxu1 %v4761_v51  ;;  %v8862_v41 = vld [vmem:[#allocation11_spill] sm:$0xff]  ;;  %v6675_v52 = vsub.f32 %v6577_v1, %v8460_v12  ;;  %v6682_v43 = vld [vmem:[%s8351_s2 + $0x228] sm:$0xff]  ;;  %v6696_v27 = vsub.f32 %v6590_v45, %v8461_v15  ;;  %v6708_v51 = vsub.f32 %v6600_v35, %v8462_v61 }
  0xa7   :  { %4730 = vmatpush3.bf16.msra.mxu0 %v6583_v56  ;;  %8861 = vst [vmem:[#allocation26_spill] sm:$0xff] %v6667_v60  ;;  %4796 = vmatprep.subr.bf16.mxu1 %v8862_v41  ;;  %8863 = vst [vmem:[#allocation30_spill] sm:$0xff] %v6682_v43  ;;  %v6702_v24 = vld [vmem:[%s8351_s2 + $0x2b8] sm:$0xff]  ;;  %v6713_v15 = vsub.f32 %v6605_v18, %v8463_v5  ;;  %v6718_v12 = vsub.f32 %v6610_v57, %v8466_v4  ;;  %v8870_v20 = vand.u32 4294901760, %v6628_v6  ;;  %v6770_v1 = vld [vmem:[%s8351_s2 + $0x240] sm:$0xff] }
  0xa8   :  { %4764 = vmatprep.subr.bf16.mxu0 %v4763_v2  ;;  %v6687_v2 = vld [vmem:[%s8351_s2 + $0x2b0] sm:$0xff]  ;;  %8865 = vst [vmem:[#allocation17_spill] sm:$0xff] %v6702_v24  ;;  %v6729_v61 = vld [vmem:[%s8351_s2 + $0x238] sm:$0xff]  ;;  %8878 = vst [vmem:[#allocation37_spill] sm:$0xff] %v6770_v1  ;;  %v8884_v55 = vand.u32 4294901760, %v6667_v60  ;;  %v8905_v56 = vand.u32 4294901760, %v6770_v1 }
  0xa9   :  { %8864 = vst [vmem:[#allocation31_spill] sm:$0xff] %v6687_v2  ;;  %1396 = vmatmul.mubr.f32.vlgmr.msra.gmra.mrb[6].mxu1 %v6490_v7  ;;  %8867 = vst [vmem:[#allocation33_spill] sm:$0xff] %v6729_v61  ;;  %v8868_v5 = vld [vmem:[#allocation12_spill] sm:$0xff]  ;;  %v8869_v7 = vand.u32 4294901760, %v6623_v36  ;;  %v6740_v57 = vsub.f32 %v6628_v6, %v8870_v20  ;;  %v8875_v20 = vand.u32 4294901760, %v6645_v42  ;;  %v8902_v18 = vld [vmem:[#allocation6_spill] sm:$0xff] }
  0xaa   :  { %1164 = vmatmul.mubr.f32.vlgmr.msra.gmra.mrb[6].mxu0 %v1163_v19  ;;  %v6724_v19 = vld [vmem:[%s8351_s2 + $0x230] sm:$0xff]  ;;  %4798 = vmatpush3.bf16.msra.mxu1 %v8868_v5  ;;  %v8872_v45 = vld [vmem:[#allocation56_spill] sm:$0xff]  ;;  %v6786_v5 = vld [vmem:[%s8351_s2 + $0x248] sm:$0xff]  ;;  %v6897_v50 = vsub.f32 %v6770_v1, %v8905_v56  ;;  %v8921_v1 = vpack.c.bf16 %v6115_v34, %v6099_v0 }
  0xab   :  { %8866 = vst [vmem:[#allocation18_spill] sm:$0xff] %v6724_v19  ;;  %4766 = vmatpush3.bf16.msra.mxu0 %v4765_v39  ;;  %v6735_v4 = vsub.f32 %v6623_v36, %v8869_v7  ;;  %v6747_v39 = vld [vmem:[%s8351_s2 + $0x2c0] sm:$0xff]  ;;  %4800 = vmatprep.subr.bf16.mxu1 %v8872_v45  ;;  %v8873_v7 = vand.u32 4294901760, %v6640_v33  ;;  %v6758_v6 = vsub.f32 %v6645_v42, %v8875_v20  ;;  %v8881_v20 = vand.u32 4294901760, %v6655_v54  ;;  %v6934_v56 = vld [vmem:[%s8351_s2 + $0x278] sm:$0xff] }
  0xac   :  { %8871 = vst [vmem:[#allocation34_spill] sm:$0xff] %v6747_v39  ;;  %4768 = vmatprep.subr.bf16.mxu0 %v4767_v63  ;;  %v6765_v63 = vld [vmem:[%s8351_s2 + $0x2c8] sm:$0xff]  ;;  %8883 = vst [vmem:[#allocation57_spill] sm:$0xff] %v6786_v5  ;;  %v8885_v42 = vpack.c.bf16 %v5914_v38, %v5909_v13  ;;  %v6815_v13 = vld [vmem:[%s8351_s2 + $0x2d0] sm:$0xff] }
  0xad   :  { %v6753_v36 = vsub.f32 %v6640_v33, %v8873_v7  ;;  %8876 = vst [vmem:[#allocation38_spill] sm:$0xff] %v6758_v6  ;;  %8877 = vst [vmem:[#allocation5_spill] sm:$0xff] %v6765_v63  ;;  %v8879_v7 = vld [vmem:[#allocation39_spill] sm:$0xff]  ;;  %v6778_v35 = vsub.f32 %v6655_v54, %v8881_v20  ;;  %v8886_v45 = vld [vmem:[#allocation25_spill] sm:$0xff]  ;;  %v8887_v54 = vand.u32 4294901760, %v6682_v43  ;;  %v8903_v20 = vand.u32 4294901760, %v6765_v63 }
  0xae   :  { %1531 = vmatprep.mubr.f32.mxu0 %v8879_v7  ;;  %v8880_v33 = vand.u32 4294901760, %v8879_v7  ;;  %4802 = vmatpush3.bf16.msra.mxu1 %v8886_v45  ;;  %8889 = vst [vmem:[#allocation58_spill] sm:$0xff] %v6815_v13  ;;  %v6820_v38 = vld [vmem:[%s8351_s2 + $0x2d8] sm:$0xff]  ;;  %8906 = vst [vmem:[#allocation65_spill] sm:$0xff] %v6897_v50  ;;  %v6929_v45 = vld [vmem:[%s8351_s2 + $0x270] sm:$0xff] }
  0xaf   :  { %8874 = vst [vmem:[#allocation35_spill] sm:$0xff] %v6753_v36  ;;  %8882 = vst [vmem:[#allocation39_spill] sm:$0xff] %v6778_v35  ;;  %4770 = vmatpush3.bf16.msra.mxu0 %v8885_v42  ;;  %v6803_v41 = vsub.f32 %v6682_v43, %v8887_v54  ;;  %v8891_v42 = vpack.c.bf16 %v5965_v40, %v5960_v9  ;;  %v8892_v54 = vld [vmem:[#allocation27_spill] sm:$0xff]  ;;  %v8894_v9 = vand.u32 4294901760, %v6724_v19 }
  0xb0   :  { %1638 = vmatprep.mubr.f32.mxu1 %v8880_v33  ;;  %v6791_v33 = vsub.f32 %v6667_v60, %v8884_v55  ;;  %v8888_v55 = vand.u32 4294901760, %v6687_v2  ;;  %8890 = vst [vmem:[#allocation59_spill] sm:$0xff] %v6820_v38  ;;  %4804 = vmatprep.subr.bf16.mxu1 %v8892_v54  ;;  %v6837_v43 = vld [vmem:[%s8351_s2 + $0x250] sm:$0xff]  ;;  %v6877_v54 = vld [vmem:[%s8351_s2 + $0x260] sm:$0xff]  ;;  %8913 = vst [vmem:[#allocation69_spill] sm:$0xff] %v6929_v45 }
  0xb1   :  { %4772 = vmatprep.subr.bf16.mxu0 %v8891_v42  ;;  %v6842_v40 = vsub.f32 %v6724_v19, %v8894_v9  ;;  %v8896_v42 = vand.u32 4294901760, %v6729_v61  ;;  %v8899_v9 = vand.u32 4294901760, %v6747_v39  ;;  %8900 = vst [vmem:[#allocation63_spill] sm:$0xff] %v6877_v54  ;;  %8914 = vst [vmem:[#allocation70_spill] sm:$0xff] %v6934_v56 }
  0xb2   :  { %v6808_v60 = vsub.f32 %v6687_v2, %v8888_v55  ;;  %v8893_v55 = vand.u32 4294901760, %v6702_v24  ;;  %v6854_v2 = vld [vmem:[%s8351_s2 + $0x258] sm:$0xff]  ;;  %4806 = vmatpush3.bf16.msra.mxu1 %v8902_v18  ;;  %v8920_v18 = vand.u32 4294901760, %v6837_v43 }
  0xb3   :  { %8895 = vst [vmem:[#allocation60_spill] sm:$0xff] %v6842_v40  ;;  %v6864_v19 = vsub.f32 %v6747_v39, %v8899_v9  ;;  %v6882_v9 = vld [vmem:[%s8351_s2 + $0x268] sm:$0xff]  ;;  %v6891_v39 = vsub.f32 %v6765_v63, %v8903_v20 }
  0xb4   :  { %v6829_v7 = vsub.f32 %v6702_v24, %v8893_v55  ;;  %v6847_v55 = vsub.f32 %v6729_v61, %v8896_v42  ;;  %v6859_v24 = vld [vmem:[%s8351_s2 + $0x2e0] sm:$0xff]  ;;  %v6872_v61 = vld [vmem:[%s8351_s2 + $0x2e8] sm:$0xff]  ;;  %v8901_v42 = vpack.c.bf16 %v5984_v59, %v5979_v22  ;;  %v8907_v22 = vpack.c.bf16 %v6063_v14, %v6021_v62  ;;  %v6920_v14 = vld [vmem:[%s8351_s2 + $0x2f8] sm:$0xff] }
  0xb5   :  { %8898 = vst [vmem:[#allocation62_spill] sm:$0xff] %v6859_v24  ;;  %8904 = vst [vmem:[#allocation64_spill] sm:$0xff] %v6891_v39  ;;  %v8908_v59 = vld [vmem:[#allocation10_spill] sm:$0xff]  ;;  %v8923_v63 = vand.u32 4294901760, %v6859_v24  ;;  %v8924_v0 = vand.u32 4294901760, %v6872_v61 }
  0xb6   :  { %8897 = vst [vmem:[#allocation61_spill] sm:$0xff] %v6847_v55  ;;  %4774 = vmatpush3.bf16.msra.mxu0 %v8901_v42  ;;  %4808 = vmatprep.subr.bf16.mxu1 %v8908_v59  ;;  %v8909_v42 = vand.u32 4294901760, %v6786_v5  ;;  %8912 = vst [vmem:[#allocation68_spill] sm:$0xff] %v6920_v14  ;;  %v8919_v59 = vpack.c.bf16 %v6077_v58, %v6069_v28  ;;  %v8922_v58 = vand.u32 4294901760, %v6854_v2 }
  0xb7   :  { %4776 = vmatprep.subr.bf16.mxu0 %v8907_v22  ;;  %v8917_v22 = vand.u32 4294901760, %v6820_v38  ;;  %4810 = vmatpush3.bf16.msra.mxu1 %v6481_v26  ;;  %v6980_v34 = vsub.f32 %v6872_v61, %v8924_v0  ;;  %v8927_v0 = vpack.c.bf16 %v6167_v49, %v6130_v17  ;;  %v8930_v17 = vpack.c.bf16 %v6199_v31, %v8860_v47 }
  0xb8   :  { %v6907_v20 = vsub.f32 %v6786_v5, %v8909_v42  ;;  %v8915_v5 = vand.u32 4294901760, %v6815_v13  ;;  %4812 = vmatprep.subr.bf16.mxu1 %v6497_v53  ;;  %v6967_v28 = vsub.f32 %v6854_v2, %v8922_v58  ;;  %v8931_v49 = vand.u32 4294901760, %v6929_v45 }
  0xb9   :  { %v6944_v42 = vsub.f32 %v6820_v38, %v8917_v22  ;;  %v6975_v38 = vsub.f32 %v6859_v24, %v8923_v63  ;;  %v8937_v22 = vand.u32 4294901760, %v6713_v15  ;;  %v8939_v63 = vand.u32 4294901760, %v6718_v12 }
  0xba   :  { %8910 = vst [vmem:[#allocation66_spill] sm:$0xff] %v6907_v20  ;;  %v6939_v62 = vsub.f32 %v6815_v13, %v8915_v5  ;;  %4778 = vmatpush3.bf16.msra.mxu0 %v8919_v59  ;;  %v6955_v5 = vsub.f32 %v6837_v43, %v8920_v18  ;;  %v8926_v18 = vand.u32 4294901760, %v6882_v9  ;;  %v8940_v31 = vand.u32 4294901760, %v6735_v4 }
  0xbb   :  { %8918 = vst [vmem:[#allocation72_spill] sm:$0xff] %v6944_v42  ;;  %4780 = vmatprep.subr.bf16.mxu0 %v8921_v1  ;;  %v8925_v1 = vand.u32 4294901760, %v6877_v54  ;;  %4814 = vmatpush3.bf16.msra.mxu1 %v6510_v32  ;;  %v8943_v47 = vand.u32 4294901760, %v6753_v36 }
  0xbc   :  { %8916 = vst [vmem:[#allocation71_spill] sm:$0xff] %v6939_v62  ;;  %v6990_v59 = vsub.f32 %v6882_v9, %v8926_v18  ;;  %v8929_v18 = vand.u32 4294901760, %v6920_v14  ;;  %4816 = vmatprep.subr.bf16.mxu1 %v6516_v25  ;;  %v7048_v24 = vpack.c.bf16 %v8940_v31, %v8939_v63  ;;  %v8949_v31 = vand.u32 4294901760, %v6791_v33 }
  0xbd   :  { %v6985_v58 = vsub.f32 %v6877_v54, %v8925_v1  ;;  %v8928_v1 = vand.u32 4294901760, %v6915_v10 }
  0xbe   :  { %4782 = vmatpush3.bf16.msra.mxu0 %v8927_v0  ;;  %v7008_v13 = vsub.f32 %v6920_v14, %v8929_v18  ;;  %v7019_v0 = vsub.f32 %v6929_v45, %v8931_v49  ;;  %v8933_v49 = vand.u32 4294901760, %v6675_v52  ;;  %v8934_v45 = vand.u32 4294901760, %v6696_v27  ;;  %8941 = vst [vmem:[#allocation75_spill] sm:$0xff] %v7048_v24 }
  0xbf   :  { %v7003_v54 = vsub.f32 %v6915_v10, %v8928_v1  ;;  %4784 = vmatprep.subr.bf16.mxu0 %v8930_v17  ;;  %v8932_v1 = vand.u32 4294901760, %v6934_v56  ;;  %v8942_v17 = vand.u32 4294901760, %v6740_v57  ;;  %4818 = vmatpush3.bf16.msra.mxu1 %v6540_v23  ;;  %v8950_v24 = vand.u32 4294901760, %v6803_v41 }
  0xc0   :  { %v7036_v14 = vpack.c.bf16 %v8934_v45, %v8933_v49  ;;  %v8945_v45 = vpack.c.bf16 %v6215_v16, %v6204_v21  ;;  %v8946_v49 = vand.u32 4294901760, %v6758_v6  ;;  %v8953_v16 = vand.u32 4294901760, %v6829_v7  ;;  %4820 = vmatprep.subr.bf16.mxu1 %v6555_v8 }
  0xc1   :  { %v7024_v18 = vsub.f32 %v6934_v56, %v8932_v1  ;;  %v8936_v1 = vand.u32 4294901760, %v6708_v51  ;;  %v7054_v10 = vpack.c.bf16 %v8943_v47, %v8942_v17  ;;  %v7071_v47 = vpack.c.bf16 %v8950_v24, %v8949_v31 }
  0xc2   :  { %8935 = vst [vmem:[#allocation73_spill] sm:$0xff] %v7036_v14  ;;  %4786 = vmatpush3.bf16.msra.mxu0 %v8945_v45  ;;  %v8952_v17 = vand.u32 4294901760, %v6808_v60  ;;  %v8955_v45 = vpack.c.bf16 %v6229_v48, %v6221_v37  ;;  %v8959_v31 = vand.u32 4294901760, %v6864_v19  ;;  %v8963_v37 = vand.u32 4294901760, %v6907_v20 }
  0xc3   :  { %v7042_v56 = vpack.c.bf16 %v8937_v22, %v8936_v1  ;;  %8944 = vst [vmem:[#allocation76_spill] sm:$0xff] %v7054_v10  ;;  %v8947_v1 = vand.u32 4294901760, %v6778_v35  ;;  %8951 = vst [vmem:[#allocation78_spill] sm:$0xff] %v7071_v47  ;;  %v8957_v22 = vand.u32 4294901760, %v6847_v55  ;;  %v8960_v47 = vand.u32 4294901760, %v6891_v39  ;;  %4822 = vmatpush3.bf16.msra.mxu1 %v6561_v44 }
  0xc4   :  { %v7077_v21 = vpack.c.bf16 %v8953_v16, %v8952_v17  ;;  %4788 = vmatprep.subr.bf16.mxu0 %v8955_v45  ;;  %v8962_v16 = vand.u32 4294901760, %v6897_v50  ;;  %v8965_v45 = vand.u32 4294901760, %v6939_v62 }
  0xc5   :  { %8938 = vst [vmem:[#allocation74_spill] sm:$0xff] %v7042_v56  ;;  %v7065_v63 = vpack.c.bf16 %v8947_v1, %v8946_v49  ;;  %v8956_v1 = vand.u32 4294901760, %v6842_v40  ;;  %v7094_v17 = vpack.c.bf16 %v8960_v47, %v8959_v31  ;;  %v8966_v49 = vand.u32 4294901760, %v6944_v42  ;;  %v9029_v56 = vld [vmem:[#allocation8_spill] sm:$0xff] }
  0xc6   :  { %8954 = vst [vmem:[#allocation79_spill] sm:$0xff] %v7077_v21  ;;  %v7100_v48 = vpack.c.bf16 %v8963_v37, %v8962_v16  ;;  %v8971_v47 = vand.u32 4294901760, %v6975_v38  ;;  %v8972_v31 = vand.u32 4294901760, %v6980_v34  ;;  %v8974_v16 = vand.u32 4294901760, %v6985_v58 }
  0xc7   :  { %8948 = vst [vmem:[#allocation77_spill] sm:$0xff] %v7065_v63  ;;  %v7088_v24 = vpack.c.bf16 %v8957_v22, %v8956_v1  ;;  %8961 = vst [vmem:[#allocation81_spill] sm:$0xff] %v7094_v17  ;;  %v7106_v21 = vpack.c.bf16 %v8966_v49, %v8965_v45  ;;  %v8968_v22 = vand.u32 4294901760, %v6955_v5  ;;  %v8969_v1 = vand.u32 4294901760, %v6967_v28  ;;  %v8983_v45 = vld [vmem:[#allocation14_spill] sm:$0xff]  ;;  %v9027_v63 = vld [vmem:[#allocation15_spill] sm:$0xff] }
  0xc8   :  { %8964 = vst [vmem:[#allocation82_spill] sm:$0xff] %v7100_v48  ;;  %v7118_v17 = vpack.c.bf16 %v8972_v31, %v8971_v47  ;;  %v8975_v37 = vand.u32 4294901760, %v6990_v59  ;;  %v8502_v49 = vand.u32 4294901760, %v7019_v0  ;;  %v8978_v47 = vand.u32 4294901760, %v7003_v54  ;;  %4824 = vmatprep.subr.bf16.mxu1 %v8983_v45 }
  0xc9   :  { %8958 = vst [vmem:[#allocation80_spill] sm:$0xff] %v7088_v24  ;;  %8967 = vst [vmem:[#allocation83_spill] sm:$0xff] %v7106_v21  ;;  %v7112_v24 = vpack.c.bf16 %v8969_v1, %v8968_v22  ;;  %v8977_v22 = vpack.c.bf16 %v6242_v3, %v6235_v30  ;;  %v4793_v1 = vpack.c.bf16 %v6273_v11, %v6264_v29  ;;  %v8979_v31 = vand.u32 4294901760, %v7008_v13  ;;  %v16_v29 = vld [vmem:[%s8349_s0 + $0x8] sm:$0xff] }
  0xca   :  { %8973 = vst [vmem:[#allocation85_spill] sm:$0xff] %v7118_v17  ;;  %v7124_v48 = vpack.c.bf16 %v8975_v37, %v8974_v16  ;;  %v8981_v16 = vld [vmem:[#allocation19_spill] sm:$0xff]  ;;  %v8984_v30 = vand.u32 4294901760, %v7024_v18  ;;  %v18_v11 = vld [vmem:[%s8350_s1 + $0x8] sm:$0xff]  ;;  %v9028_v10 = vand.u32 4294901760, %v9027_v63  ;;  %v9030_v14 = vand.u32 4294901760, %v9029_v56 }
  0xcb   :  { %8970 = vst [vmem:[#allocation84_spill] sm:$0xff] %v7112_v24  ;;  %4790 = vmatpush3.bf16.msra.mxu0 %v8977_v22  ;;  %v7138_v17 = vpack.c.bf16 %v8979_v31, %v8978_v47  ;;  %v8982_v37 = vpack.c.bf16 %v6252_v46, %v8981_v16  ;;  %v8986_v22 = vld [vmem:[#allocation29_spill] sm:$0xff]  ;;  %v8987_v46 = vld [vmem:[#allocation40_spill] sm:$0xff]  ;;  %v8988_v47 = vld [vmem:[#allocation11_spill] sm:$0xff]  ;;  %v20_v31 = vsub.f32 %v16_v29, %v18_v11 }
  0xcc   :  { %8976 = vst [vmem:[#allocation86_spill] sm:$0xff] %v7124_v48  ;;  %v7148_v3 = vpack.c.bf16 %v8984_v30, %v8502_v49  ;;  %4826 = vmatpush3.bf16.msra.mxu1 %v8986_v22  ;;  %v8989_v16 = vld [vmem:[#allocation7_spill] sm:$0xff]  ;;  %v8991_v30 = vld [vmem:[#allocation41_spill] sm:$0xff]  ;;  %v8992_v49 = vld [vmem:[#allocation12_spill] sm:$0xff] }
  0xcd   :  { %8980 = vst [vmem:[#allocation87_spill] sm:$0xff] %v7138_v17  ;;  %4792 = vmatprep.subr.bf16.mxu0 %v8982_v37  ;;  %4860 = vmatprep.subr.bf16.mxu1 %v8988_v47  ;;  %v8990_v37 = vand.u32 4294901760, %v8989_v16  ;;  %v8994_v17 = vld [vmem:[#allocation56_spill] sm:$0xff]  ;;  %v8997_v29 = vld [vmem:[#allocation43_spill] sm:$0xff]  ;;  %v8998_v11 = vld [vmem:[#allocation25_spill] sm:$0xff] }
  0xce   :  { %8985 = vst [vmem:[#allocation19_spill] sm:$0xff] %v7148_v3  ;;  %v8993_v3 = vld [vmem:[#allocation42_spill] sm:$0xff]  ;;  %v8999_v47 = vld [vmem:[#allocation44_spill] sm:$0xff]  ;;  %v9036_v63 = vld [vmem:[#allocation21_spill] sm:$0xff] }
  0xcf   :  { %4794 = vmatpush3.bf16.msra.mxu0 %v4793_v1  ;;  %1642 = vmatmul.mubr.f32.vlgmr.msra.gmra.mrb[8].mxu1 %v8990_v37  ;;  %v8995_v1 = vld [vmem:[#allocation36_spill] sm:$0xff]  ;;  %v9001_v37 = vld [vmem:[#allocation13_spill] sm:$0xff] }
  0xd0   :  { %4828 = vmatprep.subr.bf16.mxu0 %v8987_v46  ;;  %4862 = vmatpush3.bf16.msra.mxu1 %v8992_v49  ;;  %v7168_v46 = vand.u32 2147483647, %v20_v31  ;;  %v9005_v31 = vld [vmem:[#allocation10_spill] sm:$0xff] }
  0xd1   :  { %4864 = vmatprep.subr.bf16.mxu1 %v8994_v17  ;;  %1912 = vmatprep.mubr.f32.mxu1 %v8995_v1  ;;  %v9003_v17 = vld [vmem:[#allocation6_spill] sm:$0xff] }
  0xd2   :  { %1534 = vmatmul.mubr.f32.vlgmr.msra.gmra.mrb[8].mxu0 %v8989_v16  ;;  %8996 = vst [vmem:[#allocation14_spill] sm:$0xff] %v7168_v46  ;;  %v9000_v16 = vld [vmem:[#allocation27_spill] sm:$0xff]  ;;  %v7176_v49 = vrot.slane %v7168_v46, %v9001_v37  ;;  %v9025_v37 = vld [vmem:[#allocation28_spill] sm:$0xff] }
  0xd3   :  { %4830 = vmatpush3.bf16.msra.mxu0 %v8991_v30  ;;  %1808 = vmatprep.mubr.f32.mxu0 %v8995_v1  ;;  %v9004_v30 = vld [vmem:[#allocation46_spill] sm:$0xff] }
  0xd4   :  { %4832 = vmatprep.subr.bf16.mxu0 %v8993_v3  ;;  %4866 = vmatpush3.bf16.msra.mxu1 %v8998_v11  ;;  %v9002_v3 = vld [vmem:[#allocation45_spill] sm:$0xff]  ;;  %v185_v1 = vcombine.high %v7176_v49, %v7176_v49  ;;  %v9007_v11 = vld [vmem:[#allocation48_spill] sm:$0xff] }
  0xd5   :  { %4868 = vmatprep.subr.bf16.mxu1 %v9000_v16  ;;  %v9009_v16 = vld [vmem:[#allocation49_spill] sm:$0xff] }
  0xd7   :  { %4834 = vmatpush3.bf16.msra.mxu0 %v8997_v29  ;;  %v9006_v29 = vld [vmem:[#allocation47_spill] sm:$0xff] }
  0xd8   :  { %4836 = vmatprep.subr.bf16.mxu0 %v8999_v47  ;;  %4870 = vmatpush3.bf16.msra.mxu1 %v9003_v17  ;;  %v7188_v47 = vand.u32 4294901760, %v185_v1  ;;  %v9011_v17 = vand.u32 4294901760, %v6675_v52 }
  0xd9   :  { %4872 = vmatprep.subr.bf16.mxu1 %v9005_v31 }
  0xda   :  { %9008 = vst [vmem:[#allocation29_spill] sm:$0xff] %v7188_v47 }
  0xdb   :  { %4838 = vmatpush3.bf16.msra.mxu0 %v9002_v3  ;;  %v9010_v3 = vld [vmem:[#allocation50_spill] sm:$0xff] }
  0xdc   :  { %4840 = vmatprep.subr.bf16.mxu0 %v9004_v30  ;;  %4874 = vmatpush3.bf16.msra.mxu1 %v6481_v26  ;;  %v2147_v30 = vsub.f32 %v6675_v52, %v9011_v17  ;;  %v9012_v26 = vand.u32 4294901760, %v6696_v27 }
  0xdd   :  { %4876 = vmatprep.subr.bf16.mxu1 %v6497_v53  ;;  %v7201_v53 = vsub.f32 %v185_v1, %v7188_v47  ;;  %v9017_v1 = vand.u32 4294901760, %v6718_v12 }
  0xde   :  { %v2154_v31 = vsub.f32 %v6696_v27, %v9012_v26  ;;  %v2148_v17 = vand.u32 4294901760, %v2147_v30 }
  0xdf   :  { %4842 = vmatpush3.bf16.msra.mxu0 %v9006_v29  ;;  %v9013_v29 = vand.u32 4294901760, %v6708_v51  ;;  %v2161_v48 = vsub.f32 %v6718_v12, %v9017_v1  ;;  %v9022_v1 = vand.u32 4294901760, %v6758_v6 }
  0xe0   :  { %4844 = vmatprep.subr.bf16.mxu0 %v9007_v11  ;;  %4878 = vmatpush3.bf16.msra.mxu1 %v6510_v32  ;;  %v9014_v32 = vand.u32 4294901760, %v6713_v15  ;;  %v2155_v26 = vand.u32 4294901760, %v2154_v31  ;;  %v9021_v31 = vld [vmem:[#allocation53_spill] sm:$0xff] }
  0xe1   :  { %4880 = vmatprep.subr.bf16.mxu1 %v6516_v25  ;;  %v2035_v11 = vsub.f32 %v6708_v51, %v9013_v29  ;;  %v9015_v25 = vld [vmem:[#allocation51_spill] sm:$0xff]  ;;  %v9018_v29 = vand.u32 4294901760, %v6735_v4 }
  0xe3   :  { %4846 = vmatpush3.bf16.msra.mxu0 %v9009_v16  ;;  %v2042_v16 = vsub.f32 %v6713_v15, %v9014_v32  ;;  %v2168_v24 = vsub.f32 %v6735_v4, %v9018_v29  ;;  %v2036_v21 = vand.u32 4294901760, %v2035_v11  ;;  %v2175_v29 = vsub.f32 %v6758_v6, %v9022_v1  ;;  %v9031_v1 = vld [vmem:[#allocation9_spill] sm:$0xff] }
  0xe4   :  { %4848 = vmatprep.subr.bf16.mxu0 %v9010_v3  ;;  %4882 = vmatpush3.bf16.msra.mxu1 %v6540_v23  ;;  %v9016_v3 = vld [vmem:[#allocation52_spill] sm:$0xff]  ;;  %v9019_v23 = vand.u32 4294901760, %v6740_v57  ;;  %v9023_v32 = vand.u32 4294901760, %v6778_v35  ;;  %v9032_v6 = vand.u32 4294901760, %v9031_v1  ;;  %v9040_v1 = vand.u32 4294901760, %v6803_v41 }
  0xe5   :  { %4884 = vmatprep.subr.bf16.mxu1 %v6555_v8  ;;  %v9020_v8 = vand.u32 4294901760, %v6753_v36  ;;  %v2176_v56 = vand.u32 4294901760, %v2175_v29 }
  0xe6   :  { %v2182_v11 = vsub.f32 %v6778_v35, %v9023_v32  ;;  %v9033_v32 = vand.u32 4294901760, %v7201_v53 }
  0xe7   :  { %4850 = vmatpush3.bf16.msra.mxu0 %v9015_v25  ;;  %v2043_v25 = vand.u32 4294901760, %v2042_v16  ;;  %v2056_v30 = vsub.f32 %v6753_v36, %v9020_v8  ;;  %v9024_v16 = vld [vmem:[#allocation54_spill] sm:$0xff]  ;;  %v4923_v8 = vpack.c.bf16 %v2155_v26, %v2148_v17  ;;  %v7246_v36 = vpack.c.bf16 %v9032_v6, %v9030_v14 }
  0xe8   :  { %4852 = vmatprep.subr.bf16.mxu0 %v9016_v3  ;;  %v2049_v3 = vsub.f32 %v6740_v57, %v9019_v23  ;;  %4886 = vmatpush3.bf16.msra.mxu1 %v6561_v44  ;;  %v9026_v23 = vand.u32 4294901760, %v9025_v37  ;;  %v2162_v44 = vand.u32 4294901760, %v2161_v48  ;;  %v9034_v37 = vld [vmem:[#allocation20_spill] sm:$0xff]  ;;  %v2183_v6 = vand.u32 4294901760, %v2182_v11 }
  0xe9   :  { %4888 = vmatprep.subr.bf16.mxu1 %v8983_v45  ;;  %v9035_v35 = vand.u32 4294901760, %v9034_v37  ;;  %v4925_v45 = vpack.c.bf16 %v2043_v25, %v2036_v21  ;;  %v2057_v48 = vand.u32 4294901760, %v2056_v30  ;;  %v9039_v14 = vand.u32 4294901760, %v6791_v33  ;;  %v9043_v30 = vld [vmem:[#allocation22_spill] sm:$0xff]  ;;  %v9045_v11 = vld [vmem:[#allocation32_spill] sm:$0xff] }
  0xea   :  { %v7239_v46 = vpack.c.bf16 %v9028_v10, %v9026_v23  ;;  %v9037_v10 = vand.u32 4294901760, %v9036_v63  ;;  %v2050_v17 = vand.u32 4294901760, %v2049_v3  ;;  %v9041_v21 = vand.u32 4294901760, %v6808_v60 }
  0xeb   :  { %4854 = vmatpush3.bf16.msra.mxu0 %v9021_v31  ;;  %v2169_v31 = vand.u32 4294901760, %v2168_v24  ;;  %v9038_v24 = vld [vmem:[#allocation55_spill] sm:$0xff]  ;;  %v2063_v26 = vsub.f32 %v6791_v33, %v9039_v14  ;;  %v9044_v29 = vand.u32 4294901760, %v9043_v30  ;;  %v9046_v37 = vand.u32 4294901760, %v9045_v11 }
  0xec   :  { %4856 = vmatprep.subr.bf16.mxu0 %v9024_v16  ;;  %v2018_v16 = vsub.f32 %v7201_v53, %v9033_v32  ;;  %v7255_v23 = vpack.c.bf16 %v9037_v10, %v9035_v35  ;;  %4890 = vmatpush3.bf16.msra.mxu1 %v8986_v22  ;;  %v2070_v32 = vsub.f32 %v6803_v41, %v9040_v1  ;;  %v9042_v22 = vand.u32 4294901760, %v6829_v7 }
  0xed   :  { %4924 = vmatprep.subr.bf16.mxu1 %v4923_v8  ;;  %v4927_v35 = vpack.c.bf16 %v2169_v31, %v2162_v44  ;;  %v2189_v25 = vsub.f32 %v6808_v60, %v9041_v21  ;;  %v7276_v63 = vpack.c.bf16 %v9046_v37, %v9044_v29  ;;  %v9048_v8 = vld [vmem:[#allocation23_spill] sm:$0xff]  ;;  %v9050_v31 = vld [vmem:[#allocation24_spill] sm:$0xff]  ;;  %v9052_v21 = vand.u32 4294901760, %v6842_v40 }
  0xee   :  { %v2196_v3 = vsub.f32 %v6829_v7, %v9042_v22  ;;  %v2019_v10 = vand.u32 4294901760, %v2018_v16  ;;  %v9049_v44 = vand.u32 4294901760, %v9048_v8  ;;  %v9051_v14 = vand.u32 4294901760, %v9050_v31 }
  0xef   :  { %4858 = vmatpush3.bf16.msra.mxu0 %v9038_v24  ;;  %v9047_v24 = vld [vmem:[#allocation16_spill] sm:$0xff]  ;;  %v2077_v22 = vsub.f32 %v6842_v40, %v9052_v21  ;;  %v9053_v30 = vand.u32 4294901760, %v6847_v55  ;;  %v4929_v16 = vpack.c.bf16 %v2057_v48, %v2050_v17  ;;  %v4931_v11 = vpack.c.bf16 %v2183_v6, %v2176_v56 }
  0xf0   :  { %4892 = vmatprep.subr.bf16.mxu0 %v7239_v46  ;;  %1914 = vmatmul.mubr.f32.vlgmr.msra.gmra.mrb[10].mxu1 %v9047_v24  ;;  %v7284_v1 = vpack.c.bf16 %v9051_v14, %v9049_v44  ;;  %v2064_v37 = vand.u32 4294901760, %v2063_v26  ;;  %v2190_v8 = vand.u32 4294901760, %v2189_v25  ;;  %v2197_v44 = vand.u32 4294901760, %v2196_v3 }
  0xf1   :  { %v2084_v29 = vsub.f32 %v6847_v55, %v9053_v30  ;;  %4926 = vmatpush3.bf16.msra.mxu1 %v4925_v45  ;;  %v9054_v31 = vand.u32 4294901760, %v6864_v19  ;;  %v9055_v21 = vand.u32 4294901760, %v6891_v39  ;;  %v9056_v55 = vld [vmem:[#allocation26_spill] sm:$0xff]  ;;  %2256 = vmatprep.mubr.f32.mxu1 %v7188_v47  ;;  %v2078_v56 = vand.u32 4294901760, %v2077_v22  ;;  %v9070_v47 = vld [vmem:[#allocation33_spill] sm:$0xff] }
  0xf2   :  { %1810 = vmatmul.mubr.f32.vlgmr.msra.gmra.mrb[10].mxu0 %v9047_v24  ;;  %v2071_v24 = vand.u32 4294901760, %v2070_v32  ;;  %4928 = vmatprep.subr.bf16.mxu1 %v4927_v35  ;;  %v9057_v40 = vand.u32 4294901760, %v9056_v55  ;;  %v9058_v45 = vld [vmem:[#allocation30_spill] sm:$0xff]  ;;  %v9060_v26 = vand.u32 4294901760, %v6897_v50  ;;  %v9061_v35 = vand.u32 4294901760, %v6907_v20 }
  0xf3   :  { %4894 = vmatpush3.bf16.msra.mxu0 %v7246_v36  ;;  %v2203_v14 = vsub.f32 %v6864_v19, %v9054_v31  ;;  %v2210_v30 = vsub.f32 %v6891_v39, %v9055_v21  ;;  %v9059_v17 = vand.u32 4294901760, %v9058_v45  ;;  %2020 = vmatprep.mubr.f32.mxu0 %v2019_v10  ;;  %v2085_v6 = vand.u32 4294901760, %v2084_v29  ;;  %v9064_v29 = vld [vmem:[#allocation31_spill] sm:$0xff]  ;;  %v9066_v21 = vld [vmem:[#allocation17_spill] sm:$0xff] }
  0xf4   :  { %4896 = vmatprep.subr.bf16.mxu0 %v7255_v23  ;;  %v2091_v32 = vsub.f32 %v6897_v50, %v9060_v26  ;;  %v2098_v25 = vsub.f32 %v6907_v20, %v9061_v35  ;;  %v4933_v55 = vpack.c.bf16 %v2071_v24, %v2064_v37  ;;  %v9063_v10 = vand.u32 4294901760, %v6944_v42  ;;  %v9068_v24 = vld [vmem:[#allocation18_spill] sm:$0xff] }
  0xf5   :  { %v7304_v48 = vpack.c.bf16 %v9059_v17, %v9057_v40  ;;  %4930 = vmatpush3.bf16.msra.mxu1 %v4929_v16  ;;  %v9062_v40 = vand.u32 4294901760, %v6939_v62  ;;  %v9065_v31 = vand.u32 4294901760, %v9064_v29  ;;  %v9067_v45 = vand.u32 4294901760, %v9066_v21  ;;  %v9072_v20 = vld [vmem:[#allocation34_spill] sm:$0xff] }
  0xf6   :  { %v2224_v22 = vsub.f32 %v6944_v42, %v9063_v10  ;;  %4932 = vmatprep.subr.bf16.mxu1 %v4931_v11  ;;  %v4935_v26 = vpack.c.bf16 %v2197_v44, %v2190_v8  ;;  %v2204_v16 = vand.u32 4294901760, %v2203_v14  ;;  %v2211_v37 = vand.u32 4294901760, %v2210_v30  ;;  %v9074_v42 = vld [vmem:[#allocation5_spill] sm:$0xff] }
  0xf7   :  { %4898 = vmatpush3.bf16.msra.mxu0 %v7276_v63  ;;  %v2217_v3 = vsub.f32 %v6939_v62, %v9062_v40  ;;  %v7325_v17 = vpack.c.bf16 %v9067_v45, %v9065_v31  ;;  %v9069_v35 = vand.u32 4294901760, %v9068_v24  ;;  %v9071_v40 = vand.u32 4294901760, %v9070_v47  ;;  %v9085_v24 = vld [vmem:[#allocation58_spill] sm:$0xff] }
  0xf8   :  { %4900 = vmatprep.subr.bf16.mxu0 %v7284_v1  ;;  %v9073_v10 = vand.u32 4294901760, %v9072_v20  ;;  %v9075_v50 = vand.u32 4294901760, %v9074_v42  ;;  %v4937_v29 = vpack.c.bf16 %v2085_v6, %v2078_v56  ;;  %v2092_v21 = vand.u32 4294901760, %v2091_v32 }
  0xf9   :  { %v7331_v62 = vpack.c.bf16 %v9071_v40, %v9069_v35  ;;  %v2099_v31 = vand.u32 4294901760, %v2098_v25  ;;  %4934 = vmatpush3.bf16.msra.mxu1 %v4933_v55  ;;  %v2218_v11 = vand.u32 4294901760, %v2217_v3  ;;  %v2225_v8 = vand.u32 4294901760, %v2224_v22  ;;  %v9081_v25 = vld [vmem:[#allocation37_spill] sm:$0xff] }
  0xfa   :  { %v7337_v39 = vpack.c.bf16 %v9075_v50, %v9073_v10  ;;  %v9076_v44 = vand.u32 4294901760, %v6955_v5  ;;  %v9077_v14 = vand.u32 4294901760, %v6967_v28  ;;  %4936 = vmatprep.subr.bf16.mxu1 %v4935_v26  ;;  %v4939_v50 = vpack.c.bf16 %v2211_v37, %v2204_v16  ;;  %v9083_v3 = vld [vmem:[#allocation57_spill] sm:$0xff]  ;;  %v9087_v16 = vld [vmem:[#allocation59_spill] sm:$0xff] }
  0xfb   :  { %4902 = vmatpush3.bf16.msra.mxu0 %v7304_v48  ;;  %v9078_v42 = vand.u32 4294901760, %v6975_v38  ;;  %v9079_v56 = vand.u32 4294901760, %v6980_v34  ;;  %v7354_v32 = vand.u32 4294901760, %v7176_v49  ;;  %v9082_v55 = vand.u32 4294901760, %v9081_v25 }
  0xfc   :  { %v2105_v47 = vsub.f32 %v6955_v5, %v9076_v44  ;;  %v2112_v20 = vsub.f32 %v6967_v28, %v9077_v14  ;;  %4904 = vmatprep.subr.bf16.mxu0 %v7325_v17  ;;  %v9084_v22 = vand.u32 4294901760, %v9083_v3  ;;  %v9086_v26 = vand.u32 4294901760, %v9085_v24 }
  0xfd   :  { %v2231_v30 = vsub.f32 %v6975_v38, %v9078_v42  ;;  %v2238_v6 = vsub.f32 %v6980_v34, %v9079_v56  ;;  %9080 = vst [vmem:[#allocation40_spill] sm:$0xff] %v7354_v32  ;;  %v9088_v37 = vand.u32 4294901760, %v9087_v16  ;;  %v9089_v40 = vand.u32 4294901760, %v6985_v58  ;;  %4938 = vmatpush3.bf16.msra.mxu1 %v4937_v29 }
  0xfe   :  { %v7360_v45 = vpack.c.bf16 %v9084_v22, %v9082_v55  ;;  %v9090_v44 = vand.u32 4294901760, %v6990_v59  ;;  %v4941_v42 = vpack.c.bf16 %v2099_v31, %v2092_v21  ;;  %v4943_v56 = vpack.c.bf16 %v2225_v8, %v2218_v11  ;;  %4940 = vmatprep.subr.bf16.mxu1 %v4939_v50 }
  0xff   :  { %v7366_v35 = vpack.c.bf16 %v9088_v37, %v9086_v26  ;;  %v2119_v10 = vsub.f32 %v6985_v58, %v9089_v40  ;;  %4906 = vmatpush3.bf16.msra.mxu0 %v7331_v62  ;;  %v2106_v25 = vand.u32 4294901760, %v2105_v47  ;;  %v2113_v55 = vand.u32 4294901760, %v2112_v20  ;;  %v9099_v40 = vld [vmem:[#allocation62_spill] sm:$0xff] }
 0x100   :  { %v2126_v14 = vsub.f32 %v6990_v59, %v9090_v44  ;;  %4908 = vmatprep.subr.bf16.mxu0 %v7337_v39  ;;  %v2232_v3 = vand.u32 4294901760, %v2231_v30  ;;  %v2239_v22 = vand.u32 4294901760, %v2238_v6  ;;  %v9091_v24 = vand.u32 4294901760, %v7003_v54 }
 0x101   :  { %v9092_v16 = vand.u32 4294901760, %v7008_v13  ;;  %v7384_v29 = vsub.f32 %v7176_v49, %v7354_v32  ;;  %v9093_v21 = vand.u32 4294901760, %v6837_v43  ;;  %v9094_v31 = vand.u32 4294901760, %v6854_v2  ;;  %4942 = vmatpush3.bf16.msra.mxu1 %v4941_v42  ;;  %v7402_v43 = vld [vmem:[%s8351_s2 + $0x380] sm:$0xff]  ;;  %v7407_v2 = vld [vmem:[%s8351_s2 + $0x388] sm:$0xff] }
 0x102   :  { %v2245_v26 = vsub.f32 %v7003_v54, %v9091_v24  ;;  %v2120_v8 = vand.u32 4294901760, %v2119_v10  ;;  %v2127_v47 = vand.u32 4294901760, %v2126_v14  ;;  %v4945_v20 = vpack.c.bf16 %v2113_v55, %v2106_v25  ;;  %9097 = vst [vmem:[#allocation11_spill] sm:$0xff] %v7402_v43  ;;  %9098 = vst [vmem:[#allocation7_spill] sm:$0xff] %v7407_v2  ;;  %4944 = vmatprep.subr.bf16.mxu1 %v4943_v56  ;;  %v7419_v24 = vld [vmem:[%s8351_s2 + $0x300] sm:$0xff] }
 0x103   :  { %v2252_v37 = vsub.f32 %v7008_v13, %v9092_v16  ;;  %v7390_v11 = vpack.c.bf16 %v9094_v31, %v9093_v21  ;;  %4910 = vmatpush3.bf16.msra.mxu0 %v7360_v45  ;;  %v9095_v50 = vand.u32 4294901760, %v7019_v0  ;;  %v9096_v6 = vand.u32 4294901760, %v7024_v18  ;;  %9102 = vst [vmem:[#allocation41_spill] sm:$0xff] %v7419_v24  ;;  %v7424_v16 = vld [vmem:[%s8351_s2 + $0x308] sm:$0xff]  ;;  %v9104_v21 = vld [vmem:[#allocation63_spill] sm:$0xff] }
 0x104   :  { %4912 = vmatprep.subr.bf16.mxu0 %v7366_v35  ;;  %v9100_v10 = vand.u32 4294901760, %v9099_v40  ;;  %v9101_v44 = vand.u32 4294901760, %v6872_v61  ;;  %v4947_v42 = vpack.c.bf16 %v2239_v22, %v2232_v3  ;;  %v2246_v25 = vand.u32 4294901760, %v2245_v26  ;;  %9103 = vst [vmem:[#allocation12_spill] sm:$0xff] %v7424_v16  ;;  %v9107_v3 = vld [vmem:[#allocation67_spill] sm:$0xff]  ;;  %v9109_v26 = vld [vmem:[#allocation68_spill] sm:$0xff] }
 0x105   :  { %v2133_v30 = vsub.f32 %v7019_v0, %v9095_v50  ;;  %v2140_v49 = vsub.f32 %v7024_v18, %v9096_v6  ;;  %v2253_v55 = vand.u32 4294901760, %v2252_v37  ;;  %v9105_v31 = vand.u32 4294901760, %v9104_v21  ;;  %v7444_v21 = vld [vmem:[%s8351_s2 + $0x390] sm:$0xff]  ;;  %4946 = vmatpush3.bf16.msra.mxu1 %v4945_v20 }
 0x106   :  { %v7414_v14 = vpack.c.bf16 %v9101_v44, %v9100_v10  ;;  %v9106_v61 = vand.u32 4294901760, %v6882_v9  ;;  %v8516_v56 = vand.u32 4294901760, %v7384_v29  ;;  %v9108_v22 = vand.u32 4294901760, %v9107_v3  ;;  %9111 = vst [vmem:[#allocation42_spill] sm:$0xff] %v7444_v21  ;;  %v7449_v9 = vld [vmem:[%s8351_s2 + $0x398] sm:$0xff]  ;;  %v7457_v3 = vld [vmem:[%s8351_s2 + $0x310] sm:$0xff]  ;;  %4948 = vmatprep.subr.bf16.mxu1 %v4947_v42 }
 0x107   :  { %v9110_v37 = vand.u32 4294901760, %v9109_v26  ;;  %v4949_v40 = vpack.c.bf16 %v2127_v47, %v2120_v8  ;;  %9112 = vst [vmem:[#allocation56_spill] sm:$0xff] %v7449_v9  ;;  %4914 = vmatpush3.bf16.msra.mxu0 %v7390_v11  ;;  %9113 = vst [vmem:[#allocation36_spill] sm:$0xff] %v7457_v3  ;;  %v9115_v26 = vld [vmem:[#allocation69_spill] sm:$0xff]  ;;  %v4955_v47 = vpack.c.bf16 %v6696_v27, %v6675_v52 }
 0x108   :  { %v7430_v50 = vpack.c.bf16 %v9106_v61, %v9105_v31  ;;  %v2134_v31 = vand.u32 4294901760, %v2133_v30  ;;  %v2141_v61 = vand.u32 4294901760, %v2140_v49  ;;  %4916 = vmatprep.subr.bf16.mxu0 %v7414_v14  ;;  %v9116_v20 = vand.u32 4294901760, %v9115_v26  ;;  %v9117_v30 = vld [vmem:[#allocation70_spill] sm:$0xff]  ;;  %v7476_v44 = vld [vmem:[%s8351_s2 + $0x3a0] sm:$0xff] }
 0x109   :  { %v7437_v6 = vpack.c.bf16 %v9110_v37, %v9108_v22  ;;  %v7462_v22 = vld [vmem:[%s8351_s2 + $0x318] sm:$0xff]  ;;  %v9118_v49 = vand.u32 4294901760, %v9117_v30  ;;  %v4951_v8 = vpack.c.bf16 %v2253_v55, %v2246_v25  ;;  %9119 = vst [vmem:[#allocation25_spill] sm:$0xff] %v7476_v44  ;;  %v2024_v10 = vsub.f32 %v7384_v29, %v8516_v56  ;;  %v7488_v27 = vld [vmem:[%s8351_s2 + $0x3a8] sm:$0xff]  ;;  %v7493_v52 = vld [vmem:[%s8351_s2 + $0x320] sm:$0xff]  ;;  %4950 = vmatpush3.bf16.msra.mxu1 %v4949_v40 }
 0x10a   :  { %9114 = vst [vmem:[#allocation43_spill] sm:$0xff] %v7462_v22  ;;  %v4957_v26 = vpack.c.bf16 %v6713_v15, %v6708_v51  ;;  %9120 = vst [vmem:[#allocation44_spill] sm:$0xff] %v7488_v27  ;;  %v9122_v25 = vand.u32 4294901760, %v7402_v43  ;;  %v9123_v15 = vand.u32 4294901760, %v7407_v2  ;;  %v7510_v56 = vld [vmem:[%s8351_s2 + $0x328] sm:$0xff]  ;;  %v4953_v42 = vpack.c.bf16 %v2141_v61, %v2134_v31  ;;  %v9128_v40 = vld [vmem:[#allocation35_spill] sm:$0xff] }
 0x10b   :  { %v7469_v37 = vpack.c.bf16 %v9118_v49, %v9116_v20  ;;  %9121 = vst [vmem:[#allocation27_spill] sm:$0xff] %v7493_v52  ;;  %9124 = vst [vmem:[#allocation45_spill] sm:$0xff] %v7510_v56  ;;  %4918 = vmatpush3.bf16.msra.mxu0 %v7430_v50  ;;  %4952 = vmatprep.subr.bf16.mxu1 %v4951_v8  ;;  %v4961_v31 = vpack.c.bf16 %v9128_v40, %v6740_v57  ;;  %v9130_v49 = vand.u32 4294901760, %v7444_v21  ;;  %v7550_v40 = vld [vmem:[%s8351_s2 + $0x3b8] sm:$0xff] }
 0x10c   :  { %v7498_v55 = vsub.f32 %v7402_v43, %v9122_v25  ;;  %v7503_v51 = vsub.f32 %v7407_v2, %v9123_v15  ;;  %v9125_v25 = vand.u32 4294901760, %v7419_v24  ;;  %v9126_v15 = vand.u32 4294901760, %v7424_v16  ;;  %4920 = vmatprep.subr.bf16.mxu0 %v7437_v6  ;;  %9133 = vst [vmem:[#allocation47_spill] sm:$0xff] %v7550_v40 }
 0x10d   :  { %v4959_v2 = vpack.c.bf16 %v6735_v4, %v6718_v12  ;;  %v7539_v8 = vsub.f32 %v7444_v21, %v9130_v49  ;;  %v9132_v12 = vand.u32 4294901760, %v7449_v9  ;;  %v9135_v49 = vand.u32 4294901760, %v7462_v22  ;;  %4954 = vmatpush3.bf16.msra.mxu1 %v4953_v42  ;;  %v7581_v42 = vld [vmem:[%s8351_s2 + $0x338] sm:$0xff] }
 0x10e   :  { %v7516_v20 = vsub.f32 %v7419_v24, %v9125_v25  ;;  %v7521_v30 = vsub.f32 %v7424_v16, %v9126_v15  ;;  %v7534_v15 = vld [vmem:[%s8351_s2 + $0x3b0] sm:$0xff]  ;;  %v2025_v16 = vand.u32 4294901760, %v2024_v10  ;;  %v9134_v25 = vand.u32 4294901760, %v7457_v3  ;;  %9138 = vst [vmem:[#allocation49_spill] sm:$0xff] %v7581_v42  ;;  %4988 = vmatprep.subr.bf16.mxu1 %v7239_v46 }
 0x10f   :  { %9129 = vst [vmem:[#allocation46_spill] sm:$0xff] %v7534_v15  ;;  %9131 = vst [vmem:[#allocation10_spill] sm:$0xff] %v7539_v8  ;;  %v7544_v4 = vsub.f32 %v7449_v9, %v9132_v12  ;;  %v7560_v61 = vsub.f32 %v7462_v22, %v9135_v49  ;;  %v8527_v12 = vand.u32 4294901760, %v7498_v55  ;;  %4922 = vmatpush3.bf16.msra.mxu0 %v7469_v37  ;;  %v9136_v57 = vand.u32 4294901760, %v7476_v44  ;;  %v7576_v49 = vld [vmem:[%s8351_s2 + $0x330] sm:$0xff]  ;;  %v7616_v9 = vld [vmem:[%s8351_s2 + $0x3c8] sm:$0xff] }
 0x110   :  { %9127 = vst [vmem:[#allocation6_spill] sm:$0xff] %v7521_v30  ;;  %v7555_v10 = vsub.f32 %v7457_v3, %v9134_v25  ;;  %9137 = vst [vmem:[#allocation48_spill] sm:$0xff] %v7576_v49  ;;  %4956 = vmatprep.subr.bf16.mxu0 %v4955_v47  ;;  %v9140_v24 = vand.u32 4294901760, %v7493_v52  ;;  %v9144_v47 = vand.u32 4294901760, %v7510_v56  ;;  %2258 = vmatmul.mubr.f32.vlgmr.msra.gmra.mrb[12].mxu1 %v7354_v32 }
 0x111   :  { %v7568_v21 = vsub.f32 %v7476_v44, %v9136_v57  ;;  %v9139_v57 = vand.u32 4294901760, %v7488_v27  ;;  %v9142_v44 = vand.u32 4294901760, %v7503_v51  ;;  %9147 = vst [vmem:[#allocation54_spill] sm:$0xff] %v7616_v9  ;;  %4990 = vmatpush3.bf16.msra.mxu1 %v7246_v36 }
 0x112   :  { %v7592_v3 = vsub.f32 %v7493_v52, %v9140_v24  ;;  %v7604_v43 = vsub.f32 %v7510_v56, %v9144_v47  ;;  %v7611_v24 = vld [vmem:[%s8351_s2 + $0x3c0] sm:$0xff]  ;;  %2026 = vmatmul.mubr.f32.vlgmr.msra.gmra.mrb[12].mxu0 %v2025_v16  ;;  %v9153_v16 = vld [vmem:[#allocation38_spill] sm:$0xff]  ;;  %4992 = vmatprep.subr.bf16.mxu1 %v7255_v23 }
 0x113   :  { %v7587_v25 = vsub.f32 %v7488_v27, %v9139_v57  ;;  %v7599_v22 = vpack.c.bf16 %v9142_v44, %v8527_v12  ;;  %9146 = vst [vmem:[#allocation53_spill] sm:$0xff] %v7611_v24  ;;  %v9148_v44 = vand.u32 4294901760, %v7516_v20  ;;  %v9149_v12 = vand.u32 4294901760, %v7521_v30  ;;  %v7632_v52 = vld [vmem:[%s8351_s2 + $0x340] sm:$0xff]  ;;  %4958 = vmatpush3.bf16.msra.mxu0 %v4957_v26  ;;  %2393 = vmatprep.mubr.f32.mxu0 %v7201_v53  ;;  %v7677_v30 = vld [vmem:[%s8351_s2 + $0x3d0] sm:$0xff] }
 0x114   :  { %9141 = vst [vmem:[#allocation50_spill] sm:$0xff] %v7592_v3  ;;  %9145 = vst [vmem:[#allocation52_spill] sm:$0xff] %v7604_v43  ;;  %v9155_v57 = vand.u32 4294901760, %v7534_v15  ;;  %4960 = vmatprep.subr.bf16.mxu0 %v4959_v2  ;;  %v9160_v26 = vand.u32 4294901760, %v7550_v40  ;;  %v9165_v2 = vand.u32 4294901760, %v7201_v53  ;;  %v9169_v53 = vand.u32 4294901760, %v7581_v42 }
 0x115   :  { %9143 = vst [vmem:[#allocation51_spill] sm:$0xff] %v7599_v22  ;;  %v7622_v47 = vpack.c.bf16 %v9149_v12, %v9148_v44  ;;  %9151 = vst [vmem:[#allocation15_spill] sm:$0xff] %v7632_v52  ;;  %v7637_v12 = vld [vmem:[%s8351_s2 + $0x348] sm:$0xff]  ;;  %v9154_v44 = vld [vmem:[#allocation39_spill] sm:$0xff]  ;;  %v9157_v22 = vand.u32 4294901760, %v7539_v8  ;;  %4994 = vmatpush3.bf16.msra.mxu1 %v7276_v63 }
 0x116   :  { %9152 = vst [vmem:[#allocation8_spill] sm:$0xff] %v7637_v12  ;;  %v4963_v27 = vpack.c.bf16 %v9154_v44, %v9153_v16  ;;  %v7645_v56 = vsub.f32 %v7534_v15, %v9155_v57  ;;  %v7657_v16 = vsub.f32 %v7550_v40, %v9160_v26  ;;  %v9162_v57 = vand.u32 4294901760, %v7555_v10  ;;  %2500 = vmatprep.mubr.f32.mxu1 %v9165_v2  ;;  %v9194_v40 = vld [vmem:[#allocation65_spill] sm:$0xff] }
 0x117   :  { %9150 = vst [vmem:[#allocation28_spill] sm:$0xff] %v7622_v47  ;;  %v9158_v47 = vand.u32 4294901760, %v7544_v4  ;;  %v9163_v15 = vand.u32 4294901760, %v7560_v61  ;;  %9166 = vst [vmem:[#allocation22_spill] sm:$0xff] %v7677_v30  ;;  %v7687_v2 = vsub.f32 %v7581_v42, %v9169_v53  ;;  %4962 = vmatpush3.bf16.msra.mxu0 %v4961_v31  ;;  %v4965_v44 = vpack.c.bf16 %v6803_v41, %v6791_v33  ;;  %v7704_v53 = vld [vmem:[%s8351_s2 + $0x350] sm:$0xff] }
 0x118   :  { %9156 = vst [vmem:[#allocation9_spill] sm:$0xff] %v7645_v56  ;;  %9161 = vst [vmem:[#allocation21_spill] sm:$0xff] %v7657_v16  ;;  %v9173_v31 = vand.u32 4294901760, %v7568_v21  ;;  %v9174_v26 = vand.u32 4294901760, %v7587_v25  ;;  %4964 = vmatprep.subr.bf16.mxu0 %v4963_v27  ;;  %4996 = vmatprep.subr.bf16.mxu1 %v7284_v1  ;;  %v9181_v27 = vand.u32 4294901760, %v7592_v3 }
 0x119   :  { %v7651_v32 = vpack.c.bf16 %v9158_v47, %v9157_v22  ;;  %v7665_v8 = vpack.c.bf16 %v9163_v15, %v9162_v57  ;;  %v9167_v15 = vand.u32 4294901760, %v7576_v49  ;;  %9170 = vst [vmem:[#allocation16_spill] sm:$0xff] %v7687_v2  ;;  %v4967_v22 = vpack.c.bf16 %v6829_v7, %v6808_v60  ;;  %9172 = vst [vmem:[#allocation24_spill] sm:$0xff] %v7704_v53 }
 0x11a   :  { %v7710_v41 = vpack.c.bf16 %v9174_v26, %v9173_v31  ;;  %v9176_v60 = vand.u32 4294901760, %v7611_v24  ;;  %v9178_v7 = vand.u32 4294901760, %v7616_v9  ;;  %v7727_v26 = vld [vmem:[%s8351_s2 + $0x358] sm:$0xff]  ;;  %v9182_v31 = vand.u32 4294901760, %v7604_v43  ;;  %4998 = vmatpush3.bf16.msra.mxu1 %v7304_v48  ;;  %v9195_v43 = vld [vmem:[#allocation66_spill] sm:$0xff] }
 0x11b   :  { %9159 = vst [vmem:[#allocation20_spill] sm:$0xff] %v7651_v32  ;;  %9164 = vst [vmem:[#allocation55_spill] sm:$0xff] %v7665_v8  ;;  %v7682_v57 = vsub.f32 %v7576_v49, %v9167_v15  ;;  %v7699_v15 = vld [vmem:[%s8351_s2 + $0x3d8] sm:$0xff]  ;;  %4966 = vmatpush3.bf16.msra.mxu0 %v4965_v44  ;;  %v4973_v44 = vpack.c.bf16 %v9195_v43, %v9194_v40  ;;  %5000 = vmatprep.subr.bf16.mxu1 %v7325_v17  ;;  %v9201_v43 = vand.u32 4294901760, %v7687_v2 }
 0x11c   :  { %9171 = vst [vmem:[#allocation23_spill] sm:$0xff] %v7699_v15  ;;  %9175 = vst [vmem:[#allocation26_spill] sm:$0xff] %v7710_v41  ;;  %v7716_v33 = vsub.f32 %v7611_v24, %v9176_v60  ;;  %v7721_v47 = vsub.f32 %v7616_v9, %v9178_v7  ;;  %v7733_v41 = vpack.c.bf16 %v9182_v31, %v9181_v27  ;;  %v9184_v60 = vand.u32 4294901760, %v7632_v52  ;;  %v9188_v24 = vld [vmem:[#allocation60_spill] sm:$0xff]  ;;  %v9189_v9 = vld [vmem:[#allocation61_spill] sm:$0xff] }
 0x11d   :  { %9168 = vst [vmem:[#allocation32_spill] sm:$0xff] %v7682_v57  ;;  %9180 = vst [vmem:[#allocation17_spill] sm:$0xff] %v7727_v26  ;;  %v9186_v7 = vand.u32 4294901760, %v7637_v12  ;;  %v4969_v42 = vpack.c.bf16 %v9189_v9, %v9188_v24  ;;  %v9190_v49 = vld [vmem:[#allocation64_spill] sm:$0xff]  ;;  %v9191_v27 = vand.u32 4294901760, %v7645_v56  ;;  %4968 = vmatprep.subr.bf16.mxu0 %v4967_v22  ;;  %v9196_v9 = vand.u32 4294901760, %v7677_v30 }
 0x11e   :  { %9177 = vst [vmem:[#allocation30_spill] sm:$0xff] %v7716_v33  ;;  %9179 = vst [vmem:[#allocation31_spill] sm:$0xff] %v7721_v47  ;;  %v7738_v32 = vsub.f32 %v7632_v52, %v9184_v60  ;;  %v7754_v60 = vld [vmem:[%s8351_s2 + $0x3e0] sm:$0xff]  ;;  %v7789_v24 = vld [vmem:[%s8351_s2 + $0x368] sm:$0xff]  ;;  %5002 = vmatpush3.bf16.msra.mxu1 %v7331_v62 }
 0x11f   :  { %9183 = vst [vmem:[#allocation18_spill] sm:$0xff] %v7733_v41  ;;  %v7743_v8 = vsub.f32 %v7637_v12, %v9186_v7  ;;  %v7759_v7 = vld [vmem:[%s8351_s2 + $0x3e8] sm:$0xff]  ;;  %v4971_v41 = vpack.c.bf16 %v9190_v49, %v6864_v19  ;;  %v9192_v12 = vand.u32 4294901760, %v7657_v16  ;;  %v7779_v19 = vsub.f32 %v7677_v30, %v9196_v9  ;;  %v7784_v49 = vld [vmem:[%s8351_s2 + $0x360] sm:$0xff]  ;;  %9199 = vst [vmem:[#allocation58_spill] sm:$0xff] %v7789_v24 }
 0x120   :  { %9185 = vst [vmem:[#allocation33_spill] sm:$0xff] %v7738_v32  ;;  %9198 = vst [vmem:[#allocation57_spill] sm:$0xff] %v7784_v49  ;;  %v8560_v9 = vand.u32 4294901760, %v7716_v33  ;;  %v9205_v16 = vand.u32 4294901760, %v7704_v53  ;;  %v7821_v22 = vld [vmem:[%s8351_s2 + $0x3f8] sm:$0xff]  ;;  %4970 = vmatpush3.bf16.msra.mxu0 %v4969_v42  ;;  %v7834_v31 = vld [vmem:[%s8351_s2 + $0x370] sm:$0xff]  ;;  %5004 = vmatprep.subr.bf16.mxu1 %v7337_v39 }
 0x121   :  { %9187 = vst [vmem:[#allocation34_spill] sm:$0xff] %v7743_v8  ;;  %v7771_v52 = vpack.c.bf16 %v9192_v12, %v9191_v27  ;;  %9197 = vst [vmem:[#allocation37_spill] sm:$0xff] %v7779_v19  ;;  %v9200_v12 = vand.u32 4294901760, %v7682_v57  ;;  %v7816_v27 = vld [vmem:[%s8351_s2 + $0x3f0] sm:$0xff]  ;;  %v7839_v42 = vld [vmem:[%s8351_s2 + $0x378] sm:$0xff]  ;;  %4972 = vmatprep.subr.bf16.mxu0 %v4971_v41  ;;  %v9214_v2 = vand.u32 4294901760, %v7743_v8 }
 0x122   :  { %v7809_v57 = vsub.f32 %v7704_v53, %v9205_v16  ;;  %9206 = vst [vmem:[#allocation63_spill] sm:$0xff] %v7816_v27  ;;  %9207 = vst [vmem:[#allocation67_spill] sm:$0xff] %v7821_v22  ;;  %v4977_v53 = vpack.c.bf16 %v6967_v28, %v6955_v5  ;;  %v9216_v33 = vand.u32 4294901760, %v7754_v60  ;;  %v9217_v41 = vand.u32 4294901760, %v7759_v7  ;;  %5006 = vmatpush3.bf16.msra.mxu1 %v7360_v45  ;;  %s5302_s2 = smov [#allocation2]  }
 0x123   :  { %9193 = vst [vmem:[#allocation5_spill] sm:$0xff] %v7771_v52  ;;  %v7795_v40 = vpack.c.bf16 %v9201_v43, %v9200_v12  ;;  %v9203_v52 = vand.u32 4294901760, %v7699_v15  ;;  %v9211_v43 = vld [vmem:[#allocation71_spill] sm:$0xff]  ;;  %v9219_v5 = vand.u32 4294901760, %v7789_v24  ;;  %5008 = vmatprep.subr.bf16.mxu1 %v7366_v35  ;;  %s3659_s27 = sshll.u32 %s5302_s2, 4  ;;  %s3660_s27 = int_to_ptr.vmem [resolvable:$true] %s3659_s27 }
 0x124   :  { %4974 = vmatpush3.bf16.msra.mxu0 %v4973_v44  ;;  %v4979_v44 = vpack.c.bf16 %v6980_v34, %v6975_v38  ;;  %v9224_v38 = vand.u32 4294901760, %v7821_v22  ;;  %s5277_s28 = scalar_lea.vmem %s3660_s27, 16  ;;  %s5281_s29 = scalar_lea.vmem %s3660_s27, 32 }
 0x125   :  { %9202 = vst [vmem:[#allocation59_spill] sm:$0xff] %v7795_v40  ;;  %v7804_v30 = vsub.f32 %v7699_v15, %v9203_v52  ;;  %v9208_v52 = vand.u32 4294901760, %v7727_v26  ;;  %v9209_v40 = vand.u32 4294901760, %v7721_v47  ;;  %v9213_v15 = vand.u32 4294901760, %v7738_v32  ;;  %p5278_p0 = scmp.ne.s32.totalorder %s3660_s27, %s5277_s28  ;;  %p5282_p1 = scmp.lt.s32.totalorder %s3660_s27, %s3660_s27 }
 0x126   :  { %v7883_v28 = vsub.f32 %v7789_v24, %v9219_v5  ;;  %v4981_v5 = vpack.c.bf16 %v6990_v59, %v6985_v58  ;;  %v7906_v34 = vsub.f32 %v7821_v22, %v9224_v38  ;;  %v9229_v59 = vand.u32 4294901760, %v7834_v31  ;;  %5010 = vmatpush3.bf16.msra.mxu1 %v7390_v11  ;;  %p5283_p2 = scmp.lt.s32.totalorder %s5281_s29, %s5277_s28 }
 0x127   :  { %9204 = vst [vmem:[#allocation62_spill] sm:$0xff] %v7804_v30  ;;  %v7827_v16 = vsub.f32 %v7727_v26, %v9208_v52  ;;  %v7845_v52 = vpack.c.bf16 %v9209_v40, %v8560_v9  ;;  %v9212_v26 = vld [vmem:[#allocation72_spill] sm:$0xff]  ;;  %v7856_v56 = vpack.c.bf16 %v9214_v2, %v9213_v15  ;;  %v7861_v40 = vsub.f32 %v7754_v60, %v9216_v33 }
 0x128   :  { %v4975_v12 = vpack.c.bf16 %v9212_v26, %v9211_v43  ;;  %v7866_v26 = vsub.f32 %v7759_v7, %v9217_v41  ;;  %v9218_v33 = vand.u32 4294901760, %v7784_v49  ;;  %v9220_v15 = vand.u32 4294901760, %v7779_v19  ;;  %9225 = vst [vmem:[#allocation35_spill] sm:$0xff] %v7906_v34  ;;  %5012 = vmatprep.subr.bf16.mxu1 %v7414_v14  ;;  %p5284_p3 = por %p5283_p2, %p5282_p1 }
 0x129   :  { %9210 = vst [vmem:[#allocation68_spill] sm:$0xff] %v7845_v52  ;;  %9215 = vst [vmem:[#allocation69_spill] sm:$0xff] %v7856_v56  ;;  %v3699_v56 = vpop.f32.mrb[0].mxu0  ;;  %v3734_v52 = vpop.f32.mrb[0].mxu1  ;;  %v9223_v43 = vand.u32 4294901760, %v7816_v27  ;;  %v9226_v9 = vand.u32 4294901760, %v7809_v57  ;;  %v7917_v58 = vsub.f32 %v7834_v31, %v9229_v59  ;;  %v4983_v59 = vpack.c.bf16 %v7008_v13, %v7003_v54 }
 0x12a   :  { %v7878_v41 = vsub.f32 %v7784_v49, %v9218_v33  ;;  %4976 = vmatprep.subr.bf16.mxu0 %v4975_v12  ;;  %v9221_v33 = vand.u32 4294901760, %v7804_v30  ;;  %v3735_v24 = vpop.f32.mrb[1].mxu1  ;;  %v8572_v38 = vand.u32 4294901760, %v7861_v40  ;;  %v8571_v22 = vand.u32 4294901760, %v7866_v26  ;;  %5014 = vmatpush3.bf16.msra.mxu1 %v7430_v50  ;;  %p5285_p4 = pnand %p5284_p3, %p5278_p0 }
 0x12b   :  { %v7901_v12 = vsub.f32 %v7816_v27, %v9223_v43  ;;  %9230 = vst [vmem:[#allocation39_spill] sm:$0xff] %v7917_v58  ;;  %v9231_v43 = vand.u32 4294901760, %v7839_v42  ;;  %4978 = vmatpush3.bf16.msra.mxu0 %v4977_v53  ;;  %v8566_v13 = vand.u32 4294901760, %v7917_v58  ;;  %5016 = vmatprep.subr.bf16.mxu1 %v7437_v6 }
 0x12c   :  { %v7894_v2 = vpack.c.bf16 %v9221_v33, %v9220_v15  ;;  %v9227_v15 = vand.u32 4294901760, %v7827_v16  ;;  %4980 = vmatprep.subr.bf16.mxu0 %v4979_v44 }
 0x12d   :  { %v7922_v27 = vsub.f32 %v7839_v42, %v9231_v43  ;;  %v7936_v43 = vpack.c.bf16 %v8571_v22, %v8572_v38  ;;  %v8568_v53 = vand.u32 4294901760, %v7901_v12 }
 0x12e   :  { %9222 = vst [vmem:[#allocation70_spill] sm:$0xff] %v7894_v2  ;;  %v7912_v33 = vpack.c.bf16 %v9227_v15, %v9226_v9  ;;  %v3700_v2 = vpop.f32.mrb[1].mxu0  ;;  %v3736_v9 = vadd.f32 %v3735_v24, %v3734_v52  ;;  %v8570_v15 = vand.u32 4294901760, %v7878_v41  ;;  %v8567_v24 = vand.u32 4294901760, %v7906_v34  ;;  %5018 = vmatpush3.bf16.msra.mxu1 %v7469_v37 }
 0x12f   :  { %9232 = vst [vmem:[#allocation60_spill] sm:$0xff] %v7922_v27  ;;  %v3701_v49 = vadd.f32 %v3700_v2, %v3699_v56  ;;  %9233 = vst [vmem:[#allocation61_spill] sm:$0xff] %v7936_v43  ;;  %v8565_v54 = vand.u32 4294901760, %v7922_v27  ;;  %4982 = vmatpush3.bf16.msra.mxu0 %v4981_v5  ;;  %v4985_v2 = vpack.c.bf16 %v7024_v18, %v7019_v0  ;;  %v9237_v0 = vld [vmem:[#allocation73_spill] sm:$0xff]  ;;  %5052 = vmatprep.subr.bf16.mxu1 %v7239_v46  ;;  %v9239_v5 = vld [vmem:[#allocation74_spill] sm:$0xff] }
 0x130   :  { %9228 = vst [vmem:[#allocation38_spill] sm:$0xff] %v7912_v33  ;;  %v8569_v33 = vand.u32 4294901760, %v7883_v28  ;;  %4984 = vmatprep.subr.bf16.mxu0 %v4983_v59  ;;  %v9238_v18 = vand.u32 4294901760, %v7384_v29  ;;  %v9241_v59 = vld [vmem:[#allocation29_spill] sm:$0xff] }
 0x131   :  { %v7938_v56 = vadd.f32 %v3736_v9, %v3701_v49  ;;  %v7957_v49 = vpack.c.bf16 %v8567_v24, %v8568_v53  ;;  %v7964_v44 = vpack.c.bf16 %v8565_v54, %v8566_v13  ;;  %v9240_v9 = vld [vmem:[#allocation75_spill] sm:$0xff]  ;;  %v9260_v24 = vld [vmem:[#allocation10_spill] sm:$0xff] }
 0x132   :  { %v7946_v52 = vpack.c.bf16 %v8569_v33, %v8570_v15  ;;  %2504 = vmatmul.mubr.f32.vlgmr.msra.gmra.mrb[14].mxu1 %v9238_v18  ;;  %v9261_v53 = vand.u32 4294901760, %v9260_v24  ;;  %v9262_v33 = vand.u32 4294901760, %v7544_v4  ;;  %v9271_v15 = vld [vmem:[#allocation7_spill] sm:$0xff] }
 0x133   :  { %9235 = vst [vmem:[#allocation65_spill] sm:$0xff] %v7957_v49  ;;  %9236 = vst [vmem:[#allocation66_spill] sm:$0xff] %v7964_v44  ;;  %4986 = vmatpush3.bf16.msra.mxu0 %v4985_v2  ;;  %5054 = vmatpush3.bf16.msra.mxu1 %v7246_v36  ;;  %v9242_v2 = vld [vmem:[#allocation14_spill] sm:$0xff]  ;;  %v9245_v36 = vld [vmem:[#allocation13_spill] sm:$0xff] }
 0x134   :  { %9234 = vst [vmem:[#allocation64_spill] sm:$0xff] %v7946_v52  ;;  %5020 = vmatprep.subr.bf16.mxu0 %v9237_v0  ;;  %5056 = vmatprep.subr.bf16.mxu1 %v7255_v23  ;;  %v170_v46 = vcombine.high %v9242_v2, %v9242_v2  ;;  %v9243_v0 = vld [vmem:[#allocation76_spill] sm:$0xff]  ;;  %v9247_v23 = vld [vmem:[#allocation79_spill] sm:$0xff]  ;;  %v9251_v2 = vld [vmem:[#allocation82_spill] sm:$0xff] }
 0x135   :  { %2774 = vmatprep.mubr.f32.mxu1 %v9241_v59 }
 0x136   :  { %2396 = vmatmul.mubr.f32.vlgmr.msra.gmra.mrb[14].mxu0 %v7384_v29  ;;  %v9244_v29 = vld [vmem:[#allocation77_spill] sm:$0xff]  ;;  %v7985_v18 = vrot.slane %v170_v46, %v9245_v36 }
 0x137   :  { %5022 = vmatpush3.bf16.msra.mxu0 %v9239_v5  ;;  %2670 = vmatprep.mubr.f32.mxu0 %v9241_v59  ;;  %v9246_v5 = vld [vmem:[#allocation78_spill] sm:$0xff]  ;;  %v9248_v59 = vld [vmem:[#allocation80_spill] sm:$0xff] }
 0x138   :  { %5024 = vmatprep.subr.bf16.mxu0 %v9240_v9  ;;  %5058 = vmatpush3.bf16.msra.mxu1 %v7276_v63  ;;  %v186_v9 = vcombine.high %v7985_v18, %v7985_v18  ;;  %v9249_v63 = vld [vmem:[#allocation81_spill] sm:$0xff] }
 0x139   :  { %5060 = vmatprep.subr.bf16.mxu1 %v7284_v1 }
 0x13a   :  { %v7997_v1 = vand.u32 4294901760, %v186_v9 }
 0x13b   :  { %5026 = vmatpush3.bf16.msra.mxu0 %v9243_v0 }
 0x13c   :  { %5028 = vmatprep.subr.bf16.mxu0 %v9244_v29  ;;  %5062 = vmatpush3.bf16.msra.mxu1 %v7304_v48  ;;  %9250 = vst [vmem:[#allocation71_spill] sm:$0xff] %v7997_v1  ;;  %v9252_v48 = vld [vmem:[#allocation83_spill] sm:$0xff]  ;;  %v3769_v29 = vpop.f32.mrb[2].mxu0  ;;  %v8010_v36 = vsub.f32 %v186_v9, %v7997_v1 }
 0x13d   :  { %5064 = vmatprep.subr.bf16.mxu1 %v7325_v17  ;;  %v9253_v17 = vand.u32 4294901760, %v7498_v55 }
 0x13f   :  { %5030 = vmatpush3.bf16.msra.mxu0 %v9246_v5  ;;  %v3009_v46 = vsub.f32 %v7498_v55, %v9253_v17  ;;  %v3770_v5 = vpop.f32.mrb[3].mxu0  ;;  %v9258_v17 = vld [vmem:[#allocation84_spill] sm:$0xff] }
 0x140   :  { %5032 = vmatprep.subr.bf16.mxu0 %v9247_v23  ;;  %5066 = vmatpush3.bf16.msra.mxu1 %v7331_v62  ;;  %v9254_v62 = vand.u32 4294901760, %v7503_v51 }
 0x141   :  { %5068 = vmatprep.subr.bf16.mxu1 %v7337_v39  ;;  %v3804_v39 = vpop.f32.mrb[2].mxu1  ;;  %v3010_v9 = vand.u32 4294901760, %v3009_v46  ;;  %v9264_v46 = vand.u32 4294901760, %v7560_v61 }
 0x142   :  { %v3016_v0 = vsub.f32 %v7503_v51, %v9254_v62  ;;  %v3805_v23 = vpop.f32.mrb[3].mxu1  ;;  %v9259_v62 = vld [vmem:[#allocation85_spill] sm:$0xff] }
 0x143   :  { %5034 = vmatpush3.bf16.msra.mxu0 %v9248_v59  ;;  %v3806_v54 = vadd.f32 %v3805_v23, %v3804_v39  ;;  %v9263_v23 = vand.u32 4294901760, %v7555_v10 }
 0x144   :  { %5036 = vmatprep.subr.bf16.mxu0 %v9249_v63  ;;  %5070 = vmatpush3.bf16.msra.mxu1 %v7360_v45  ;;  %v9255_v45 = vand.u32 4294901760, %v7516_v20  ;;  %v3017_v13 = vand.u32 4294901760, %v3016_v0  ;;  %v2918_v0 = vsub.f32 %v7560_v61, %v9264_v46  ;;  %v9272_v46 = vand.u32 4294901760, %v9271_v15  ;;  %v9280_v15 = vld [vmem:[#allocation56_spill] sm:$0xff] }
 0x145   :  { %5072 = vmatprep.subr.bf16.mxu1 %v7366_v35  ;;  %v9256_v35 = vld [vmem:[#allocation6_spill] sm:$0xff] }
 0x146   :  { %v2897_v59 = vsub.f32 %v7516_v20, %v9255_v45  ;;  %v9257_v63 = vand.u32 4294901760, %v9256_v35  ;;  %v3023_v45 = vsub.f32 %v9260_v24, %v9261_v53 }
 0x147   :  { %5038 = vmatpush3.bf16.msra.mxu0 %v9251_v2 }
 0x148   :  { %5040 = vmatprep.subr.bf16.mxu0 %v9252_v48  ;;  %v2904_v2 = vsub.f32 %v9256_v35, %v9257_v63  ;;  %v3771_v48 = vadd.f32 %v3770_v5, %v3769_v29  ;;  %5074 = vmatpush3.bf16.msra.mxu1 %v7390_v11  ;;  %v3030_v63 = vsub.f32 %v7544_v4, %v9262_v33  ;;  %v2898_v5 = vand.u32 4294901760, %v2897_v59 }
 0x149   :  { %5076 = vmatprep.subr.bf16.mxu1 %v7414_v14  ;;  %v2911_v14 = vsub.f32 %v7555_v10, %v9263_v23  ;;  %v9266_v33 = vand.u32 4294901760, %v7568_v21  ;;  %v9267_v59 = vand.u32 4294901760, %v7587_v25 }
 0x14a   :  { %v674_v29 = vadd.f32 %v3771_v48, %v7938_v56  ;;  %v2905_v11 = vand.u32 4294901760, %v2904_v2  ;;  %v9268_v48 = vld [vmem:[#allocation87_spill] sm:$0xff] }
 0x14b   :  { %5042 = vmatpush3.bf16.msra.mxu0 %v9258_v17  ;;  %v9265_v17 = vld [vmem:[#allocation86_spill] sm:$0xff]  ;;  %v3037_v56 = vsub.f32 %v7568_v21, %v9266_v33  ;;  %v3044_v2 = vsub.f32 %v7587_v25, %v9267_v59  ;;  %v9275_v33 = vld [vmem:[#allocation12_spill] sm:$0xff]  ;;  %v9277_v59 = vand.u32 4294901760, %v8010_v36 }
 0x14c   :  { %5044 = vmatprep.subr.bf16.mxu0 %v9259_v62  ;;  %v8037_v53 = vadd.f32 %v3806_v54, %v674_v29  ;;  %5078 = vmatpush3.bf16.msra.mxu1 %v7430_v50  ;;  %v9269_v62 = vld [vmem:[#allocation11_spill] sm:$0xff]  ;;  %v5115_v54 = vpack.c.bf16 %v3017_v13, %v3010_v9  ;;  %v3024_v50 = vand.u32 4294901760, %v3023_v45  ;;  %v3031_v29 = vand.u32 4294901760, %v3030_v63 }
 0x14d   :  { %v9270_v23 = vand.u32 4294901760, %v9269_v62  ;;  %5080 = vmatprep.subr.bf16.mxu1 %v7437_v6  ;;  %v9276_v39 = vand.u32 4294901760, %v9275_v33  ;;  %v9278_v62 = vld [vmem:[#allocation42_spill] sm:$0xff]  ;;  %v5117_v6 = vpack.c.bf16 %v2905_v11, %v2898_v5  ;;  %v2912_v13 = vand.u32 4294901760, %v2911_v14  ;;  %v9282_v45 = vld [vmem:[#allocation19_spill] sm:$0xff]  ;;  %v9284_v33 = vld [vmem:[#allocation52_spill] sm:$0xff] }
 0x14e   :  { %v9279_v49 = vand.u32 4294901760, %v9278_v62  ;;  %v2919_v9 = vand.u32 4294901760, %v2918_v0  ;;  %v3038_v63 = vand.u32 4294901760, %v3037_v56  ;;  %v9286_v5 = vld [vmem:[#allocation9_spill] sm:$0xff] }
 0x14f   :  { %5046 = vmatpush3.bf16.msra.mxu0 %v9265_v17  ;;  %v8051_v22 = vpack.c.bf16 %v9272_v46, %v9270_v23  ;;  %v9273_v17 = vld [vmem:[#allocation41_spill] sm:$0xff]  ;;  %v9281_v23 = vand.u32 4294901760, %v9280_v15  ;;  %v9287_v11 = vand.u32 4294901760, %v9286_v5 }
 0x150   :  { %5048 = vmatprep.subr.bf16.mxu0 %v9268_v48  ;;  %v9274_v38 = vand.u32 4294901760, %v9273_v17  ;;  %v2880_v48 = vsub.f32 %v8010_v36, %v9277_v59  ;;  %5082 = vmatpush3.bf16.msra.mxu1 %v7469_v37  ;;  %v9285_v59 = vand.u32 4294901760, %v9284_v33  ;;  %v9288_v0 = vld [vmem:[#allocation21_spill] sm:$0xff] }
 0x151   :  { %v8067_v46 = vpack.c.bf16 %v9281_v23, %v9279_v49  ;;  %5116 = vmatprep.subr.bf16.mxu1 %v5115_v54  ;;  %v5119_v49 = vpack.c.bf16 %v3031_v29, %v3024_v50  ;;  %v3051_v14 = vsub.f32 %v9286_v5, %v9287_v11  ;;  %v9289_v37 = vand.u32 4294901760, %v9288_v0  ;;  %v9292_v23 = vld [vmem:[#allocation43_spill] sm:$0xff]  ;;  %v9295_v54 = vld [vmem:[#allocation25_spill] sm:$0xff]  ;;  %v9297_v29 = vld [vmem:[#allocation44_spill] sm:$0xff] }
 0x152   :  { %v8058_v44 = vpack.c.bf16 %v9276_v39, %v9274_v38  ;;  %v3045_v38 = vand.u32 4294901760, %v3044_v2  ;;  %v9283_v39 = vand.u32 4294901760, %v7592_v3  ;;  %v2932_v62 = vsub.f32 %v9284_v33, %v9285_v59  ;;  %v9290_v2 = vld [vmem:[#allocation36_spill] sm:$0xff] }
 0x153   :  { %5050 = vmatpush3.bf16.msra.mxu0 %v9282_v45  ;;  %v3058_v56 = vsub.f32 %v9288_v0, %v9289_v37  ;;  %v9291_v15 = vand.u32 4294901760, %v9290_v2  ;;  %v9293_v45 = vand.u32 4294901760, %v9292_v23  ;;  %v2881_v52 = vand.u32 4294901760, %v2880_v48  ;;  %v9294_v59 = vld [vmem:[#allocation40_spill] sm:$0xff] }
 0x154   :  { %v2925_v17 = vsub.f32 %v7592_v3, %v9283_v39  ;;  %5084 = vmatprep.subr.bf16.mxu0 %v8051_v22  ;;  %2776 = vmatmul.mubr.f32.vlgmr.msra.gmra.mrb[16].mxu1 %v9294_v59  ;;  %v9296_v50 = vand.u32 4294901760, %v9295_v54  ;;  %v9298_v43 = vand.u32 4294901760, %v9297_v29  ;;  %v9299_v5 = vld [vmem:[#allocation32_spill] sm:$0xff]  ;;  %v5121_v48 = vpack.c.bf16 %v2919_v9, %v2912_v13 }
 0x155   :  { %v8088_v39 = vpack.c.bf16 %v9293_v45, %v9291_v15  ;;  %v9300_v33 = vand.u32 4294901760, %v9299_v5  ;;  %v9301_v2 = vld [vmem:[#allocation16_spill] sm:$0xff]  ;;  %5118 = vmatpush3.bf16.msra.mxu1 %v5117_v6  ;;  %v5123_v23 = vpack.c.bf16 %v3045_v38, %v3038_v63  ;;  %v3059_v54 = vand.u32 4294901760, %v3058_v56  ;;  %v9308_v6 = vld [vmem:[#allocation45_spill] sm:$0xff]  ;;  %3118 = vmatprep.mubr.f32.mxu1 %v7997_v1 }
 0x156   :  { %2672 = vmatmul.mubr.f32.vlgmr.msra.gmra.mrb[16].mxu0 %v9294_v59  ;;  %v8096_v11 = vpack.c.bf16 %v9298_v43, %v9296_v50  ;;  %v9302_v0 = vand.u32 4294901760, %v9301_v2  ;;  %v2926_v45 = vand.u32 4294901760, %v2925_v17  ;;  %v2933_v59 = vand.u32 4294901760, %v2932_v62  ;;  %5120 = vmatprep.subr.bf16.mxu1 %v5119_v49  ;;  %v9303_v50 = vld [vmem:[#allocation30_spill] sm:$0xff]  ;;  %v9320_v1 = vld [vmem:[#allocation49_spill] sm:$0xff] }
 0x157   :  { %v2939_v37 = vsub.f32 %v9299_v5, %v9300_v33  ;;  %5086 = vmatpush3.bf16.msra.mxu0 %v8058_v44  ;;  %v3052_v43 = vand.u32 4294901760, %v3051_v14  ;;  %v9304_v29 = vand.u32 4294901760, %v9303_v50  ;;  %v9305_v5 = vand.u32 4294901760, %v7721_v47  ;;  %2882 = vmatprep.mubr.f32.mxu0 %v2881_v52 }
 0x158   :  { %v2946_v15 = vsub.f32 %v9301_v2, %v9302_v0  ;;  %5088 = vmatprep.subr.bf16.mxu0 %v8067_v46  ;;  %v9306_v2 = vld [vmem:[#allocation27_spill] sm:$0xff]  ;;  %v9309_v13 = vand.u32 4294901760, %v9308_v6  ;;  %v9310_v17 = vand.u32 4294901760, %v7738_v32  ;;  %v9311_v49 = vand.u32 4294901760, %v7743_v8 }
 0x159   :  { %v3065_v33 = vsub.f32 %v9303_v50, %v9304_v29  ;;  %v3072_v0 = vsub.f32 %v7721_v47, %v9305_v5  ;;  %v9307_v3 = vand.u32 4294901760, %v9306_v2  ;;  %v2940_v63 = vand.u32 4294901760, %v2939_v37  ;;  %5122 = vmatpush3.bf16.msra.mxu1 %v5121_v48  ;;  %v9314_v2 = vld [vmem:[#allocation46_spill] sm:$0xff]  ;;  %v9316_v29 = vld [vmem:[#allocation47_spill] sm:$0xff] }
 0x15a   :  { %v2947_v38 = vand.u32 4294901760, %v2946_v15  ;;  %v2953_v62 = vsub.f32 %v7738_v32, %v9310_v17  ;;  %v2960_v14 = vsub.f32 %v7743_v8, %v9311_v49  ;;  %v5125_v5 = vpack.c.bf16 %v2933_v59, %v2926_v45  ;;  %5124 = vmatprep.subr.bf16.mxu1 %v5123_v23  ;;  %v9318_v59 = vld [vmem:[#allocation48_spill] sm:$0xff]  ;;  %v9322_v8 = vld [vmem:[#allocation53_spill] sm:$0xff] }
 0x15b   :  { %v8116_v9 = vpack.c.bf16 %v9309_v13, %v9307_v3  ;;  %5090 = vmatpush3.bf16.msra.mxu0 %v8088_v39  ;;  %v9312_v3 = vand.u32 4294901760, %v7779_v19  ;;  %v9313_v56 = vand.u32 4294901760, %v7804_v30  ;;  %v9315_v15 = vand.u32 4294901760, %v9314_v2 }
 0x15c   :  { %5092 = vmatprep.subr.bf16.mxu0 %v8096_v11  ;;  %v9317_v6 = vand.u32 4294901760, %v9316_v29  ;;  %v5127_v17 = vpack.c.bf16 %v3059_v54, %v3052_v43  ;;  %v3066_v48 = vand.u32 4294901760, %v3065_v33  ;;  %v3073_v45 = vand.u32 4294901760, %v3072_v0 }
 0x15d   :  { %v3079_v52 = vsub.f32 %v7779_v19, %v9312_v3  ;;  %v3086_v37 = vsub.f32 %v7804_v30, %v9313_v56  ;;  %v9319_v49 = vand.u32 4294901760, %v9318_v59  ;;  %v9321_v3 = vand.u32 4294901760, %v9320_v1  ;;  %v9324_v30 = vld [vmem:[#allocation54_spill] sm:$0xff]  ;;  %5126 = vmatpush3.bf16.msra.mxu1 %v5125_v5  ;;  %v9332_v5 = vld [vmem:[#allocation8_spill] sm:$0xff] }
 0x15e   :  { %v8137_v13 = vpack.c.bf16 %v9317_v6, %v9315_v15  ;;  %v9323_v56 = vand.u32 4294901760, %v9322_v8  ;;  %v9325_v32 = vand.u32 4294901760, %v9324_v30  ;;  %v5129_v2 = vpack.c.bf16 %v2947_v38, %v2940_v63  ;;  %5128 = vmatprep.subr.bf16.mxu1 %v5127_v17  ;;  %v9334_v6 = vld [vmem:[#allocation22_spill] sm:$0xff] }
 0x15f   :  { %v8143_v19 = vpack.c.bf16 %v9321_v3, %v9319_v49  ;;  %v2954_v29 = vand.u32 4294901760, %v2953_v62  ;;  %v2961_v15 = vand.u32 4294901760, %v2960_v14  ;;  %5094 = vmatpush3.bf16.msra.mxu0 %v8116_v9  ;;  %v3080_v23 = vand.u32 4294901760, %v3079_v52  ;;  %v9330_v62 = vld [vmem:[#allocation15_spill] sm:$0xff] }
 0x160   :  { %v8149_v47 = vpack.c.bf16 %v9325_v32, %v9323_v56  ;;  %v3087_v43 = vand.u32 4294901760, %v3086_v37  ;;  %v9326_v54 = vand.u32 4294901760, %v7809_v57  ;;  %v9327_v33 = vand.u32 4294901760, %v7827_v16  ;;  %5096 = vmatprep.subr.bf16.mxu0 %v8137_v13  ;;  %v9336_v49 = vld [vmem:[#allocation23_spill] sm:$0xff] }
 0x161   :  { %v5131_v32 = vpack.c.bf16 %v3073_v45, %v3066_v48  ;;  %v9328_v30 = vand.u32 4294901760, %v7861_v40  ;;  %v9329_v63 = vand.u32 4294901760, %v7866_v26  ;;  %v9331_v14 = vand.u32 4294901760, %v9330_v62  ;;  %5130 = vmatpush3.bf16.msra.mxu1 %v5129_v2  ;;  %v9344_v2 = vld [vmem:[#allocation17_spill] sm:$0xff] }
 0x162   :  { %v2967_v1 = vsub.f32 %v7809_v57, %v9326_v54  ;;  %v2974_v8 = vsub.f32 %v7827_v16, %v9327_v33  ;;  %v9333_v52 = vand.u32 4294901760, %v9332_v5  ;;  %v9335_v59 = vand.u32 4294901760, %v9334_v6 }
 0x163   :  { %v3093_v0 = vsub.f32 %v7861_v40, %v9328_v30  ;;  %v3100_v38 = vsub.f32 %v7866_v26, %v9329_v63  ;;  %v9337_v3 = vand.u32 4294901760, %v9336_v49  ;;  %v8178_v48 = vand.u32 4294901760, %v7985_v18  ;;  %5098 = vmatpush3.bf16.msra.mxu0 %v8143_v19  ;;  %5132 = vmatprep.subr.bf16.mxu1 %v5131_v32 }
 0x164   :  { %v8169_v37 = vpack.c.bf16 %v9333_v52, %v9331_v14  ;;  %v9338_v45 = vand.u32 4294901760, %v7878_v41  ;;  %v9339_v54 = vand.u32 4294901760, %v7883_v28  ;;  %v5133_v30 = vpack.c.bf16 %v2961_v15, %v2954_v29  ;;  %5100 = vmatprep.subr.bf16.mxu0 %v8149_v47 }
 0x165   :  { %v8175_v17 = vpack.c.bf16 %v9337_v3, %v9335_v59  ;;  %v5135_v63 = vpack.c.bf16 %v3087_v43, %v3080_v23  ;;  %v2968_v62 = vand.u32 4294901760, %v2967_v1  ;;  %v2975_v14 = vand.u32 4294901760, %v2974_v8 }
 0x166   :  { %v2981_v56 = vsub.f32 %v7878_v41, %v9338_v45  ;;  %v2988_v33 = vsub.f32 %v7883_v28, %v9339_v54  ;;  %v3094_v5 = vand.u32 4294901760, %v3093_v0  ;;  %v3101_v52 = vand.u32 4294901760, %v3100_v38  ;;  %v9342_v45 = vld [vmem:[#allocation24_spill] sm:$0xff]  ;;  %5134 = vmatpush3.bf16.msra.mxu1 %v5133_v30 }
 0x167   :  { %v9340_v6 = vand.u32 4294901760, %v7901_v12  ;;  %v9341_v49 = vand.u32 4294901760, %v7906_v34  ;;  %v9343_v54 = vand.u32 4294901760, %v9342_v45  ;;  %v9345_v29 = vand.u32 4294901760, %v9344_v2  ;;  %5102 = vmatpush3.bf16.msra.mxu0 %v8169_v37  ;;  %5136 = vmatprep.subr.bf16.mxu1 %v5135_v63  ;;  %v3874_v45 = vpop.f32.mrb[4].mxu1  ;;  %v9350_v2 = vld [vmem:[#allocation57_spill] sm:$0xff] }
 0x168   :  { %v8202_v23 = vsub.f32 %v7985_v18, %v8178_v48  ;;  %v2982_v43 = vand.u32 4294901760, %v2981_v56  ;;  %v2989_v1 = vand.u32 4294901760, %v2988_v33  ;;  %v5137_v8 = vpack.c.bf16 %v2975_v14, %v2968_v62  ;;  %5104 = vmatprep.subr.bf16.mxu0 %v8175_v17  ;;  %v3839_v14 = vpop.f32.mrb[4].mxu0 }
 0x169   :  { %v3107_v59 = vsub.f32 %v7901_v12, %v9340_v6  ;;  %v3114_v3 = vsub.f32 %v7906_v34, %v9341_v49  ;;  %v8198_v15 = vpack.c.bf16 %v9345_v29, %v9343_v54  ;;  %v9346_v32 = vand.u32 4294901760, %v7917_v58  ;;  %v3840_v54 = vpop.f32.mrb[5].mxu0 }
 0x16a   :  { %v9347_v38 = vand.u32 4294901760, %v7922_v27  ;;  %v9348_v49 = vand.u32 4294901760, %v7754_v60  ;;  %v9349_v18 = vand.u32 4294901760, %v7759_v7  ;;  %v5139_v33 = vpack.c.bf16 %v3101_v52, %v3094_v5  ;;  %5138 = vmatpush3.bf16.msra.mxu1 %v5137_v8 }
 0x16b   :  { %v2995_v0 = vsub.f32 %v7917_v58, %v9346_v32  ;;  %v3108_v30 = vand.u32 4294901760, %v3107_v59  ;;  %v3115_v62 = vand.u32 4294901760, %v3114_v3  ;;  %v9351_v29 = vand.u32 4294901760, %v9350_v2  ;;  %v9352_v32 = vld [vmem:[#allocation58_spill] sm:$0xff]  ;;  %5106 = vmatpush3.bf16.msra.mxu0 %v8198_v15  ;;  %v9354_v59 = vld [vmem:[#allocation63_spill] sm:$0xff] }
 0x16c   :  { %v3002_v6 = vsub.f32 %v7922_v27, %v9347_v38  ;;  %v8216_v56 = vpack.c.bf16 %v9349_v18, %v9348_v49  ;;  %v9353_v58 = vand.u32 4294901760, %v9352_v32  ;;  %v3875_v27 = vpop.f32.mrb[5].mxu1  ;;  %v2885_v60 = vand.u32 4294901760, %v8202_v23  ;;  %v9356_v49 = vld [vmem:[#allocation67_spill] sm:$0xff]  ;;  %5140 = vmatprep.subr.bf16.mxu1 %v5139_v33  ;;  %v9370_v32 = vld [vmem:[#allocation37_spill] sm:$0xff] }
 0x16d   :  { %v5141_v34 = vpack.c.bf16 %v2989_v1, %v2982_v43  ;;  %v3841_v7 = vadd.f32 %v3840_v54, %v3839_v14  ;;  %v3876_v63 = vadd.f32 %v3875_v27, %v3874_v45  ;;  %v2996_v5 = vand.u32 4294901760, %v2995_v0  ;;  %v9368_v14 = vld [vmem:[#allocation33_spill] sm:$0xff]  ;;  %v9369_v45 = vld [vmem:[#allocation34_spill] sm:$0xff] }
 0x16e   :  { %v8222_v38 = vpack.c.bf16 %v9353_v58, %v9351_v29  ;;  %v3003_v52 = vand.u32 4294901760, %v3002_v6  ;;  %5108 = vmatprep.subr.bf16.mxu0 %v8216_v56  ;;  %v9355_v3 = vand.u32 4294901760, %v9354_v59  ;;  %v9357_v18 = vand.u32 4294901760, %v9356_v49 }
 0x16f   :  { %v5143_v58 = vpack.c.bf16 %v3115_v62, %v3108_v30  ;;  %v950_v29 = vadd.f32 %v3841_v7, %v8037_v53  ;;  %v2886_v43 = vsub.f32 %v8202_v23, %v2885_v60  ;;  %v9358_v1 = vand.u32 4294901760, %v7834_v31  ;;  %5142 = vmatpush3.bf16.msra.mxu1 %v5141_v34  ;;  %v9371_v7 = vld [vmem:[#allocation62_spill] sm:$0xff] }
 0x170   :  { %v8231_v2 = vpack.c.bf16 %v9357_v18, %v9355_v3  ;;  %5110 = vmatpush3.bf16.msra.mxu0 %v8222_v38  ;;  %v9359_v8 = vand.u32 4294901760, %v7839_v42  ;;  %v5145_v6 = vpack.c.bf16 %v3003_v52, %v2996_v5  ;;  %v5147_v53 = vpack.c.bf16 %v7503_v51, %v7498_v55  ;;  %v9362_v42 = vld [vmem:[#allocation52_spill] sm:$0xff] }
 0x171   :  { %v1054_v27 = vadd.f32 %v3876_v63, %v950_v29  ;;  %5144 = vmatprep.subr.bf16.mxu1 %v5143_v58  ;;  %v2887_v33 = vand.u32 4294901760, %v2886_v43  ;;  %v5149_v30 = vpack.c.bf16 %v9256_v35, %v7516_v20  ;;  %v5151_v31 = vpack.c.bf16 %v7544_v4, %v9260_v24  ;;  %v9361_v4 = vld [vmem:[#allocation50_spill] sm:$0xff]  ;;  %v9373_v43 = vld [vmem:[#allocation39_spill] sm:$0xff] }
 0x172   :  { %v8242_v0 = vpack.c.bf16 %v9359_v8, %v9358_v1  ;;  %5112 = vmatprep.subr.bf16.mxu0 %v8231_v2  ;;  %v5153_v55 = vpack.c.bf16 %v7560_v61, %v7555_v10  ;;  %v5155_v20 = vpack.c.bf16 %v7587_v25, %v7568_v21  ;;  %v9360_v51 = vand.u32 4294901760, %v8010_v36  ;;  %v9363_v61 = vld [vmem:[#allocation9_spill] sm:$0xff]  ;;  %v9365_v21 = vld [vmem:[#allocation32_spill] sm:$0xff] }
 0x173   :  { %5146 = vmatpush3.bf16.msra.mxu1 %v5145_v6  ;;  %v5157_v34 = vpack.c.bf16 %v9362_v42, %v9361_v4  ;;  %v9364_v10 = vld [vmem:[#allocation21_spill] sm:$0xff]  ;;  %v9366_v25 = vld [vmem:[#allocation16_spill] sm:$0xff]  ;;  %v5165_v54 = vpack.c.bf16 %v9369_v45, %v9368_v14  ;;  %v5167_v63 = vpack.c.bf16 %v9371_v7, %v9370_v32  ;;  %v5169_v5 = vpack.c.bf16 %v7827_v16, %v7809_v57  ;;  %v9372_v57 = vld [vmem:[#allocation35_spill] sm:$0xff] }
 0x174   :  { %5114 = vmatpush3.bf16.msra.mxu0 %v8242_v0  ;;  %5180 = vmatprep.subr.bf16.mxu1 %v8051_v22  ;;  %v5159_v24 = vpack.c.bf16 %v9364_v10, %v9363_v61  ;;  %v5161_v35 = vpack.c.bf16 %v9366_v25, %v9365_v21  ;;  %v5173_v58 = vpack.c.bf16 %v7883_v28, %v7878_v41  ;;  %v9374_v1 = vld [vmem:[#allocation60_spill] sm:$0xff]  ;;  %v9375_v28 = vld [vmem:[#allocation51_spill] sm:$0xff] }
 0x175   :  { %5148 = vmatprep.subr.bf16.mxu0 %v5147_v53  ;;  %v5175_v16 = vpack.c.bf16 %v9372_v57, %v7901_v12  ;;  %v5177_v8 = vpack.c.bf16 %v9374_v1, %v9373_v43  ;;  %v9376_v41 = vld [vmem:[#allocation28_spill] sm:$0xff]  ;;  %v9379_v6 = vld [vmem:[#allocation55_spill] sm:$0xff] }
 0x176   :  { %3120 = vmatmul.mubr.f32.vlgmr.msra.gmra.mrb[18].mxu1 %v8178_v48  ;;  %v9377_v12 = vld [vmem:[#allocation20_spill] sm:$0xff] }
 0x177   :  { %2888 = vmatmul.mubr.f32.vlgmr.msra.gmra.mrb[18].mxu0 %v2887_v33  ;;  %5182 = vmatpush3.bf16.msra.mxu1 %v8058_v44 }
 0x178   :  { %5150 = vmatpush3.bf16.msra.mxu0 %v5149_v30  ;;  %5184 = vmatprep.subr.bf16.mxu1 %v8067_v46 }
 0x179   :  { %5152 = vmatprep.subr.bf16.mxu0 %v5151_v31  ;;  %3255 = vmatprep.mubr.f32.mxu0 %v8010_v36  ;;  %v9367_v36 = vld [vmem:[#allocation31_spill] sm:$0xff]  ;;  %v9387_v31 = vld [vmem:[#allocation38_spill] sm:$0xff] }
 0x17a   :  { %3362 = vmatprep.mubr.f32.mxu1 %v9360_v51  ;;  %v5163_v62 = vpack.c.bf16 %v9367_v36, %v9303_v50  ;;  %v5171_v50 = vpack.c.bf16 %v7866_v26, %v7861_v40  ;;  %v9391_v51 = vld [vmem:[#allocation66_spill] sm:$0xff] }
 0x17b   :  { %5186 = vmatpush3.bf16.msra.mxu1 %v8088_v39 }
 0x17c   :  { %5154 = vmatpush3.bf16.msra.mxu0 %v5153_v55  ;;  %5188 = vmatprep.subr.bf16.mxu1 %v8096_v11  ;;  %v3944_v59 = vpop.f32.mrb[6].mxu1  ;;  %v9388_v55 = vld [vmem:[#allocation61_spill] sm:$0xff] }
 0x17d   :  { %5156 = vmatprep.subr.bf16.mxu0 %v5155_v20  ;;  %v3909_v52 = vpop.f32.mrb[6].mxu0  ;;  %v3945_v49 = vpop.f32.mrb[7].mxu1 }
 0x17e   :  { %v3910_v3 = vpop.f32.mrb[7].mxu0  ;;  %v3946_v29 = vadd.f32 %v3945_v49, %v3944_v59 }
 0x17f   :  { %5190 = vmatpush3.bf16.msra.mxu1 %v8116_v9  ;;  %v3911_v18 = vadd.f32 %v3910_v3, %v3909_v52 }
 0x180   :  { %5158 = vmatpush3.bf16.msra.mxu0 %v5157_v34  ;;  %5192 = vmatprep.subr.bf16.mxu1 %v8137_v13 }
 0x181   :  { %5160 = vmatprep.subr.bf16.mxu0 %v5159_v24  ;;  %v1166_v40 = vadd.f32 %v3911_v18, %v1054_v27  ;;  %v9378_v27 = vld [vmem:[#allocation71_spill] sm:$0xff] }
 0x183   :  { %5194 = vmatpush3.bf16.msra.mxu1 %v8143_v19  ;;  %v1398_v26 = vadd.f32 %v3946_v29, %v1166_v40 }
 0x184   :  { %5162 = vmatpush3.bf16.msra.mxu0 %v5161_v35  ;;  %5196 = vmatprep.subr.bf16.mxu1 %v8149_v47 }
 0x185   :  { %5164 = vmatprep.subr.bf16.mxu0 %v5163_v62 }
 0x187   :  { %5198 = vmatpush3.bf16.msra.mxu1 %v8169_v37 }
 0x188   :  { %5166 = vmatpush3.bf16.msra.mxu0 %v5165_v54  ;;  %5200 = vmatprep.subr.bf16.mxu1 %v8175_v17 }
 0x189   :  { %5168 = vmatprep.subr.bf16.mxu0 %v5167_v63 }
 0x18b   :  { %5202 = vmatpush3.bf16.msra.mxu1 %v8198_v15 }
 0x18c   :  { %5170 = vmatpush3.bf16.msra.mxu0 %v5169_v5  ;;  %5204 = vmatprep.subr.bf16.mxu1 %v8216_v56 }
 0x18d   :  { %5172 = vmatprep.subr.bf16.mxu0 %v5171_v50 }
 0x18f   :  { %5206 = vmatpush3.bf16.msra.mxu1 %v8222_v38 }
 0x190   :  { %5174 = vmatpush3.bf16.msra.mxu0 %v5173_v58  ;;  %5208 = vmatprep.subr.bf16.mxu1 %v8231_v2 }
 0x191   :  { %5176 = vmatprep.subr.bf16.mxu0 %v5175_v16 }
 0x193   :  { %5210 = vmatpush3.bf16.msra.mxu1 %v8242_v0 }
 0x194   :  { %5178 = vmatpush3.bf16.msra.mxu0 %v5177_v8  ;;  %5244 = vmatprep.subr.bf16.mxu1 %v8051_v22  ;;  %v9380_v22 = vld [vmem:[#allocation26_spill] sm:$0xff] }
 0x195   :  { %5212 = vmatprep.subr.bf16.mxu0 %v9375_v28 }
 0x196   :  { %3366 = vmatmul.mubr.f32.vlgmr.msra.gmra.mrb[20].mxu1 %v2885_v60  ;;  %v9384_v60 = vld [vmem:[#allocation68_spill] sm:$0xff] }
 0x197   :  { %3258 = vmatmul.mubr.f32.vlgmr.msra.gmra.mrb[20].mxu0 %v8202_v23  ;;  %5246 = vmatpush3.bf16.msra.mxu1 %v8058_v44  ;;  %v9381_v23 = vld [vmem:[#allocation18_spill] sm:$0xff]  ;;  %v9382_v44 = vld [vmem:[#allocation5_spill] sm:$0xff] }
 0x198   :  { %5214 = vmatpush3.bf16.msra.mxu0 %v9376_v41  ;;  %5248 = vmatprep.subr.bf16.mxu1 %v8067_v46  ;;  %v9383_v46 = vld [vmem:[#allocation59_spill] sm:$0xff] }
 0x199   :  { %5216 = vmatprep.subr.bf16.mxu0 %v9377_v12  ;;  %3532 = vmatprep.mubr.f32.mxu0 %v9378_v27 }
 0x19a   :  { %3636 = vmatprep.mubr.f32.mxu1 %v9378_v27 }
 0x19b   :  { %5250 = vmatpush3.bf16.msra.mxu1 %v8088_v39  ;;  %v9385_v39 = vld [vmem:[#allocation69_spill] sm:$0xff] }
 0x19c   :  { %5218 = vmatpush3.bf16.msra.mxu0 %v9379_v6  ;;  %5252 = vmatprep.subr.bf16.mxu1 %v8096_v11  ;;  %v9386_v11 = vld [vmem:[#allocation70_spill] sm:$0xff] }
 0x19d   :  { %5220 = vmatprep.subr.bf16.mxu0 %v9380_v22 }
 0x19f   :  { %5254 = vmatpush3.bf16.msra.mxu1 %v8116_v9 }
 0x1a0   :  { %5222 = vmatpush3.bf16.msra.mxu0 %v9381_v23  ;;  %5256 = vmatprep.subr.bf16.mxu1 %v8137_v13 }
 0x1a1   :  { %5224 = vmatprep.subr.bf16.mxu0 %v9382_v44 }
 0x1a2   :  { %v4014_v53 = vpop.f32.mrb[8].mxu1 }
 0x1a3   :  { %5258 = vmatpush3.bf16.msra.mxu1 %v8143_v19  ;;  %v4015_v13 = vpop.f32.mrb[9].mxu1 }
 0x1a4   :  { %5226 = vmatpush3.bf16.msra.mxu0 %v9383_v46  ;;  %5260 = vmatprep.subr.bf16.mxu1 %v8149_v47  ;;  %v4016_v19 = vadd.f32 %v4015_v13, %v4014_v53 }
 0x1a5   :  { %5228 = vmatprep.subr.bf16.mxu0 %v9384_v60  ;;  %v3979_v9 = vpop.f32.mrb[8].mxu0 }
 0x1a6   :  { %v3980_v33 = vpop.f32.mrb[9].mxu0 }
 0x1a7   :  { %5262 = vmatpush3.bf16.msra.mxu1 %v8169_v37  ;;  %v3981_v30 = vadd.f32 %v3980_v33, %v3979_v9  ;;  %v9389_v37 = vld [vmem:[#allocation64_spill] sm:$0xff] }
 0x1a8   :  { %5230 = vmatpush3.bf16.msra.mxu0 %v9385_v39  ;;  %5264 = vmatprep.subr.bf16.mxu1 %v8175_v17  ;;  %v9390_v17 = vld [vmem:[#allocation65_spill] sm:$0xff] }
 0x1a9   :  { %5232 = vmatprep.subr.bf16.mxu0 %v9386_v11  ;;  %v1536_v47 = vadd.f32 %v3981_v30, %v1398_v26 }
 0x1ab   :  { %5266 = vmatpush3.bf16.msra.mxu1 %v8198_v15  ;;  %v1644_v20 = vadd.f32 %v4016_v19, %v1536_v47 }
 0x1ac   :  { %5234 = vmatpush3.bf16.msra.mxu0 %v9387_v31  ;;  %5268 = vmatprep.subr.bf16.mxu1 %v8216_v56 }
 0x1ad   :  { %5236 = vmatprep.subr.bf16.mxu0 %v9388_v55 }
 0x1af   :  { %5270 = vmatpush3.bf16.msra.mxu1 %v8222_v38 }
 0x1b0   :  { %5238 = vmatpush3.bf16.msra.mxu0 %v9389_v37  ;;  %5272 = vmatprep.subr.bf16.mxu1 %v8231_v2 }
 0x1b1   :  { %5240 = vmatprep.subr.bf16.mxu0 %v9390_v17 }
 0x1b3   :  { %5274 = vmatpush3.bf16.msra.mxu1 %v8242_v0 }
 0x1b4   :  { %5242 = vmatpush3.bf16.msra.mxu0 %v9391_v51 }
 0x1b6   :  { %3638 = vmatmul.mubr.f32.vlgmr.msra.gmra.mrb[22].mxu1 %v8178_v48 }
 0x1b7   :  { %3534 = vmatmul.mubr.f32.vlgmr.msra.gmra.mrb[22].mxu0 %v8178_v48 }
 0x1c3   :  { %v4084_v56 = vpop.f32.mrb[10].mxu1 }
 0x1c4   :  { %v4085_v42 = vpop.f32.mrb[11].mxu1 }
 0x1c5   :  { %v4049_v15 = vpop.f32.mrb[10].mxu0  ;;  %v4086_v61 = vadd.f32 %v4085_v42, %v4084_v56 }
 0x1c6   :  { %v4050_v4 = vpop.f32.mrb[11].mxu0 }
 0x1c7   :  { %v4051_v34 = vadd.f32 %v4050_v4, %v4049_v15 }
 0x1c9   :  { %v1812_v10 = vadd.f32 %v4051_v34, %v1644_v20 }
 0x1cb   :  { %v1916_v38 = vadd.f32 %v4086_v61, %v1812_v10 }
 0x1e3   :  { %v4154_v21 = vpop.f32.mrb[12].mxu1 }
 0x1e4   :  { %v4155_v2 = vpop.f32.mrb[13].mxu1 }
 0x1e5   :  { %v4119_v24 = vpop.f32.mrb[12].mxu0  ;;  %v4156_v36 = vadd.f32 %v4155_v2, %v4154_v21 }
 0x1e6   :  { %v4120_v25 = vpop.f32.mrb[13].mxu0 }
 0x1e7   :  { %v4121_v35 = vadd.f32 %v4120_v25, %v4119_v24 }
 0x1e9   :  { %v2028_v62 = vadd.f32 %v4121_v35, %v1916_v38 }
 0x1eb   :  { %v2260_v0 = vadd.f32 %v4156_v36, %v2028_v62 }
 0x205   :  { %v4224_v45 = vpop.f32.mrb[14].mxu1 }
 0x206   :  { %v4225_v48 = vpop.f32.mrb[15].mxu1 }
 0x207   :  { %v4226_v7 = vadd.f32 %v4225_v48, %v4224_v45 }
 0x209   :  { %v4189_v14 = vpop.f32.mrb[14].mxu0 }
 0x20a   :  { %v4190_v54 = vpop.f32.mrb[15].mxu0 }
 0x20b   :  { %v4191_v32 = vadd.f32 %v4190_v54, %v4189_v14 }
 0x20d   :  { %v2398_v63 = vadd.f32 %v4191_v32, %v2260_v0 }
 0x20f   :  { %v2506_v5 = vadd.f32 %v4226_v7, %v2398_v63 }
 0x227   :  { %v4294_v52 = vpop.f32.mrb[16].mxu1 }
 0x228   :  { %v4295_v3 = vpop.f32.mrb[17].mxu1 }
 0x229   :  { %v4259_v50 = vpop.f32.mrb[16].mxu0  ;;  %v4296_v18 = vadd.f32 %v4295_v3, %v4294_v52 }
 0x22a   :  { %v4260_v59 = vpop.f32.mrb[17].mxu0 }
 0x22b   :  { %v4261_v49 = vadd.f32 %v4260_v59, %v4259_v50 }
 0x22d   :  { %v2674_v58 = vadd.f32 %v4261_v49, %v2506_v5 }
 0x22f   :  { %v2778_v29 = vadd.f32 %v4296_v18, %v2674_v58 }
 0x249   :  { %v4364_v16 = vpop.f32.mrb[18].mxu1 }
 0x24a   :  { %v4329_v57 = vpop.f32.mrb[18].mxu0  ;;  %v4365_v26 = vpop.f32.mrb[19].mxu1 }
 0x24b   :  { %v4330_v40 = vpop.f32.mrb[19].mxu0  ;;  %v4366_v1 = vadd.f32 %v4365_v26, %v4364_v16 }
 0x24c   :  { %v4331_v43 = vadd.f32 %v4330_v40, %v4329_v57 }
 0x24e   :  { %v2890_v8 = vadd.f32 %v4331_v43, %v2778_v29 }
 0x250   :  { %v3122_v28 = vadd.f32 %v4366_v1, %v2890_v8 }
 0x269   :  { %v4434_v12 = vpop.f32.mrb[20].mxu1 }
 0x26a   :  { %v4399_v41 = vpop.f32.mrb[20].mxu0  ;;  %v4435_v6 = vpop.f32.mrb[21].mxu1 }
 0x26b   :  { %v4400_v27 = vpop.f32.mrb[21].mxu0  ;;  %v4436_v23 = vadd.f32 %v4435_v6, %v4434_v12 }
 0x26c   :  { %v4401_v22 = vadd.f32 %v4400_v27, %v4399_v41 }
 0x26e   :  { %v3260_v44 = vadd.f32 %v4401_v22, %v3122_v28 }
 0x270   :  { %v3368_v46 = vadd.f32 %v4436_v23, %v3260_v44 }
 0x289   :  { %v4504_v39 = vpop.f32.mrb[22].mxu1 }
 0x28a   :  { %v4469_v60 = vpop.f32.mrb[22].mxu0  ;;  %v4505_v9 = vpop.f32.mrb[23].mxu1 }
 0x28b   :  { %v4470_v11 = vpop.f32.mrb[23].mxu0  ;;  %v4506_v33 = vadd.f32 %v4505_v9, %v4504_v39 }
 0x28c   :  { %v4471_v53 = vadd.f32 %v4470_v11, %v4469_v60 }
 0x28e   :  { %v3536_v13 = vadd.f32 %v4471_v53, %v3368_v46 }
 0x290   :  { %v3640_v30 = vadd.f32 %v4506_v33, %v3536_v13 }
 0x292   :  { %v3644_v31 = vsel %vm3643_vm0, %v3640_v30, 0.0 }
 0x293   :  { %v3645_v19 = vrot.slane %v3644_v31, 4 }
 0x295   :  { %v3646_v55 = vadd.f32 %v3645_v19, %v3644_v31 }
 0x297   :  { %v3647_v47 = vrot.slane %v3646_v55, 2 }
 0x299   :  { %v3648_v37 = vadd.f32 %v3647_v47, %v3646_v55 }
 0x29b   :  { %v3649_v20 = vrot.slane %v3648_v37, 1 }
 0x29d   :  { %v3650_v17 = vadd.f32 %v3649_v20, %v3648_v37 }
 0x29f   :  { %3652 = vst.msk [vmem:[#allocation2] sm:$0x1] %vm3651_vm1, %v3650_v17 }
 0x2a0   :  { %5288 = shalt.err (!%p5285_p4)
}
 0x2a1   :  { %s5289_s5 = scalar_lea.hbm %s8352_s3, 16 }
 0x2a2   :  { %p5290_p5 = scmp.ne.s32.totalorder %s8352_s3, %s5289_s5  ;;  %p5293_p6 = scmp.lt.u32.totalorder %s5289_s5, %s8352_s3 }
 0x2a4   :  { %p5295_p7 = pnand %p5293_p6, %p5290_p5 }
 0x2a6   :  { %5298 = shalt.err (!%p5295_p7)
}
 0x2a7   :  { %3662 = dma.vmem_to_hbm [thread:$0]  %s3660_s27, 16, %s8352_s3, [#allocation3]  }
 0x2a8   :  { %5299 = dma.done.wait [#allocation3], 16  }
 0x2a9   :  { %5300 = vsyncadd [#allocation3], 4294967280 }
 0x2aa   :  { %3666 = vsyncpa [#allocation3], 1 }

</bundles_post_ra>
